<compile_context>
chip_gen: v5e
topology: v5e:2x2
jax: 0.10.0
libtpu: 0.0.40
codegen_flags: <defaults>
</compile_context>

<pallas_src>
import functools

import numpy as np
import jax
import jax.numpy as jnp
from jax import lax
from jax.experimental import pallas as pl
from jax.experimental.pallas import tpu as pltpu


# ----------------------------------------------------------------------------
# Host-side weight preparation (row-Toeplitz / pooling / upsample matrices)
# ----------------------------------------------------------------------------
def _row_toeplitz(w_hwio, w_in, pad_l, pad_r):
    """Fold the KW loop + W padding of a stride-1 conv into per-kh matmul slabs.

    w_hwio: (KH, KW, Cin, Cout).  Returns T: (KH, w_in*Cin, Wo*Cout) with
      out[ho, wo*Cout+co] = sum_kh  x_row[ho+kh] @ T[kh]
    where x_row is the *unpadded* flattened image row (W-major, C-minor)."""
    w = np.asarray(w_hwio, np.float32)
    KH, KW, Cin, Cout = w.shape
    wo_n = w_in + pad_l + pad_r - KW + 1
    T = np.zeros((KH, w_in * Cin, wo_n * Cout), np.float32)
    for kh in range(KH):
        for kw in range(KW):
            for wo in range(wo_n):
                wi = wo + kw - pad_l
                if 0 <= wi < w_in:
                    T[kh, wi * Cin:(wi + 1) * Cin, wo * Cout:(wo + 1) * Cout] = w[kh, kw]
    return T


def _pool_mats(H, W, C):
    """2x2 average pool (F.avg_pool2d(x, 2)) as  PH @ X @ PW  in (H, W*C) layout."""
    PH = np.zeros((H // 2, H), np.float32)
    for i in range(H // 2):
        PH[i, 2 * i] = 0.5
        PH[i, 2 * i + 1] = 0.5
    PW = np.zeros((W * C, (W // 2) * C), np.float32)
    for j in range(W // 2):
        for d in range(2):
            for c in range(C):
                PW[(2 * j + d) * C + c, j * C + c] = 0.5
    return PH, PW


def _upsample_mats(H_in, W_in, C):
    """Stride-2 zero insertion as  UH @ X @ UW  in (H, W*C) layout (trailing zero
    row/col doubles as part of the ConvTranspose2d output_padding)."""
    UH = np.zeros((2 * H_in, H_in), np.float32)
    for i in range(H_in):
        UH[2 * i, i] = 1.0
    UW = np.zeros((W_in * C, 2 * W_in * C), np.float32)
    for j in range(W_in):
        for c in range(C):
            UW[j * C + c, (2 * j) * C + c] = 1.0
    return UH, UW


def _tile_bias(b, w_out):
    """Per-channel bias -> flat (1, w_out*Cout) row for the (H, W*C) layout."""
    return np.tile(np.asarray(b, np.float32), w_out)[None, :]


def _conv_hwio(w):   # torch Conv2d weight (L, Cout, Cin, KH, KW) -> (L, KH, KW, Cin, Cout)
    return jnp.transpose(w, (0, 3, 4, 2, 1))


def _convT_hwio(w):  # torch ConvTranspose2d weight (L, Cin, Cout, KH, KW) -> flipped (L, KH, KW, Cin, Cout)
    return jnp.transpose(jnp.flip(w, (-2, -1)), (0, 3, 4, 1, 2))


def _slab(T):        # (KH, K, N) Toeplitz -> (KH*K, N) im2row slab (tap-major rows)
    T = np.asarray(T, np.float32)
    return T.reshape(T.shape[0] * T.shape[1], T.shape[2])


def init_params(key, in_chan=4, dim=8, out_layers=2, in_layers=2, mode="SQT",
                H=16, W=16):
    in_stacks, out_stacks = {"SQT": (2, 3), "SQT_X": (1, 3),
                             "SQT_RW": (3, 3), "R": (2, 1)}[mode]
    out_ch = out_stacks * in_chan
    cin1 = in_stacks * in_chan
    H2, W2 = H // 2, W // 2
    ks = jax.random.split(key, 12)
    rnd = lambda k, s: 0.1 * jax.random.normal(k, s, jnp.float32)

    # --- synthetic weights in the native torch layouts, then converted ---------
    w1 = _conv_hwio(rnd(ks[0], (in_layers, dim, cin1, 3, 3)))          # Conv2d 3x3 pad 1
    b1 = rnd(ks[1], (in_layers, dim))
    w2 = _conv_hwio(rnd(ks[2], (1, 2 * dim, dim, 3, 3)))[0]            # bias=False
    wm1 = _conv_hwio(rnd(ks[3], (1, 2 * dim, 2 * dim, 5, 5)))[0]
    bm1 = rnd(ks[4], (2 * dim,))
    wm2 = _conv_hwio(rnd(ks[5], (1, 2 * dim, 2 * dim, 5, 5)))[0]
    bm2 = rnd(ks[6], (2 * dim,))
    wup2 = _convT_hwio(rnd(ks[7], (1, 2 * dim, dim, 3, 3)))[0]         # ConvT stride 2
    bup2 = rnd(ks[8], (dim,))
    # torch zero-inits these; nonzero synthetic init keeps the layer exercised.
    wup1 = _convT_hwio(rnd(ks[9], (out_layers, dim, out_ch, 3, 3)))    # ConvT stride 1
    bup1 = rnd(ks[10], (out_layers, out_ch))

    bf, f32 = jnp.bfloat16, jnp.float32

    # --- kernel-side im2row slabs (PW/UW folded in), pool/upsample H matrices ---
    t1 = np.stack([_slab(_row_toeplitz(w1[l], W, 1, 1)) for l in range(in_layers)])
    b1s = np.stack([_tile_bias(b1[l], W) for l in range(in_layers)])        # (L,1,W*dim)

    ph, pw = _pool_mats(H, W, dim)                       # ph:(H2,H)  pw:(W*dim, W2*dim)
    t2 = _row_toeplitz(w2, W2, 1, 1)                     # (3, W2*dim, W2*2dim)
    t2s = _slab(np.einsum('wk,tkn->twn', pw, t2))        # PW folded -> (3*W*dim, W2*2dim)

    tm1s = _slab(_row_toeplitz(wm1, W2, 2, 2))
    tm2s = _slab(_row_toeplitz(wm2, W2, 2, 2))

    uh, uw = _upsample_mats(H2, W2, 2 * dim)             # uh:(2H2,H2) uw:(W2*2dim, 2*W2*2dim)
    tu2 = _row_toeplitz(wup2, 2 * W2, 1, 1)              # (3, 2*W2*2dim, W*dim)
    tu2s = _slab(np.einsum('wk,tkn->twn', uw, tu2))      # UW folded -> (3*W2*2dim, W*dim)

    n6 = W * out_ch
    n6p = max(128, int(np.ceil(n6 / 128.0)) * 128)       # lane-pad output slab to 128*
    tu1 = np.stack([_slab(_row_toeplitz(wup1[l], W, 1, 1)) for l in range(out_layers)])
    tu1p = np.zeros((out_layers, tu1.shape[1], n6p), np.float32)
    tu1p[:, :, :n6] = tu1
    bu1 = np.stack([_tile_bias(bup1[l], W) for l in range(out_layers)])
    bu1p = np.zeros((out_layers, 1, n6p), np.float32)
    bu1p[:, :, :n6] = bu1

    params = dict(
        mode=mode, out_stacks=out_stacks, out_ch=out_ch,
        t1=jnp.asarray(t1, bf), b1=jnp.asarray(b1s, f32),
        t2=jnp.asarray(t2s, bf),
        tm1=jnp.asarray(tm1s, bf), bm1=jnp.asarray(_tile_bias(bm1, W2), f32),
        tm2=jnp.asarray(tm2s, bf), bm2=jnp.asarray(_tile_bias(bm2, W2), f32),
        tu2=jnp.asarray(tu2s, bf), bu2=jnp.asarray(_tile_bias(bup2, W), f32),
        tu1=jnp.asarray(tu1p, bf), bu1=jnp.asarray(bu1p, f32),
        ph_h=np.asarray(ph, np.float32), uh_h=np.asarray(uh, np.float32),
        # raw HWIO weights, only used by the pure-JAX reference check
        raw=dict(w1=w1, b1=b1, w2=w2, wm1=wm1, bm1=bm1, wm2=wm2, bm2=bm2,
                 wup2=wup2, bup2=bup2, wup1=wup1, bup1=bup1),
    )
    return params


# ----------------------------------------------------------------------------
# Fused Pallas kernel: whole Conv_SQT forward for a block of BS samples.
# ----------------------------------------------------------------------------
def _fused_forward_kernel(x_ref, ii_ref, oo_ref,
                          t1_ref, b1_ref, ph_ref, t2_ref,
                          tm1_ref, bm1_ref, tm2_ref, bm2_ref,
                          uh_ref, tu2_ref, bu2_ref, tu1_ref, bu1_ref,
                          o_ref, *, act_up):
    f32, bf16 = jnp.float32, jnp.bfloat16
    bs = x_ref.shape[0]

    def im2row(h, kh, pad):
        """h: (bs, Hin, WC).  Pads H per sample, lane-concatenates the KH shifted
        row-slices, returns a single (bs*Ho, KH*WC) bf16 im2row operand."""
        _, hin, wc = h.shape
        ho = hin + 2 * pad - kh + 1
        z = jnp.zeros((bs, pad, wc), h.dtype)
        hp = jnp.concatenate([z, h, z], axis=1)
        cols = jnp.concatenate([hp[:, k:k + ho, :] for k in range(kh)], axis=2)
        return cols.reshape(bs * ho, kh * wc).astype(bf16), ho

    def select_variants(cols, w_ref, b_ref, sel, ho):
        """One full-M matmul per ModuleList variant (all slabs VMEM resident),
        then a per-sample row select driven by the (bs,1,1) index vector."""
        nv, _, n = w_ref.shape
        out = (jnp.dot(cols, w_ref[0], preferred_element_type=f32)
               + b_ref[0]).reshape(bs, ho, n)
        for l in range(1, nv):
            ol = (jnp.dot(cols, w_ref[l], preferred_element_type=f32)
                  + b_ref[l]).reshape(bs, ho, n)
            out = jnp.where(sel == l, ol, out)
        return out

    # ---- conv1_list[i[b]] : 3x3 pad 1 + ReLU (per-sample variant) --------------
    cols, ho = im2row(x_ref[...], 3, 1)
    h = select_variants(cols, t1_ref, b1_ref, ii_ref[...], ho)
    h = jnp.maximum(h, 0.0)                                   # (bs, H, W*dim) f32

    # ---- MeanPoolConv3x3 : H-pool (block-diag matmul) + 3x3 conv (PW folded) ---
    n1 = h.shape[-1]
    hb = h.reshape(bs * ho, n1).astype(bf16)
    hp = jnp.dot(ph_ref[...], hb, preferred_element_type=f32)  # (bs*H2, W*dim)
    h2 = ph_ref.shape[0] // bs
    cols, ho = im2row(hp.reshape(bs, h2, n1), 3, 1)
    h = jnp.dot(cols, t2_ref[...], preferred_element_type=f32)  # bias=False
    n2 = t2_ref.shape[-1]
    h = jnp.maximum(h, 0.0).reshape(bs, ho, n2)

    # ---- conv_mid1 / conv_mid2 : 5x5 pad 2 + bias + ReLU -----------------------
    for tm_ref, bm_ref in ((tm1_ref, bm1_ref), (tm2_ref, bm2_ref)):
        cols, ho = im2row(h, 5, 2)
        h = jnp.dot(cols, tm_ref[...], preferred_element_type=f32) + bm_ref[...]
        h = jnp.maximum(h, 0.0).reshape(bs, ho, tm_ref.shape[-1])

    # ---- convup2 : stride-2 ConvT = H-upsample matmul + 3x3 conv (UW folded) ---
    nm = h.shape[-1]
    hb = h.reshape(bs * ho, nm).astype(bf16)
    hu = jnp.dot(uh_ref[...], hb, preferred_element_type=f32)   # (bs*2*H2, W2*2dim)
    hu_rows = uh_ref.shape[0] // bs
    cols, ho = im2row(hu.reshape(bs, hu_rows, nm), 3, 1)
    h = jnp.dot(cols, tu2_ref[...], preferred_element_type=f32) + bu2_ref[...]
    if act_up == "relu":
        h = jnp.maximum(h, 0.0)
    else:
        h = jnp.tanh(h)
    h = h.reshape(bs, ho, tu2_ref.shape[-1])

    # ---- convup1_list[o[b]] : stride-1 ConvT (flipped-weight conv), no act -----
    cols, ho = im2row(h, 3, 1)
    out = select_variants(cols, tu1_ref, bu1_ref, oo_ref[...], ho)
    o_ref[...] = out.astype(o_ref.dtype)                        # lane-padded slab


# ----------------------------------------------------------------------------
# Wrapper
# ----------------------------------------------------------------------------
def _const_spec(a):
    nd = a.ndim
    return pl.BlockSpec(a.shape, lambda b, nd=nd: (0,) * nd)


def as_layer_idx(i, B):
    if isinstance(i, int):
        return jnp.full((B,), i, jnp.int32)
    return jnp.asarray(i, jnp.int32)


def conv_sqt_forward(params, in_list, o, i, block_bs=None):
    x = jnp.concatenate(in_list, axis=1)                        # NCHW concat
    B, Cin, H, W = x.shape
    # NOTE: NCHW<->NHWC transposes kept only for the torch-compatible interface;
    # a flat-NHWC consumer could skip them entirely.
    x = jnp.transpose(x, (0, 2, 3, 1)).reshape(B, H, W * Cin).astype(jnp.bfloat16)
    ii = as_layer_idx(i, B).reshape(B, 1, 1)
    oo = as_layer_idx(o, B).reshape(B, 1, 1)

    # Samples per grid step: fill the MXU M axis but keep >= 2 grid steps (v7x 2-TC).
    BS = block_bs if block_bs else max(1, min(8, (B + 1) // 2))
    Bp = pl.cdiv(B, BS) * BS
    if Bp != B:
        x = jnp.concatenate([x, jnp.zeros((Bp - B,) + x.shape[1:], x.dtype)], 0)
        ii = jnp.concatenate([ii, jnp.zeros((Bp - B, 1, 1), ii.dtype)], 0)
        oo = jnp.concatenate([oo, jnp.zeros((Bp - B, 1, 1), oo.dtype)], 0)

    # Block-diagonal pool-H / upsample-H matrices for this sample block size.
    bf = jnp.bfloat16
    ph_big = jnp.asarray(np.kron(np.eye(BS, dtype=np.float32), params["ph_h"]), bf)
    uh_big = jnp.asarray(np.kron(np.eye(BS, dtype=np.float32), params["uh_h"]), bf)

    out_ch = params["out_ch"]
    n_out_pad = params["tu1"].shape[-1]
    act_up = "relu" if params["mode"] == "R" else "tanh"

    out_flat = pl.pallas_call(
        functools.partial(_fused_forward_kernel, act_up=act_up),
        out_shape=jax.ShapeDtypeStruct((Bp, H, n_out_pad), jnp.float32),
        grid_spec=pltpu.PrefetchScalarGridSpec(
            num_scalar_prefetch=0,
            grid=(Bp // BS,),
            in_specs=[
                pl.BlockSpec((BS, H, W * Cin), lambda b: (b, 0, 0)),
                pl.BlockSpec((BS, 1, 1), lambda b: (b, 0, 0)),
                pl.BlockSpec((BS, 1, 1), lambda b: (b, 0, 0)),
                _const_spec(params["t1"]), _const_spec(params["b1"]),
                _const_spec(ph_big),
                _const_spec(params["t2"]),
                _const_spec(params["tm1"]), _const_spec(params["bm1"]),
                _const_spec(params["tm2"]), _const_spec(params["bm2"]),
                _const_spec(uh_big),
                _const_spec(params["tu2"]), _const_spec(params["bu2"]),
                _const_spec(params["tu1"]), _const_spec(params["bu1"]),
            ],
            out_specs=pl.BlockSpec((BS, H, n_out_pad), lambda b: (b, 0, 0)),
        ),
        compiler_params=pltpu.CompilerParams(
            dimension_semantics=("parallel",)),
    )(x, ii, oo,
      params["t1"], params["b1"], ph_big, params["t2"],
      params["tm1"], params["bm1"], params["tm2"], params["bm2"],
      uh_big, params["tu2"], params["bu2"], params["tu1"], params["bu1"])

    out = out_flat[:B, :, :W * out_ch].reshape(B, H, W, out_ch)
    out = jnp.transpose(out, (0, 3, 1, 2))                      # -> NCHW
    if params["out_stacks"] > 1:
        return list(jnp.split(out, params["out_stacks"], axis=1))
    return out


# ----------------------------------------------------------------------------
# Pure-JAX f32 reference (for a bf16-tolerance correctness check only)
# ----------------------------------------------------------------------------
def _ref_conv(x, w, b, pad):
    dn = lax.conv_dimension_numbers(x.shape, w.shape, ("NHWC", "HWIO", "NHWC"))
    y = lax.conv_general_dilated(x, w.astype(jnp.float32), (1, 1), pad,
                                 dimension_numbers=dn)
    if b is not None:
        y = y + b.reshape(1, 1, 1, -1)
    return y


def reference_forward(params, in_list, o_idx, i_idx):
    raw = params["raw"]
    x = jnp.transpose(jnp.concatenate(in_list, axis=1), (0, 2, 3, 1))   # NHWC
    p1, p2 = ((1, 1), (1, 1)), ((2, 2), (2, 2))
    outs = []
    for b in range(x.shape[0]):
        xb = x[b:b + 1]
        li, lo = int(i_idx[b]), int(o_idx[b])
        h = jax.nn.relu(_ref_conv(xb, raw["w1"][li], raw["b1"][li], p1))
        Bh, Hh, Wh, Ch = h.shape
        h = h.reshape(Bh, Hh // 2, 2, Wh // 2, 2, Ch).mean(axis=(2, 4))
        h = jax.nn.relu(_ref_conv(h, raw["w2"], None, p1))
        h = jax.nn.relu(_ref_conv(h, raw["wm1"], raw["bm1"], p2))
        h = jax.nn.relu(_ref_conv(h, raw["wm2"], raw["bm2"], p2))
        Bh, Hh, Wh, Ch = h.shape
        z = jnp.zeros((Bh, 2 * Hh - 1, 2 * Wh - 1, Ch), h.dtype)
        z = z.at[:, ::2, ::2, :].set(h)
        h = _ref_conv(z, raw["wup2"], raw["bup2"], ((1, 2), (1, 2)))
        h = jax.nn.relu(h) if params["mode"] == "R" else jnp.tanh(h)
        h = _ref_conv(h, raw["wup1"][lo], raw["bup1"][lo], p1)
        outs.append(h)
    out = jnp.transpose(jnp.concatenate(outs, axis=0), (0, 3, 1, 2))
    if params["out_stacks"] > 1:
        return list(jnp.split(out, params["out_stacks"], axis=1))
    return out


# ----------------------------------------------------------------------------
if __name__ == "__main__":
    key = jax.random.PRNGKey(0)
    kp, kx1, kx2 = jax.random.split(key, 3)

    B, in_chan, H, W = 8, 4, 16, 16
    dim, in_layers, out_layers = 8, 2, 2
    params = init_params(kp, in_chan=in_chan, dim=dim, out_layers=out_layers,
                         in_layers=in_layers, mode="SQT", H=H, W=W)

    # mode='SQT' -> in_stacks=2: in_list has 2 NCHW tensors
    in_list = [jax.random.normal(kx1, (B, in_chan, H, W), jnp.float32),
               jax.random.normal(kx2, (B, in_chan, H, W), jnp.float32)]
    # per-sample ModuleList indices (exercises the tensor branch of batch_forward,
    # with mixed indices inside a single BS-sample block)
    i_idx = jnp.array([0, 1, 1, 0, 1, 0, 0, 1], jnp.int32)
    o_idx = jnp.array([1, 0, 1, 0, 0, 1, 1, 0], jnp.int32)

    outs = jax.block_until_ready(conv_sqt_forward(params, in_list, o_idx, i_idx))
    refs = jax.block_until_ready(reference_forward(params, in_list, o_idx, i_idx))

    assert isinstance(outs, list) and len(outs) == 3
    for t, r in zip(outs, refs):
        assert t.shape == (B, in_chan, H, W), t.shape
        assert bool(jnp.all(jnp.isfinite(t)))
        err = float(jnp.max(jnp.abs(t - r)))
        scale = float(jnp.max(jnp.abs(r)))
        assert err <= 0.05 * scale + 0.03, f"mismatch: err={err}, scale={scale}"
    print("KERNEL_OK")
</pallas_src>

<mosaic_0001>
module attributes {stable_mosaic.version = 11 : i64} {
  func.func @_fused_forward_kernel(%arg0: i32, %arg1: memref<4x16x128xbf16, #tpu.memory_space<vmem>>, %arg2: memref<4x1x1xi32, #tpu.memory_space<vmem>>, %arg3: memref<4x1x1xi32, #tpu.memory_space<vmem>>, %arg4: memref<2x384x128xbf16, #tpu.memory_space<vmem>>, %arg5: memref<2x1x128xf32, #tpu.memory_space<vmem>>, %arg6: memref<32x64xbf16, #tpu.memory_space<vmem>>, %arg7: memref<384x128xbf16, #tpu.memory_space<vmem>>, %arg8: memref<640x128xbf16, #tpu.memory_space<vmem>>, %arg9: memref<1x128xf32, #tpu.memory_space<vmem>>, %arg10: memref<640x128xbf16, #tpu.memory_space<vmem>>, %arg11: memref<1x128xf32, #tpu.memory_space<vmem>>, %arg12: memref<64x32xbf16, #tpu.memory_space<vmem>>, %arg13: memref<384x128xbf16, #tpu.memory_space<vmem>>, %arg14: memref<1x128xf32, #tpu.memory_space<vmem>>, %arg15: memref<2x384x256xbf16, #tpu.memory_space<vmem>>, %arg16: memref<2x1x256xf32, #tpu.memory_space<vmem>>, %arg17: memref<4x16x256xf32, #tpu.memory_space<vmem>>) attributes {dimension_semantics = [#tpu.dimension_semantics<parallel>], iteration_bounds = array<i64: 2>, scalar_prefetch = 0 : i64, scratch_operands = 0 : i64, tpu.core_type = #tpu.core_type<tc>, window_params = [{transform_indices = @transform_0, window_bounds = array<i64: 4, 16, 128>}, {transform_indices = @transform_1, window_bounds = array<i64: 4, 1, 1>}, {transform_indices = @transform_2, window_bounds = array<i64: 4, 1, 1>}, {pipeline_mode = #tpu.pipeline_mode<synchronous>, transform_indices = @transform_3, window_bounds = array<i64: 2, 384, 128>}, {pipeline_mode = #tpu.pipeline_mode<synchronous>, transform_indices = @transform_4, window_bounds = array<i64: 2, 1, 128>}, {pipeline_mode = #tpu.pipeline_mode<synchronous>, transform_indices = @transform_5, window_bounds = array<i64: 32, 64>}, {pipeline_mode = #tpu.pipeline_mode<synchronous>, transform_indices = @transform_6, window_bounds = array<i64: 384, 128>}, {pipeline_mode = #tpu.pipeline_mode<synchronous>, transform_indices = @transform_7, window_bounds = array<i64: 640, 128>}, {pipeline_mode = #tpu.pipeline_mode<synchronous>, transform_indices = @transform_8, window_bounds = array<i64: 1, 128>}, {pipeline_mode = #tpu.pipeline_mode<synchronous>, transform_indices = @transform_9, window_bounds = array<i64: 640, 128>}, {pipeline_mode = #tpu.pipeline_mode<synchronous>, transform_indices = @transform_10, window_bounds = array<i64: 1, 128>}, {pipeline_mode = #tpu.pipeline_mode<synchronous>, transform_indices = @transform_11, window_bounds = array<i64: 64, 32>}, {pipeline_mode = #tpu.pipeline_mode<synchronous>, transform_indices = @transform_12, window_bounds = array<i64: 384, 128>}, {pipeline_mode = #tpu.pipeline_mode<synchronous>, transform_indices = @transform_13, window_bounds = array<i64: 1, 128>}, {pipeline_mode = #tpu.pipeline_mode<synchronous>, transform_indices = @transform_14, window_bounds = array<i64: 2, 384, 256>}, {pipeline_mode = #tpu.pipeline_mode<synchronous>, transform_indices = @transform_15, window_bounds = array<i64: 2, 1, 256>}, {transform_indices = @transform_16, window_bounds = array<i64: 4, 16, 256>}]} {
    %c0 = arith.constant 0 : index
    %c0_0 = arith.constant 0 : index
    %c0_1 = arith.constant 0 : index
    %0 = vector.load %arg1[%c0, %c0_0, %c0_1] : memref<4x16x128xbf16, #tpu.memory_space<vmem>>, vector<4x16x128xbf16>
    %cst = arith.constant 0.000000e+00 : bf16
    %1 = vector.broadcast %cst : bf16 to vector<4x1x128xbf16>
    %2 = tpu.concatenate %1, %0, %1 in 1 : vector<4x1x128xbf16>, vector<4x16x128xbf16>, vector<4x1x128xbf16> -> vector<4x18x128xbf16>
    %3 = vector.extract_strided_slice %2 {offsets = [0, 0, 0], sizes = [4, 16, 128], strides = [1, 1, 1]} : vector<4x18x128xbf16> to vector<4x16x128xbf16>
    %4 = vector.extract_strided_slice %2 {offsets = [0, 1, 0], sizes = [4, 16, 128], strides = [1, 1, 1]} : vector<4x18x128xbf16> to vector<4x16x128xbf16>
    %5 = vector.extract_strided_slice %2 {offsets = [0, 2, 0], sizes = [4, 16, 128], strides = [1, 1, 1]} : vector<4x18x128xbf16> to vector<4x16x128xbf16>
    %6 = tpu.concatenate %3, %4, %5 in 2 : vector<4x16x128xbf16>, vector<4x16x128xbf16>, vector<4x16x128xbf16> -> vector<4x16x384xbf16>
    %7 = vector.shape_cast %6 : vector<4x16x384xbf16> to vector<64x384xbf16>
    %c0_2 = arith.constant 0 : index
    %c0_3 = arith.constant 0 : index
    %c0_4 = arith.constant 0 : index
    %8 = vector.load %arg2[%c0_2, %c0_3, %c0_4] : memref<4x1x1xi32, #tpu.memory_space<vmem>>, vector<4x1x1xi32>
    %c0_5 = arith.constant 0 : index
    %c0_6 = arith.constant 0 : index
    %c0_7 = arith.constant 0 : index
    %9 = vector.load %arg4[%c0_5, %c0_6, %c0_7] : memref<2x384x128xbf16, #tpu.memory_space<vmem>>, vector<1x384x128xbf16>
    %10 = vector.shape_cast %9 : vector<1x384x128xbf16> to vector<384x128xbf16>
    %cst_8 = arith.constant dense<0.000000e+00> : vector<64x128xf32>
    %11 = tpu.matmul %7, %10, %cst_8 {dimension_numbers = #tpu.dot_dimension_numbers<[1], [0], [0], [1], [0, 0, 1, 1], [], []>} : vector<64x384xbf16>, vector<384x128xbf16>, vector<64x128xf32> -> vector<64x128xf32>
    %c0_9 = arith.constant 0 : index
    %c0_10 = arith.constant 0 : index
    %c0_11 = arith.constant 0 : index
    %12 = vector.load %arg5[%c0_9, %c0_10, %c0_11] : memref<2x1x128xf32, #tpu.memory_space<vmem>>, vector<1x1x128xf32>
    %13 = vector.shape_cast %12 : vector<1x1x128xf32> to vector<1x128xf32>
    %14 = vector.broadcast %13 : vector<1x128xf32> to vector<64x128xf32>
    %15 = arith.addf %11, %14 : vector<64x128xf32>
    %16 = vector.shape_cast %15 : vector<64x128xf32> to vector<4x16x128xf32>
    %c1 = arith.constant 1 : index
    %c0_12 = arith.constant 0 : index
    %c0_13 = arith.constant 0 : index
    %17 = vector.load %arg4[%c1, %c0_12, %c0_13] : memref<2x384x128xbf16, #tpu.memory_space<vmem>>, vector<1x384x128xbf16>
    %18 = vector.shape_cast %17 : vector<1x384x128xbf16> to vector<384x128xbf16>
    %cst_14 = arith.constant dense<0.000000e+00> : vector<64x128xf32>
    %19 = tpu.matmul %7, %18, %cst_14 {dimension_numbers = #tpu.dot_dimension_numbers<[1], [0], [0], [1], [0, 0, 1, 1], [], []>} : vector<64x384xbf16>, vector<384x128xbf16>, vector<64x128xf32> -> vector<64x128xf32>
    %c1_15 = arith.constant 1 : index
    %c0_16 = arith.constant 0 : index
    %c0_17 = arith.constant 0 : index
    %20 = vector.load %arg5[%c1_15, %c0_16, %c0_17] : memref<2x1x128xf32, #tpu.memory_space<vmem>>, vector<1x1x128xf32>
    %21 = vector.shape_cast %20 : vector<1x1x128xf32> to vector<1x128xf32>
    %22 = vector.broadcast %21 : vector<1x128xf32> to vector<64x128xf32>
    %23 = arith.addf %19, %22 : vector<64x128xf32>
    %24 = vector.shape_cast %23 : vector<64x128xf32> to vector<4x16x128xf32>
    %c1_i32 = arith.constant 1 : i32
    %25 = vector.broadcast %c1_i32 : i32 to vector<4x1x1xi32>
    %26 = arith.cmpi eq, %8, %25 : vector<4x1x1xi32>
    %27 = vector.shape_cast %26 : vector<4x1x1xi1> to vector<4x1x1xi1>
    %28 = vector.broadcast %27 : vector<4x1x1xi1> to vector<4x16x128xi1>
    %29 = arith.select %28, %24, %16 : vector<4x16x128xi1>, vector<4x16x128xf32>
    %cst_18 = arith.constant 0.000000e+00 : f32
    %30 = vector.broadcast %cst_18 : f32 to vector<4x16x128xf32>
    %31 = arith.maximumf %29, %30 : vector<4x16x128xf32>
    %32 = vector.shape_cast %31 : vector<4x16x128xf32> to vector<64x128xf32>
    %33 = arith.truncf %32 : vector<64x128xf32> to vector<64x128xbf16>
    %c0_19 = arith.constant 0 : index
    %c0_20 = arith.constant 0 : index
    %34 = vector.load %arg6[%c0_19, %c0_20] : memref<32x64xbf16, #tpu.memory_space<vmem>>, vector<32x64xbf16>
    %cst_21 = arith.constant dense<0.000000e+00> : vector<32x128xf32>
    %35 = tpu.matmul %34, %33, %cst_21 {dimension_numbers = #tpu.dot_dimension_numbers<[1], [0], [0], [1], [0, 0, 1, 1], [], []>} : vector<32x64xbf16>, vector<64x128xbf16>, vector<32x128xf32> -> vector<32x128xf32>
    %36 = vector.shape_cast %35 : vector<32x128xf32> to vector<4x8x128xf32>
    %cst_22 = arith.constant 0.000000e+00 : f32
    %37 = vector.broadcast %cst_22 : f32 to vector<4x1x128xf32>
    %38 = tpu.concatenate %37, %36, %37 in 1 : vector<4x1x128xf32>, vector<4x8x128xf32>, vector<4x1x128xf32> -> vector<4x10x128xf32>
    %39 = vector.extract_strided_slice %38 {offsets = [0, 0, 0], sizes = [4, 8, 128], strides = [1, 1, 1]} : vector<4x10x128xf32> to vector<4x8x128xf32>
    %40 = vector.extract_strided_slice %38 {offsets = [0, 1, 0], sizes = [4, 8, 128], strides = [1, 1, 1]} : vector<4x10x128xf32> to vector<4x8x128xf32>
    %41 = vector.extract_strided_slice %38 {offsets = [0, 2, 0], sizes = [4, 8, 128], strides = [1, 1, 1]} : vector<4x10x128xf32> to vector<4x8x128xf32>
    %42 = tpu.concatenate %39, %40, %41 in 2 : vector<4x8x128xf32>, vector<4x8x128xf32>, vector<4x8x128xf32> -> vector<4x8x384xf32>
    %43 = vector.shape_cast %42 : vector<4x8x384xf32> to vector<32x384xf32>
    %44 = arith.truncf %43 : vector<32x384xf32> to vector<32x384xbf16>
    %c0_23 = arith.constant 0 : index
    %c0_24 = arith.constant 0 : index
    %45 = vector.load %arg7[%c0_23, %c0_24] : memref<384x128xbf16, #tpu.memory_space<vmem>>, vector<384x128xbf16>
    %cst_25 = arith.constant dense<0.000000e+00> : vector<32x128xf32>
    %46 = tpu.matmul %44, %45, %cst_25 {dimension_numbers = #tpu.dot_dimension_numbers<[1], [0], [0], [1], [0, 0, 1, 1], [], []>} : vector<32x384xbf16>, vector<384x128xbf16>, vector<32x128xf32> -> vector<32x128xf32>
    %cst_26 = arith.constant 0.000000e+00 : f32
    %47 = vector.broadcast %cst_26 : f32 to vector<32x128xf32>
    %48 = arith.maximumf %46, %47 : vector<32x128xf32>
    %49 = vector.shape_cast %48 : vector<32x128xf32> to vector<4x8x128xf32>
    %cst_27 = arith.constant 0.000000e+00 : f32
    %50 = vector.broadcast %cst_27 : f32 to vector<4x2x128xf32>
    %51 = tpu.concatenate %50, %49, %50 in 1 : vector<4x2x128xf32>, vector<4x8x128xf32>, vector<4x2x128xf32> -> vector<4x12x128xf32>
    %52 = vector.extract_strided_slice %51 {offsets = [0, 0, 0], sizes = [4, 8, 128], strides = [1, 1, 1]} : vector<4x12x128xf32> to vector<4x8x128xf32>
    %53 = vector.extract_strided_slice %51 {offsets = [0, 1, 0], sizes = [4, 8, 128], strides = [1, 1, 1]} : vector<4x12x128xf32> to vector<4x8x128xf32>
    %54 = vector.extract_strided_slice %51 {offsets = [0, 2, 0], sizes = [4, 8, 128], strides = [1, 1, 1]} : vector<4x12x128xf32> to vector<4x8x128xf32>
    %55 = vector.extract_strided_slice %51 {offsets = [0, 3, 0], sizes = [4, 8, 128], strides = [1, 1, 1]} : vector<4x12x128xf32> to vector<4x8x128xf32>
    %56 = vector.extract_strided_slice %51 {offsets = [0, 4, 0], sizes = [4, 8, 128], strides = [1, 1, 1]} : vector<4x12x128xf32> to vector<4x8x128xf32>
    %57 = tpu.concatenate %52, %53, %54, %55, %56 in 2 : vector<4x8x128xf32>, vector<4x8x128xf32>, vector<4x8x128xf32>, vector<4x8x128xf32>, vector<4x8x128xf32> -> vector<4x8x640xf32>
    %58 = vector.shape_cast %57 : vector<4x8x640xf32> to vector<32x640xf32>
    %59 = arith.truncf %58 : vector<32x640xf32> to vector<32x640xbf16>
    %c0_28 = arith.constant 0 : index
    %c0_29 = arith.constant 0 : index
    %60 = vector.load %arg8[%c0_28, %c0_29] : memref<640x128xbf16, #tpu.memory_space<vmem>>, vector<640x128xbf16>
    %cst_30 = arith.constant dense<0.000000e+00> : vector<32x128xf32>
    %61 = tpu.matmul %59, %60, %cst_30 {dimension_numbers = #tpu.dot_dimension_numbers<[1], [0], [0], [1], [0, 0, 1, 1], [], []>} : vector<32x640xbf16>, vector<640x128xbf16>, vector<32x128xf32> -> vector<32x128xf32>
    %c0_31 = arith.constant 0 : index
    %c0_32 = arith.constant 0 : index
    %62 = vector.load %arg9[%c0_31, %c0_32] : memref<1x128xf32, #tpu.memory_space<vmem>>, vector<1x128xf32>
    %63 = vector.broadcast %62 : vector<1x128xf32> to vector<32x128xf32>
    %64 = arith.addf %61, %63 : vector<32x128xf32>
    %cst_33 = arith.constant 0.000000e+00 : f32
    %65 = vector.broadcast %cst_33 : f32 to vector<32x128xf32>
    %66 = arith.maximumf %64, %65 : vector<32x128xf32>
    %67 = vector.shape_cast %66 : vector<32x128xf32> to vector<4x8x128xf32>
    %cst_34 = arith.constant 0.000000e+00 : f32
    %68 = vector.broadcast %cst_34 : f32 to vector<4x2x128xf32>
    %69 = tpu.concatenate %68, %67, %68 in 1 : vector<4x2x128xf32>, vector<4x8x128xf32>, vector<4x2x128xf32> -> vector<4x12x128xf32>
    %70 = vector.extract_strided_slice %69 {offsets = [0, 0, 0], sizes = [4, 8, 128], strides = [1, 1, 1]} : vector<4x12x128xf32> to vector<4x8x128xf32>
    %71 = vector.extract_strided_slice %69 {offsets = [0, 1, 0], sizes = [4, 8, 128], strides = [1, 1, 1]} : vector<4x12x128xf32> to vector<4x8x128xf32>
    %72 = vector.extract_strided_slice %69 {offsets = [0, 2, 0], sizes = [4, 8, 128], strides = [1, 1, 1]} : vector<4x12x128xf32> to vector<4x8x128xf32>
    %73 = vector.extract_strided_slice %69 {offsets = [0, 3, 0], sizes = [4, 8, 128], strides = [1, 1, 1]} : vector<4x12x128xf32> to vector<4x8x128xf32>
    %74 = vector.extract_strided_slice %69 {offsets = [0, 4, 0], sizes = [4, 8, 128], strides = [1, 1, 1]} : vector<4x12x128xf32> to vector<4x8x128xf32>
    %75 = tpu.concatenate %70, %71, %72, %73, %74 in 2 : vector<4x8x128xf32>, vector<4x8x128xf32>, vector<4x8x128xf32>, vector<4x8x128xf32>, vector<4x8x128xf32> -> vector<4x8x640xf32>
    %76 = vector.shape_cast %75 : vector<4x8x640xf32> to vector<32x640xf32>
    %77 = arith.truncf %76 : vector<32x640xf32> to vector<32x640xbf16>
    %c0_35 = arith.constant 0 : index
    %c0_36 = arith.constant 0 : index
    %78 = vector.load %arg10[%c0_35, %c0_36] : memref<640x128xbf16, #tpu.memory_space<vmem>>, vector<640x128xbf16>
    %cst_37 = arith.constant dense<0.000000e+00> : vector<32x128xf32>
    %79 = tpu.matmul %77, %78, %cst_37 {dimension_numbers = #tpu.dot_dimension_numbers<[1], [0], [0], [1], [0, 0, 1, 1], [], []>} : vector<32x640xbf16>, vector<640x128xbf16>, vector<32x128xf32> -> vector<32x128xf32>
    %c0_38 = arith.constant 0 : index
    %c0_39 = arith.constant 0 : index
    %80 = vector.load %arg11[%c0_38, %c0_39] : memref<1x128xf32, #tpu.memory_space<vmem>>, vector<1x128xf32>
    %81 = vector.broadcast %80 : vector<1x128xf32> to vector<32x128xf32>
    %82 = arith.addf %79, %81 : vector<32x128xf32>
    %cst_40 = arith.constant 0.000000e+00 : f32
    %83 = vector.broadcast %cst_40 : f32 to vector<32x128xf32>
    %84 = arith.maximumf %82, %83 : vector<32x128xf32>
    %85 = vector.shape_cast %84 : vector<32x128xf32> to vector<4x8x128xf32>
    %86 = vector.shape_cast %85 : vector<4x8x128xf32> to vector<32x128xf32>
    %87 = arith.truncf %86 : vector<32x128xf32> to vector<32x128xbf16>
    %c0_41 = arith.constant 0 : index
    %c0_42 = arith.constant 0 : index
    %88 = vector.load %arg12[%c0_41, %c0_42] : memref<64x32xbf16, #tpu.memory_space<vmem>>, vector<64x32xbf16>
    %cst_43 = arith.constant dense<0.000000e+00> : vector<64x128xf32>
    %89 = tpu.matmul %88, %87, %cst_43 {dimension_numbers = #tpu.dot_dimension_numbers<[1], [0], [0], [1], [0, 0, 1, 1], [], []>} : vector<64x32xbf16>, vector<32x128xbf16>, vector<64x128xf32> -> vector<64x128xf32>
    %90 = vector.shape_cast %89 : vector<64x128xf32> to vector<4x16x128xf32>
    %cst_44 = arith.constant 0.000000e+00 : f32
    %91 = vector.broadcast %cst_44 : f32 to vector<4x1x128xf32>
    %92 = tpu.concatenate %91, %90, %91 in 1 : vector<4x1x128xf32>, vector<4x16x128xf32>, vector<4x1x128xf32> -> vector<4x18x128xf32>
    %93 = vector.extract_strided_slice %92 {offsets = [0, 0, 0], sizes = [4, 16, 128], strides = [1, 1, 1]} : vector<4x18x128xf32> to vector<4x16x128xf32>
    %94 = vector.extract_strided_slice %92 {offsets = [0, 1, 0], sizes = [4, 16, 128], strides = [1, 1, 1]} : vector<4x18x128xf32> to vector<4x16x128xf32>
    %95 = vector.extract_strided_slice %92 {offsets = [0, 2, 0], sizes = [4, 16, 128], strides = [1, 1, 1]} : vector<4x18x128xf32> to vector<4x16x128xf32>
    %96 = tpu.concatenate %93, %94, %95 in 2 : vector<4x16x128xf32>, vector<4x16x128xf32>, vector<4x16x128xf32> -> vector<4x16x384xf32>
    %97 = vector.shape_cast %96 : vector<4x16x384xf32> to vector<64x384xf32>
    %98 = arith.truncf %97 : vector<64x384xf32> to vector<64x384xbf16>
    %c0_45 = arith.constant 0 : index
    %c0_46 = arith.constant 0 : index
    %99 = vector.load %arg13[%c0_45, %c0_46] : memref<384x128xbf16, #tpu.memory_space<vmem>>, vector<384x128xbf16>
    %cst_47 = arith.constant dense<0.000000e+00> : vector<64x128xf32>
    %100 = tpu.matmul %98, %99, %cst_47 {dimension_numbers = #tpu.dot_dimension_numbers<[1], [0], [0], [1], [0, 0, 1, 1], [], []>} : vector<64x384xbf16>, vector<384x128xbf16>, vector<64x128xf32> -> vector<64x128xf32>
    %c0_48 = arith.constant 0 : index
    %c0_49 = arith.constant 0 : index
    %101 = vector.load %arg14[%c0_48, %c0_49] : memref<1x128xf32, #tpu.memory_space<vmem>>, vector<1x128xf32>
    %102 = vector.broadcast %101 : vector<1x128xf32> to vector<64x128xf32>
    %103 = arith.addf %100, %102 : vector<64x128xf32>
    %104 = math.tanh %103 : vector<64x128xf32>
    %105 = vector.shape_cast %104 : vector<64x128xf32> to vector<4x16x128xf32>
    %cst_50 = arith.constant 0.000000e+00 : f32
    %106 = vector.broadcast %cst_50 : f32 to vector<4x1x128xf32>
    %107 = tpu.concatenate %106, %105, %106 in 1 : vector<4x1x128xf32>, vector<4x16x128xf32>, vector<4x1x128xf32> -> vector<4x18x128xf32>
    %108 = vector.extract_strided_slice %107 {offsets = [0, 0, 0], sizes = [4, 16, 128], strides = [1, 1, 1]} : vector<4x18x128xf32> to vector<4x16x128xf32>
    %109 = vector.extract_strided_slice %107 {offsets = [0, 1, 0], sizes = [4, 16, 128], strides = [1, 1, 1]} : vector<4x18x128xf32> to vector<4x16x128xf32>
    %110 = vector.extract_strided_slice %107 {offsets = [0, 2, 0], sizes = [4, 16, 128], strides = [1, 1, 1]} : vector<4x18x128xf32> to vector<4x16x128xf32>
    %111 = tpu.concatenate %108, %109, %110 in 2 : vector<4x16x128xf32>, vector<4x16x128xf32>, vector<4x16x128xf32> -> vector<4x16x384xf32>
    %112 = vector.shape_cast %111 : vector<4x16x384xf32> to vector<64x384xf32>
    %113 = arith.truncf %112 : vector<64x384xf32> to vector<64x384xbf16>
    %c0_51 = arith.constant 0 : index
    %c0_52 = arith.constant 0 : index
    %c0_53 = arith.constant 0 : index
    %114 = vector.load %arg3[%c0_51, %c0_52, %c0_53] : memref<4x1x1xi32, #tpu.memory_space<vmem>>, vector<4x1x1xi32>
    %c0_54 = arith.constant 0 : index
    %c0_55 = arith.constant 0 : index
    %c0_56 = arith.constant 0 : index
    %115 = vector.load %arg15[%c0_54, %c0_55, %c0_56] : memref<2x384x256xbf16, #tpu.memory_space<vmem>>, vector<1x384x256xbf16>
    %116 = vector.shape_cast %115 : vector<1x384x256xbf16> to vector<384x256xbf16>
    %cst_57 = arith.constant dense<0.000000e+00> : vector<64x256xf32>
    %117 = tpu.matmul %113, %116, %cst_57 {dimension_numbers = #tpu.dot_dimension_numbers<[1], [0], [0], [1], [0, 0, 1, 1], [], []>} : vector<64x384xbf16>, vector<384x256xbf16>, vector<64x256xf32> -> vector<64x256xf32>
    %c0_58 = arith.constant 0 : index
    %c0_59 = arith.constant 0 : index
    %c0_60 = arith.constant 0 : index
    %118 = vector.load %arg16[%c0_58, %c0_59, %c0_60] : memref<2x1x256xf32, #tpu.memory_space<vmem>>, vector<1x1x256xf32>
    %119 = vector.shape_cast %118 : vector<1x1x256xf32> to vector<1x256xf32>
    %120 = vector.broadcast %119 : vector<1x256xf32> to vector<64x256xf32>
    %121 = arith.addf %117, %120 : vector<64x256xf32>
    %122 = vector.shape_cast %121 : vector<64x256xf32> to vector<4x16x256xf32>
    %c1_61 = arith.constant 1 : index
    %c0_62 = arith.constant 0 : index
    %c0_63 = arith.constant 0 : index
    %123 = vector.load %arg15[%c1_61, %c0_62, %c0_63] : memref<2x384x256xbf16, #tpu.memory_space<vmem>>, vector<1x384x256xbf16>
    %124 = vector.shape_cast %123 : vector<1x384x256xbf16> to vector<384x256xbf16>
    %cst_64 = arith.constant dense<0.000000e+00> : vector<64x256xf32>
    %125 = tpu.matmul %113, %124, %cst_64 {dimension_numbers = #tpu.dot_dimension_numbers<[1], [0], [0], [1], [0, 0, 1, 1], [], []>} : vector<64x384xbf16>, vector<384x256xbf16>, vector<64x256xf32> -> vector<64x256xf32>
    %c1_65 = arith.constant 1 : index
    %c0_66 = arith.constant 0 : index
    %c0_67 = arith.constant 0 : index
    %126 = vector.load %arg16[%c1_65, %c0_66, %c0_67] : memref<2x1x256xf32, #tpu.memory_space<vmem>>, vector<1x1x256xf32>
    %127 = vector.shape_cast %126 : vector<1x1x256xf32> to vector<1x256xf32>
    %128 = vector.broadcast %127 : vector<1x256xf32> to vector<64x256xf32>
    %129 = arith.addf %125, %128 : vector<64x256xf32>
    %130 = vector.shape_cast %129 : vector<64x256xf32> to vector<4x16x256xf32>
    %c1_i32_68 = arith.constant 1 : i32
    %131 = vector.broadcast %c1_i32_68 : i32 to vector<4x1x1xi32>
    %132 = arith.cmpi eq, %114, %131 : vector<4x1x1xi32>
    %133 = vector.shape_cast %132 : vector<4x1x1xi1> to vector<4x1x1xi1>
    %134 = vector.broadcast %133 : vector<4x1x1xi1> to vector<4x16x256xi1>
    %135 = arith.select %134, %130, %122 : vector<4x16x256xi1>, vector<4x16x256xf32>
    %c0_69 = arith.constant 0 : index
    %c0_70 = arith.constant 0 : index
    %c0_71 = arith.constant 0 : index
    %136 = vector.load %arg17[%c0_69, %c0_70, %c0_71] : memref<4x16x256xf32, #tpu.memory_space<vmem>>, vector<4x16x256xf32>
    tpu.vector_store %arg17[%c0_69, %c0_70, %c0_71], %135 {strides = array<i32>} : memref<4x16x256xf32, #tpu.memory_space<vmem>>, vector<4x16x256xf32>,
    return
  }
  func.func @transform_0(%arg0: i32) -> (i32, i32, i32) {
    %c0_i32 = arith.constant 0 : i32
    %c0_i32_0 = arith.constant 0 : i32
    %c0_i32_1 = arith.constant 0 : i32
    return %arg0, %c0_i32, %c0_i32_0 : i32, i32, i32
  }
  func.func @transform_1(%arg0: i32) -> (i32, i32, i32) {
    %c0_i32 = arith.constant 0 : i32
    %c0_i32_0 = arith.constant 0 : i32
    %c0_i32_1 = arith.constant 0 : i32
    return %arg0, %c0_i32, %c0_i32_0 : i32, i32, i32
  }
  func.func @transform_2(%arg0: i32) -> (i32, i32, i32) {
    %c0_i32 = arith.constant 0 : i32
    %c0_i32_0 = arith.constant 0 : i32
    %c0_i32_1 = arith.constant 0 : i32
    return %arg0, %c0_i32, %c0_i32_0 : i32, i32, i32
  }
  func.func @transform_3(%arg0: i32) -> (i32, i32, i32) {
    %c0_i32 = arith.constant 0 : i32
    %c0_i32_0 = arith.constant 0 : i32
    %c0_i32_1 = arith.constant 0 : i32
    %c0_i32_2 = arith.constant 0 : i32
    return %c0_i32, %c0_i32_0, %c0_i32_1 : i32, i32, i32
  }
  func.func @transform_4(%arg0: i32) -> (i32, i32, i32) {
    %c0_i32 = arith.constant 0 : i32
    %c0_i32_0 = arith.constant 0 : i32
    %c0_i32_1 = arith.constant 0 : i32
    %c0_i32_2 = arith.constant 0 : i32
    return %c0_i32, %c0_i32_0, %c0_i32_1 : i32, i32, i32
  }
  func.func @transform_5(%arg0: i32) -> (i32, i32) {
    %c0_i32 = arith.constant 0 : i32
    %c0_i32_0 = arith.constant 0 : i32
    %c0_i32_1 = arith.constant 0 : i32
    return %c0_i32, %c0_i32_0 : i32, i32
  }
  func.func @transform_6(%arg0: i32) -> (i32, i32) {
    %c0_i32 = arith.constant 0 : i32
    %c0_i32_0 = arith.constant 0 : i32
    %c0_i32_1 = arith.constant 0 : i32
    return %c0_i32, %c0_i32_0 : i32, i32
  }
  func.func @transform_7(%arg0: i32) -> (i32, i32) {
    %c0_i32 = arith.constant 0 : i32
    %c0_i32_0 = arith.constant 0 : i32
    %c0_i32_1 = arith.constant 0 : i32
    return %c0_i32, %c0_i32_0 : i32, i32
  }
  func.func @transform_8(%arg0: i32) -> (i32, i32) {
    %c0_i32 = arith.constant 0 : i32
    %c0_i32_0 = arith.constant 0 : i32
    %c0_i32_1 = arith.constant 0 : i32
    return %c0_i32, %c0_i32_0 : i32, i32
  }
  func.func @transform_9(%arg0: i32) -> (i32, i32) {
    %c0_i32 = arith.constant 0 : i32
    %c0_i32_0 = arith.constant 0 : i32
    %c0_i32_1 = arith.constant 0 : i32
    return %c0_i32, %c0_i32_0 : i32, i32
  }
  func.func @transform_10(%arg0: i32) -> (i32, i32) {
    %c0_i32 = arith.constant 0 : i32
    %c0_i32_0 = arith.constant 0 : i32
    %c0_i32_1 = arith.constant 0 : i32
    return %c0_i32, %c0_i32_0 : i32, i32
  }
  func.func @transform_11(%arg0: i32) -> (i32, i32) {
    %c0_i32 = arith.constant 0 : i32
    %c0_i32_0 = arith.constant 0 : i32
    %c0_i32_1 = arith.constant 0 : i32
    return %c0_i32, %c0_i32_0 : i32, i32
  }
  func.func @transform_12(%arg0: i32) -> (i32, i32) {
    %c0_i32 = arith.constant 0 : i32
    %c0_i32_0 = arith.constant 0 : i32
    %c0_i32_1 = arith.constant 0 : i32
    return %c0_i32, %c0_i32_0 : i32, i32
  }
  func.func @transform_13(%arg0: i32) -> (i32, i32) {
    %c0_i32 = arith.constant 0 : i32
    %c0_i32_0 = arith.constant 0 : i32
    %c0_i32_1 = arith.constant 0 : i32
    return %c0_i32, %c0_i32_0 : i32, i32
  }
  func.func @transform_14(%arg0: i32) -> (i32, i32, i32) {
    %c0_i32 = arith.constant 0 : i32
    %c0_i32_0 = arith.constant 0 : i32
    %c0_i32_1 = arith.constant 0 : i32
    %c0_i32_2 = arith.constant 0 : i32
    return %c0_i32, %c0_i32_0, %c0_i32_1 : i32, i32, i32
  }
  func.func @transform_15(%arg0: i32) -> (i32, i32, i32) {
    %c0_i32 = arith.constant 0 : i32
    %c0_i32_0 = arith.constant 0 : i32
    %c0_i32_1 = arith.constant 0 : i32
    %c0_i32_2 = arith.constant 0 : i32
    return %c0_i32, %c0_i32_0, %c0_i32_1 : i32, i32, i32
  }
  func.func @transform_16(%arg0: i32) -> (i32, i32, i32) {
    %c0_i32 = arith.constant 0 : i32
    %c0_i32_0 = arith.constant 0 : i32
    %c0_i32_1 = arith.constant 0 : i32
    return %arg0, %c0_i32, %c0_i32_0 : i32, i32, i32
  }
}

</mosaic_0001>

<bundles_post_ra>
// kernel: tpu_custom_call.1
= control target key start
LH: loop header
LB: loop body
LE: loop exit
PB: predicated region body
PF: predicated region fallthrough
CT: control target
= control target key end

     0   :  { %s7688_s0 = inlined_call_operand.hbm [shape: bf16[8,16,128], index: 0, kind: input, shape index: {}]   ;;  %s7689_s1 = inlined_call_operand.vmem [shape: s32[8,1,1], index: 1, kind: input, shape index: {}]   ;;  %s7690_s2 = inlined_call_operand.vmem [shape: s32[8,1,1], index: 2, kind: input, shape index: {}]   ;;  %s7691_s3 = inlined_call_operand.hbm [shape: bf16[2,384,128], index: 3, kind: input, shape index: {}]   ;;  %s7692_s4 = inlined_call_operand.vmem [shape: f32[2,1,128], index: 4, kind: input, shape index: {}]   ;;  %s7693_s5 = inlined_call_operand.vmem [shape: bf16[32,64], index: 5, kind: input, shape index: {}]   ;;  %s7694_s6 = inlined_call_operand.hbm [shape: bf16[384,128], index: 6, kind: input, shape index: {}]   ;;  %s7695_s7 = inlined_call_operand.hbm [shape: bf16[640,128], index: 7, kind: input, shape index: {}]   ;;  %s7696_s8 = inlined_call_operand.vmem [shape: f32[1,128], index: 8, kind: input, shape index: {}]   ;;  %s7697_s9 = inlined_call_operand.hbm [shape: bf16[640,128], index: 9, kind: input, shape index: {}]   ;;  %s7698_s10 = inlined_call_operand.vmem [shape: f32[1,128], index: 10, kind: input, shape index: {}]   ;;  %s7699_s11 = inlined_call_operand.vmem [shape: bf16[64,32], index: 11, kind: input, shape index: {}]   ;;  %s7700_s12 = inlined_call_operand.hbm [shape: bf16[384,128], index: 12, kind: input, shape index: {}]   ;;  %s7701_s13 = inlined_call_operand.vmem [shape: f32[1,128], index: 13, kind: input, shape index: {}]   ;;  %s7702_s14 = inlined_call_operand.hbm [shape: bf16[2,384,256], index: 14, kind: input, shape index: {}]   ;;  %s7703_s15 = inlined_call_operand.vmem [shape: f32[2,1,256], index: 15, kind: input, shape index: {}]   ;;  %s7704_s16 = inlined_call_operand.hbm [shape: f32[8,16,256], index: 16, kind: output, shape index: {}]  }
   0x1   :  { %7711 = sst [smem:[#allocation22_spill]] %s7688_s0 }
   0x2   :  { %7712 = sst [smem:[#allocation23_spill]] %s7691_s3 }
   0x3   :  { %7713 = sst [smem:[#allocation24_spill]] %s7694_s6 }
   0x4   :  { %7714 = sst [smem:[#allocation25_spill]] %s7695_s7 }
   0x5   :  { %7715 = sst [smem:[#allocation26_spill]] %s7697_s9 }
   0x6   :  { %7716 = sst [smem:[#allocation27_spill]] %s7700_s12 }
   0x7   :  { %7717 = sst [smem:[#allocation28_spill]] %s7701_s13 }
   0x8   :  { %7718 = sst [smem:[#allocation29_spill]] %s7702_s14 }
   0x9   :  { %7719 = sst [smem:[#allocation30_spill]] %s7703_s15 }
   0xa   :  { %7720 = sst [smem:[#allocation31_spill]] %s7704_s16 }
   0xb   :  { %21 = vsyncpa [#allocation3], 0 }
   0xc   :  { %23 = vsyncpa [#allocation3 + $0x1], 0 }
   0xd   :  { %24 = vsyncpa [#allocation6], 0 }
   0xe   :  { %25 = vsyncpa [#allocation9], 0 }
   0xf   :  { %26 = vsyncpa [#allocation12], 0 }
  0x10   :  { %27 = vsyncpa [#allocation4], 0 }
  0x11   :  { %29 = vsyncpa [#allocation4 + $0x1], 0  ;;  %s6739_s21 = smov 0   ;;  %s6741_s22 = smov 0  }
  0x12   :  { %s6743_s23 = smov 0   ;;  %s6745_s24 = smov 0  }
  0x13 LB: > { %7721 = sst [smem:[#allocation20_spill]] %s6634_s23  ;;  %s6763_s28 = sadd.s32 4294967295, %s6638_s24   ;;  %s6638_s24 = sphi %s6745_s24, %s7755_s24   ;;  %s6634_s23 = sphi %s6743_s23, %s7752_s23   ;;  %s6630_s22 = sphi %s6741_s22, %s7754_s22   ;;  %s6626_s21 = sphi %s6739_s21, %s7753_s21  }
  0x14   : > { %s7722_s3 = sld [smem:[#allocation23_spill]]  ;;  %p4634_p0 = scmp.ge.s32.totalorder %s6638_s24, 1 }
  0x15   : > { %p56_p1 = scmp.eq.s32.totalorder %s6763_s28, 0  ;;  %p417_p2 = scmp.lt.s32.totalorder %s6638_s24, 3 }
  0x16   : > { %s6640_s30 = smov [#allocation5]   ;;  %s7724_s7 = sld [smem:[#allocation25_spill]] }
  0x17   : > { %p6768_p3 = pnand %p4634_p0, %p417_p2  ;;  %s430_s0 = sshll.u32 %s6640_s30, 4  ;;  %s431_s0 = int_to_ptr.vmem [resolvable:$true] %s430_s0 }
  0x18   : > { %s7726_s12 = sld [smem:[#allocation27_spill]]  ;;  %s7708_s15 = smov 64  }
  0x19   : > { %p6239_p4 = pneg %p6768_p3  ;;  %s7709_s13 = smov 4  }
  0x1a   : > { %s428_s27 = sshll.u32 %s7722_s3, 4  ;;  %s6641_s3 = smov [#allocation8]   ;;  %s429_s27 = int_to_ptr.hbm [resolvable:$true] %s428_s27 }
  0x1b   : > { %p6780_p6 = pnand %p6239_p4, %p56_p1  ;;  %s464_s16 = sshll.u32 %s6641_s3, 4  ;;  %s465_s16 = int_to_ptr.vmem [resolvable:$true] %s464_s16 }
  0x1c   : > { %s462_s19 = sshll.u32 %s7724_s7, 4  ;;  %s7727_s6 = sld [smem:[#allocation24_spill]]  ;;  %s463_s19 = int_to_ptr.hbm [resolvable:$true] %s462_s19 }
  0x1d   : > { %6242 = dma.hbm_to_vmem [thread:$0]  (!%p6780_p6), %s429_s27, 6144, %s431_s0, [#allocation6], %s7708_s15, %s7708_s15, %s7709_s13  }
  0x1e   : > { %s499_s30 = sshll.u32 %s7726_s12, 4  ;;  %s6644_s3 = smov [#allocation11]   ;;  %s500_s30 = int_to_ptr.hbm [resolvable:$true] %s499_s30 }
  0x1f   : > { %6248 = dma.hbm_to_vmem [thread:$0]  (!%p6780_p6), %s463_s19, 5120, %s465_s16, [#allocation9], %s7708_s15, %s7708_s15, %s7709_s13  }
  0x20   : > { %s501_s26 = sshll.u32 %s6644_s3, 4  ;;  %s6645_s27 = smov [#allocation7]   ;;  %s502_s26 = int_to_ptr.vmem [resolvable:$true] %s501_s26 }
  0x21   : > { %6254 = dma.hbm_to_vmem [thread:$0]  (!%p6780_p6), %s500_s30, 3072, %s502_s26, [#allocation12], %s7708_s15, %s7708_s15, %s7709_s13  }
  0x22   : > { %s448_s25 = sshll.u32 %s7727_s6, 4  ;;  %s450_s0 = sshll.u32 %s6645_s27, 4  ;;  %s449_s25 = int_to_ptr.hbm [resolvable:$true] %s448_s25  ;;  %s451_s0 = int_to_ptr.vmem [resolvable:$true] %s450_s0 }
  0x23   : > { %s7728_s9 = sld [smem:[#allocation26_spill]]  ;;  %s6646_s18 = smov [#allocation10]  }
  0x24   : > { %6245 = dma.hbm_to_vmem [thread:$0]  (!%p6780_p6), %s449_s25, 3072, %s451_s0, [#allocation6], %s7708_s15, %s7708_s15, %s7709_s13  }
  0x25   : > { %s7729_s14 = sld [smem:[#allocation29_spill]]  ;;  %s481_s7 = sshll.u32 %s6646_s18, 4  ;;  %s482_s7 = int_to_ptr.vmem [resolvable:$true] %s481_s7 }
  0x26   : > { %s6647_s12 = smov [#allocation13]   ;;  %s6648_s3 = smov 128  }
  0x27   : > { %s518_s25 = sshll.u32 %s6647_s12, 4  ;;  %s6649_s26 = smov 8   ;;  %s519_s25 = int_to_ptr.vmem [resolvable:$true] %s518_s25 }
  0x28   : > { %s4633_s27 = sadd.s32 4294967294, %s6638_s24   ;;  %s6825_s0 = sadd.s32 1, %s6638_s24  }
  0x29   : > { %s479_s16 = sshll.u32 %s7728_s9, 4  ;;  %s39_s19 = ssub.s32 %s6638_s24, %s6825_s0  ;;  %s480_s16 = int_to_ptr.hbm [resolvable:$true] %s479_s16 }
  0x2a   : > { %6251 = dma.hbm_to_vmem [thread:$0]  (!%p6780_p6), %s480_s16, 5120, %s482_s7, [#allocation9], %s7708_s15, %s7708_s15, %s7709_s13  }
  0x2b   : > { %s516_s30 = sshll.u32 %s7729_s14, 4  ;;  %s42_s17 = sadd.s32 1, %s6634_s23  ;;  %s517_s30 = int_to_ptr.hbm [resolvable:$true] %s516_s30 }
  0x2c   : > { %6257 = dma.hbm_to_vmem [thread:$0]  (!%p6780_p6), %s517_s30, 12288, %s519_s25, [#allocation12], %s6648_s3, %s6648_s3, %s6649_s26  }
  0x2d   : > { %p40_p7 = scmp.eq.s32.totalorder %s39_s19, 0  ;;  %p49_p8 = scmp.ne.s32.totalorder %s6634_s23, %s6630_s22 }
  0x2e   : > { %p50_p9 = scmp.eq.s32.totalorder %s6638_s24, 0  ;;  %p55_p10 = scmp.ne.s32.totalorder %s6630_s22, %s6626_s21 }
  0x2f   : > { %s6836_s16 = scalar_select %p40_p7, %s6634_s23, %s42_s17  }
  0x30   : > { %p6838_p11 = por %p50_p9, %p49_p8  ;;  %p6844_p12 = por %p56_p1, %p55_p10 }
  0x31   : > { %7730 = sst [smem:[#allocation21_spill]] %s6836_s16  ;;  %p404_p13 = scmp.eq.s32.totalorder %s6763_s28, 1 }
  0x32   : > { %p410_p0 = scmp.eq.s32.totalorder %s4633_s27, 1  ;;  %p6272_p2 = scmp.lt.s32.totalorder %s6638_s24, 2 }
  0x33   : > { %s535_s30 = sand.u32 1, %s6634_s23   ;;  %p6851_p4 = por %p404_p13, %p49_p8 }
  0x34   : > { %p6855_p6 = por %p410_p0, %p55_p10  ;;  %s4642_s25 = sshll.u32 %s535_s30, 5 }
  0x35   : > { %s5910_s3 = sshll.u32 %s6638_s24, 5  ;;  %s7735_s17 = sld [smem:[#allocation22_spill]] }
  0x36   : > { %s539_s13 = scalar_lea.vmem [#allocation2], %s4642_s25  ;;  %p6865_p7 = pnand %p6272_p2, %p6838_p11 }
  0x37   : > { %s548_s6 = sshll.u32 %s539_s13, 4  ;;  %s536_s14 = scalar_lea.sflag [#allocation3], %s535_s30  ;;  %s549_s6 = int_to_ptr.vmem [resolvable:$true] %s548_s6 }
  0x38   : > { %p6534_p9 = pneg %p6865_p7 }
  0x3b   : > { %s545_s15 = scalar_lea.hbm %s7735_s17, %s5910_s3 }
  0x3c   : > { %s546_s9 = sshll.u32 %s545_s15, 4  ;;  %s6537_s15 = scalar_lea.hbm %s7735_s17, 64  ;;  %s547_s9 = int_to_ptr.hbm [resolvable:$true] %s546_s9 }
  0x3d   : > { %s6530_s16 = sshra.s32 %s547_s9, 4  ;;  %s6531_s16 = int_to_ptr.hbm [resolvable:$true] %s6530_s16 }
  0x3e   : > { %s6532_s23 = scalar_lea.hbm %s6531_s16, 32  ;;  %p6538_p11 = scmp.lt.s32.totalorder %s6531_s16, %s7735_s17 }
  0x3f   : > { %p6533_p8 = scmp.ne.s32.totalorder %s6531_s16, %s6532_s23  ;;  %p6539_p0 = scmp.lt.s32.totalorder %s6537_s15, %s6532_s23 }
  0x41   : > { %p6535_p10 = pnand %p6534_p9, %p6533_p8  ;;  %p6540_p2 = por %p6539_p0, %p6538_p11 }
  0x43   : > { %p6536_p13 = pneg %p6535_p10 }
  0x45   : > { %p6541_p5 = pnand %p6540_p2, %p6536_p13 }
  0x47   : > { %6544 = shalt.err (!%p6541_p5)
}
  0x48   : > { %s7737_s30 = smov 4   ;;  %s7738_s26 = smov 64  }
  0x49   : > { %6261 = dma.hbm_to_vmem [thread:$0]  (!%p6865_p7), %s547_s9, 512, %s549_s6, %s536_s14, %s7738_s26, %s7738_s26, %s7737_s30  }
  0x4a   : > { %576 = sbr.rel (%p6768_p3) target bundleno = 1727 (0x6bf), region = 84  ;;  %s6885_s19 = sand.u32 (!%p6768_p3), 1, %s6630_s22  }
  0x4b   : > { %s4647_s16 = sshll.u32 (!%p6768_p3), %s6885_s19, 5  ;;  %s579_s23 = scalar_lea.sflag (!%p6768_p3), [#allocation3], %s6885_s19 }
  0x4c   : > { %s6889_s25 = scalar_lea.vmem (!%p6768_p3), [#allocation2], %s4647_s16 }
  0x4f   : > { %6605 = dma.done.wait (%p6844_p12), %s579_s23, 512  }
  0x50   : > { %6607 = vsyncadd (%p6844_p12), %s579_s23, 4294966784 }
  0x51   : > { %6609 = dma.done.wait (%p56_p1), [#allocation6], 9216  }
  0x52   : > { %6611 = vsyncadd (%p56_p1), [#allocation6], 4294958080 }
  0x53   : > { %6613 = dma.done.wait (%p56_p1), [#allocation9], 10240  }
  0x54   : > { %6615 = vsyncadd (%p56_p1), [#allocation9], 4294957056 }
  0x55   : > { %6617 = dma.done.wait (%p56_p1), [#allocation12], 15360  }
  0x56   : > { %6619 = vsyncadd (%p56_p1), [#allocation12], 4294951936  ;;  %v5922_v0 = vld [vmem:[#allocation5 + $0x38] sm:$0xff]  ;;  %v5921_v3 = vld [vmem:[#allocation5 + $0x30] sm:$0xff]  ;;  %vm747_vm0 = vcmask 1040384   ;;  %vm819_vm4 = vcmask 1046528  }
  0x57   : > { %v5930_v1 = vld [vmem:[#allocation5 + $0x78] sm:$0xff]  ;;  %1036 = vmatpush.bf16.msra.mxu0 %v5922_v0  ;;  %v5929_v4 = vld [vmem:[#allocation5 + $0x70] sm:$0xff]  ;;  %v5920_v6 = vld [vmem:[#allocation5 + $0x28] sm:$0xff]  ;;  %vm748_vm1 = vsmask.f32 256  ;;  %s4655_s6 = sshll.u32 %s6763_s28, 2 }
  0x58   : > { %v5938_v2 = vld [vmem:[#allocation5 + $0xb8] sm:$0xff]  ;;  %1065 = vmatpush.bf16.msra.mxu1 %v5930_v1  ;;  %v5937_v5 = vld [vmem:[#allocation5 + $0xb0] sm:$0xff]  ;;  %v5928_v7 = vld [vmem:[#allocation5 + $0x68] sm:$0xff]  ;;  %vm758_vm3 = vsmask.f32 7424  ;;  %p672_p1 = scmp.lt.s32.totalorder %s4655_s6, 7 }
  0x59   : > { %1094 = vmatpush.bf16.msra.mxu2 %v5938_v2  ;;  %v5936_v8 = vld [vmem:[#allocation5 + $0xa8] sm:$0xff]  ;;  %v5911_v9 = vld [vmem:[%s6889_s25] sm:$0xff]  ;;  %v5946_v10 = vld [vmem:[#allocation5 + $0xf8] sm:$0xff]  ;;  %vm1470_vm15 = vcmask 523264   ;;  %s4654_s27 = sshll.u32 %s6885_s19, 7  ;;  %s6194_s3 = sshll.u32 %s6763_s28, 7 }
  0x5a   : > { %v5919_v11 = vld [vmem:[#allocation5 + $0x20] sm:$0xff]  ;;  %v712_v13 = vshrl.u32 %v5911_v9, 16  ;;  %v715_v14 = vshll.u32 %v5911_v9, 16  ;;  %1321 = vmatpush.bf16.msra.mxu3 %v5946_v10  ;;  %vm6909_vm2 = vmand %vm747_vm0, %vm748_vm1  ;;  %v5918_v18 = vld [vmem:[#allocation5 + $0x18] sm:$0xff]  ;;  %s7757_s6 = smov (!%p672_p1, %s4655_s6), 7  ;;  %s7580_s15 = scalar_lea.vmem [#allocation14], %s4654_s27 }
  0x5b   : > { %1037 = vmatpush.bf16.msra.mxu0 %v5921_v3  ;;  %v5927_v12 = vld [vmem:[#allocation5 + $0x60] sm:$0xff]  ;;  %v5926_v19 = vld [vmem:[#allocation5 + $0x58] sm:$0xff]  ;;  %v5912_v22 = vld [vmem:[%s6889_s25 + $0x8] sm:$0xff]  ;;  %s6970_s29 = scalar_lea.vmem %s7689_s1, %s7757_s6  ;;  %s7001_s13 = scalar_lea.vmem %s7690_s2, %s7757_s6 }
  0x5c   : > { %1066 = vmatpush.bf16.msra.mxu1 %v5929_v4  ;;  %v5935_v15 = vld [vmem:[#allocation5 + $0xa0] sm:$0xff]  ;;  %v714_v16 = vrot.slane %v712_v13, 7  ;;  %v5934_v21 = vld [vmem:[#allocation5 + $0x98] sm:$0xff]  ;;  %v5917_v24 = vld [vmem:[#allocation5 + $0x10] sm:$0xff]  ;;  %v719_v30 = vshrl.u32 %v5912_v22, 16  ;;  %v722_v39 = vshll.u32 %v5912_v22, 16 }
  0x5d   : > { %1095 = vmatpush.bf16.msra.mxu2 %v5937_v5  ;;  %v5925_v25 = vld [vmem:[#allocation5 + $0x50] sm:$0xff]  ;;  %v5944_v31 = vld [vmem:[#allocation5 + $0xe8] sm:$0xff]  ;;  %v5943_v40 = vld [vmem:[#allocation5 + $0xe0] sm:$0xff]  ;;  %s7747_s6 = sld [smem:[#allocation28_spill]]  ;;  %s4482_s23 = sshll.u32 %s7580_s15, 4  ;;  %s4483_s23 = int_to_ptr.vmem [resolvable:$true] %s4482_s23 }
  0x5e   : > { %v717_v20 = vor.u32 %v715_v14, %v714_v16  ;;  %v5945_v27 = vld [vmem:[#allocation5 + $0xf0] sm:$0xff]  ;;  %v754_v29 = vsel %vm6909_vm2, %v714_v16, 0  ;;  %v5916_v32 = vld [vmem:[#allocation5 + $0x8] sm:$0xff]  ;;  %v721_v38 = vrot.slane %v719_v30, 7  ;;  %v5915_v41 = vld [vmem:[#allocation5] sm:$0xff]  ;;  %s7749_s26 = sld [smem:[#allocation31_spill]] }
  0x5f   : > { %1038 = vmatpush.bf16.msra.mxu0 %v5920_v6  ;;  %v5933_v28 = vld [vmem:[#allocation5 + $0x90] sm:$0xff]  ;;  %1322 = vmatpush.bf16.msra.mxu3 %v5945_v27  ;;  %v5924_v33 = vld [vmem:[#allocation5 + $0x48] sm:$0xff]  ;;  %v767_v36 = vshll.u32 %v754_v29, 16  ;;  %v5923_v42 = vld [vmem:[#allocation5 + $0x40] sm:$0xff]  ;;  %v821_v47 = vrot.slane %v754_v29, 1  ;;  %s4469_s28 = scalar_lea.sflag [#allocation4], %s6885_s19 }
  0x60   : > { %1067 = vmatpush.bf16.msra.mxu1 %v5928_v7  ;;  %v6916_v23 = vsel %vm6909_vm2, 0, %v717_v20  ;;  %v5932_v37 = vld [vmem:[#allocation5 + $0x88] sm:$0xff]  ;;  %v5931_v45 = vld [vmem:[#allocation5 + $0x80] sm:$0xff]  ;;  %v724_v48 = vor.u32 %v722_v39, %v721_v38  ;;  %v5962_v49 = vld [vmem:[#allocation5 + $0x178] sm:$0xff]  ;;  %v755_v59 = vsel %vm6909_vm2, %v721_v38, 0 }
  0x61   : > { %1096 = vmatpush.bf16.msra.mxu2 %v5936_v8  ;;  %v762_v26 = vshll.u32 %v6916_v23, 16  ;;  %v760_v34 = vshrl.u32 %v6916_v23, 16  ;;  %v769_v44 = vrot.slane %v767_v36, 1  ;;  %v820_v46 = vrot.slane %v6916_v23, 1  ;;  %v5942_v50 = vld [vmem:[#allocation5 + $0xd8] sm:$0xff]  ;;  %v5913_v54 = vld [vmem:[%s6889_s25 + $0x10] sm:$0xff]  ;;  %vm7071_vm1 = vmneg %vm747_vm0 }
  0x62   : > { %v6931_v53 = vsel %vm6909_vm2, 0, %v724_v48  ;;  %v5954_v55 = vld [vmem:[#allocation5 + $0x138] sm:$0xff]  ;;  %v5961_v57 = vld [vmem:[#allocation5 + $0x170] sm:$0xff]  ;;  %v726_v60 = vshrl.u32 %v5913_v54, 16  ;;  %v5940_v62 = vld [vmem:[#allocation5 + $0xc8] sm:$0xff]  ;;  %v779_v2 = vshll.u32 %v755_v59, 16 }
  0x63   : > { %1039 = vmatpush.bf16.msra.mxu0 %v5919_v11  ;;  %v764_v35 = vrot.slane %v762_v26, 1  ;;  %1323 = vmatpush.bf16.msra.mxu3 %v5944_v31  ;;  %v6927_v52 = vsel %vm819_vm4, %v820_v46, %v821_v47  ;;  %v774_v56 = vshll.u32 %v6931_v53, 16  ;;  %v5941_v58 = vld [vmem:[#allocation5 + $0xd0] sm:$0xff]  ;;  %v5960_v63 = vld [vmem:[#allocation5 + $0x168] sm:$0xff]  ;;  %v772_v0 = vshrl.u32 %v6931_v53, 16  ;;  %v5939_v6 = vld [vmem:[#allocation5 + $0xc0] sm:$0xff] }
  0x64   : > { %1068 = vmatpush.bf16.msra.mxu1 %v5927_v12  ;;  %v5953_v61 = vld [vmem:[#allocation5 + $0x130] sm:$0xff]  ;;  %v728_v3 = vrot.slane %v726_v60, 7  ;;  %v729_v4 = vshll.u32 %v5913_v54, 16  ;;  %v5952_v5 = vld [vmem:[#allocation5 + $0x128] sm:$0xff]  ;;  %v5959_v7 = vld [vmem:[#allocation5 + $0x160] sm:$0xff]  ;;  %v781_v9 = vrot.slane %v779_v2, 1  ;;  %s4481_s16 = scalar_lea.hbm %s7749_s26, %s6194_s3 }
  0x65   : > { %1097 = vmatpush.bf16.msra.mxu2 %v5935_v15  ;;  %v765_v43 = vor.u32 %v764_v35, %v760_v34  ;;  %v776_v1 = vrot.slane %v774_v56, 1  ;;  %v823_v10 = vrot.slane %v6931_v53, 1  ;;  %v824_v11 = vrot.slane %v755_v59, 1  ;;  %v5951_v13 = vld [vmem:[#allocation5 + $0x120] sm:$0xff]  ;;  %v5958_v20 = vld [vmem:[#allocation5 + $0x158] sm:$0xff]  ;;  %v5948_v31 = vld [vmem:[#allocation5 + $0x108] sm:$0xff] }
  0x66   : > { %v731_v12 = vor.u32 %v729_v4, %v728_v3  ;;  %v756_v22 = vsel %vm6909_vm2, %v728_v3, 0  ;;  %v5947_v38 = vld [vmem:[#allocation5 + $0x100] sm:$0xff]  ;;  %v6650_v46 = vmov 0   ;;  %s6580_s20 = scalar_lea.hbm %s7749_s26, 256 }
  0x67   : > { %1040 = vmatpush.bf16.msra.mxu0 %v5918_v18  ;;  %1324 = vmatpush.bf16.msra.mxu3 %v5943_v40  ;;  %v6924_v51 = vsel %vm758_vm3, %v765_v43, %v769_v44  ;;  %v777_v8 = vor.u32 %v776_v1, %v772_v0  ;;  %v6946_v15 = vsel %vm819_vm4, %v823_v10, %v824_v11  ;;  %v5914_v18 = vld [vmem:[%s6889_s25 + $0x18] sm:$0xff]  ;;  %v827_v36 = vrot.slane %v756_v22, 1  ;;  %v5955_v39 = vld [vmem:[#allocation5 + $0x140] sm:$0xff]  ;;  %s4484_s25 = sshll.u32 %s4481_s16, 4  ;;  %s4485_s25 = int_to_ptr.hbm [resolvable:$true] %s4484_s25 }
  0x68   : > { %1069 = vmatpush.bf16.msra.mxu1 %v5926_v19  ;;  %v6950_v16 = vsel %vm6909_vm2, 0, %v731_v12  ;;  %v5950_v19 = vld [vmem:[#allocation5 + $0x118] sm:$0xff]  ;;  %v736_v30 = vshll.u32 %v5914_v18, 16  ;;  %v837_v43 = vld [vmem:[%s6970_s29 + $0x1] sm:$0x1]  ;;  %6327 = vset.pattern.permute.xlu1 %v6650_v46 }
  0x69   : > { %1098 = vmatpush.bf16.msra.mxu2 %v5934_v21  ;;  %v6943_v14 = vsel %vm758_vm3, %v777_v8, %v781_v9  ;;  %v786_v21 = vshll.u32 %v6950_v16, 16  ;;  %v784_v26 = vshrl.u32 %v6950_v16, 16  ;;  %v826_v35 = vrot.slane %v6950_v16, 1  ;;  %v836_v44 = vld [vmem:[%s6970_s29] sm:$0x1]  ;;  %6326 = vset.pattern.permute.xlu0 %v6650_v46 }
  0x6a   : > { %vm1409_vm5 = vcmp.eq.s32.totalorder %v837_v43, 1  ;;  %6328 = vset.pattern.permute.xlu2 %v6650_v46  ;;  %vm1408_vm6 = vcmp.eq.s32.totalorder %v836_v44, 1  ;;  %v7010_v8 = vld [vmem:[%s7692_s4] ss:$0 sm:$0xff] }
  0x6b   : > { %1041 = vmatpush.bf16.msra.mxu0 %v5917_v24  ;;  %1325 = vmatpush.bf16.msra.mxu3 %v5942_v50  ;;  %v733_v24 = vshrl.u32 %v5914_v18, 16  ;;  %v788_v27 = vrot.slane %v786_v21, 1  ;;  %v1413_v48 = vsel %vm1409_vm5, 1, %v6650_v46  ;;  %vm1830_vm5 = vcmask 1041408  }
  0x6c   : > { %1070 = vmatpush.bf16.msra.mxu1 %v5925_v25  ;;  %v5949_v25 = vld [vmem:[#allocation5 + $0x110] sm:$0xff] }
  0x6d   : > { %1099 = vmatpush.bf16.msra.mxu2 %v5933_v28  ;;  %v791_v28 = vshll.u32 %v756_v22, 16  ;;  %v735_v29 = vrot.slane %v733_v24, 7 }
  0x6f   : > { %1042 = vmatpush.bf16.msra.mxu0 %v5916_v32  ;;  %1326 = vmatpush.bf16.msra.mxu3 %v5941_v58  ;;  %v5956_v32 = vld [vmem:[#allocation5 + $0x148] sm:$0xff]  ;;  %v793_v34 = vrot.slane %v791_v28, 1  ;;  %v757_v47 = vsel %vm6909_vm2, %v735_v29, 0 }
  0x70   : > { %1071 = vmatpush.bf16.msra.mxu1 %v5924_v33  ;;  %v789_v33 = vor.u32 %v788_v27, %v784_v26  ;;  %v803_v54 = vshll.u32 %v757_v47, 16  ;;  %v830_v59 = vrot.slane %v757_v47, 1 }
  0x71   : > { %1100 = vmatpush.bf16.msra.mxu2 %v5932_v37  ;;  %v738_v37 = vor.u32 %v736_v30, %v735_v29 }
  0x72   : > { %v794_v40 = vsel %vm758_vm3, %v789_v33, %v793_v34 }
  0x73   : > { %1043 = vmatpush.bf16.msra.mxu0 %v5915_v41  ;;  %1327 = vmatpush.bf16.msra.mxu3 %v5940_v62  ;;  %v828_v41 = vsel %vm819_vm4, %v826_v35, %v827_v36  ;;  %v839_v62 = vld [vmem:[%s6970_s29 + $0x3] sm:$0x1] }
  0x74   : > { %1072 = vmatpush.bf16.msra.mxu1 %v5923_v42  ;;  %v753_v42 = vsel %vm6909_vm2, 0, %v738_v37  ;;  %vm1411_vm7 = vcmp.eq.s32.totalorder %v839_v62, 1  ;;  %vm4974_vm2 = vmpackc.low %vm7071_vm1, %vm7071_vm1 }
  0x75   : > { %1101 = vmatpush.bf16.msra.mxu2 %v5931_v45  ;;  %v798_v45 = vshll.u32 %v753_v42, 16  ;;  %v796_v50 = vshrl.u32 %v753_v42, 16  ;;  %v829_v58 = vrot.slane %v753_v42, 1  ;;  %v1415_v0 = vsel %vm1411_vm7, 1, %v6650_v46 }
  0x76   : > { %1044 = vmatmul.bf16.vlgmr.msra.gmra.mxu0 %v6916_v23  ;;  %v1419_v1 = vperm.slane %v1415_v0, 0  ;;  %vm1879_vm7 = vcmask 1044480  }
  0x77   : > { %1073 = vmatmul.bf16.vlgmr.msra.gmra.mxu1 %v6924_v51  ;;  %1350 = vmatpush.bf16.msrb.mxu0 %v5954_v55 }
  0x78   : > { %1379 = vmatpush.bf16.msrb.mxu1 %v5962_v49  ;;  %1102 = vmatmul.bf16.vlgmr.msra.gmra.mxu2 %v6927_v52  ;;  %v1417_v49 = vperm.slane %v1413_v48, 0 }
  0x79   : > { %6195 = vmatpush.bf16.msrb.mxu2 %v5954_v55  ;;  %1328 = vmatpush.bf16.msra.mxu3 %v5939_v6  ;;  %v1412_v55 = vsel %vm1408_vm6, 1, %v6650_v46  ;;  %vm5142_vm6 = vmneg %vm1830_vm5 }
  0x7a   : > { %1424 = vperm.xlu1 %6327, %v1417_v49   ;;  %v1416_v17 = vperm.slane %v1412_v55, 0  ;;  %1430 = vperm.xlu0 %6326, %v1419_v1  }
  0x7b   : > { %1351 = vmatpush.bf16.msrb.mxu0 %v5953_v61 }
  0x7c   : > { %1380 = vmatpush.bf16.msrb.mxu1 %v5961_v57  ;;  %1329 = vmatmul.bf16.vlgmr.msra.gmra.mxu3 %v6916_v23  ;;  %v5957_v23 = vld [vmem:[#allocation5 + $0x150] sm:$0xff]  ;;  %v805_v57 = vrot.slane %v803_v54, 1 }
  0x7d   : > { %6196 = vmatpush.bf16.msrb.mxu2 %v5953_v61  ;;  %v831_v61 = vsel %vm819_vm4, %v829_v58, %v830_v59 }
  0x7f   : > { %1352 = vmatpush.bf16.msrb.mxu0 %v5952_v5 }
  0x80   : > { %1381 = vmatpush.bf16.msrb.mxu1 %v5960_v63  ;;  %v838_v63 = vld [vmem:[%s6970_s29 + $0x2] sm:$0x1]  ;;  %s7748_s29 = sld [smem:[#allocation30_spill]] }
  0x81   : > { %6197 = vmatpush.bf16.msrb.mxu2 %v5952_v5  ;;  %vm1410_vm8 = vcmp.eq.s32.totalorder %v838_v63, 1  ;;  %v3469_v5 = vld [vmem:[%s7001_s13 + $0x3] sm:$0x1] }
  0x82   : > { %1421 = vperm.xlu1 %6327, %v1416_v17   ;;  %v1414_v2 = vsel %vm1410_vm8, 1, %v6650_v46  ;;  %vm4411_vm10 = vcmp.eq.s32.totalorder %v3469_v5, 1  ;;  %vm7116_vm8 = vmpackc.low %vm5142_vm6, %vm5142_vm6 }
  0x83   : > { %1353 = vmatpush.bf16.msrb.mxu0 %v5951_v13  ;;  %v1418_v3 = vperm.slane %v1414_v2, 0  ;;  %v4415_v6 = vsel %vm4411_vm10, 1, %v6650_v46  ;;  %vm2901_vm10 = vcmask 261120  }
  0x84   : > { %1382 = vmatpush.bf16.msrb.mxu1 %v5959_v7  ;;  %v4419_v7 = vperm.slane %v4415_v6, 0 }
  0x85   : > { %6198 = vmatpush.bf16.msrb.mxu2 %v5951_v13  ;;  %1427 = vperm.xlu0 %6326, %v1418_v3  }
  0x86   : > { %1049 = vmatmul.bf16.gmra.mxu0 %v6931_v53 }
  0x87   : > { %1078 = vmatmul.bf16.gmra.mxu1 %v6943_v14  ;;  %1354 = vmatpush.bf16.msrb.mxu0 %v5950_v19 }
  0x88   : > { %1107 = vmatmul.bf16.gmra.mxu2 %v6946_v15  ;;  %1383 = vmatpush.bf16.msrb.mxu1 %v5958_v20 }
  0x89   : > { %6199 = vmatpush.bf16.msrb.mxu2 %v5950_v19 }
  0x8a   : > { %4430 = vperm.xlu1 %6327, %v4419_v7  }
  0x8b   : > { %1355 = vmatpush.bf16.msrb.mxu0 %v5949_v25 }
  0x8c   : > { %1384 = vmatpush.bf16.msrb.mxu1 %v5957_v23  ;;  %1334 = vmatmul.bf16.gmra.mxu3 %v6931_v53  ;;  %v800_v53 = vrot.slane %v798_v45, 1 }
  0x8d   : > { %6200 = vmatpush.bf16.msrb.mxu2 %v5949_v25 }
  0x8e   : > { %v801_v56 = vor.u32 %v800_v53, %v796_v50 }
  0x8f   : > { %1356 = vmatpush.bf16.msrb.mxu0 %v5948_v31 }
  0x90   : > { %1385 = vmatpush.bf16.msrb.mxu1 %v5956_v32  ;;  %v806_v60 = vsel %vm758_vm3, %v801_v56, %v805_v57  ;;  %vm1542_vm3 = vcmask 1045504  }
  0x91   : > { %6201 = vmatpush.bf16.msrb.mxu2 %v5948_v31 }
  0x93   : > { %1357 = vmatpush.bf16.msrb.mxu0 %v5947_v38 }
  0x94   : > { %1386 = vmatpush.bf16.msrb.mxu1 %v5955_v39 }
  0x95   : > { %6202 = vmatpush.bf16.msrb.mxu2 %v5947_v38 }
  0x96   : > { %1054 = vmatmul.bf16.gmra.mxu0 %v6950_v16 }
  0x97   : > { %1083 = vmatmul.bf16.gmra.mxu1 %v794_v40 }
  0x98   : > { %1112 = vmatmul.bf16.gmra.mxu2 %v828_v41 }
  0x9c   : > { %1339 = vmatmul.bf16.gmra.mxu3 %v6950_v16 }
  0xa6   : > { %1059 = vmatmul.bf16.gmra.mxu0 %v753_v42 }
  0xa7   : > { %1088 = vmatmul.bf16.gmra.mxu1 %v806_v60 }
  0xa8   : > { %1117 = vmatmul.bf16.gmra.mxu2 %v831_v61 }
  0xac   : > { %1344 = vmatmul.bf16.gmra.mxu3 %v753_v42 }
  0xb6   : > { %1358 = vmatmul.bf16.vlgmr.msrb.gmra.mxu0 %v6924_v51  ;;  %v3468_v51 = vld [vmem:[%s7001_s13 + $0x2] sm:$0x1] }
  0xb7   : > { %1387 = vmatmul.bf16.vlgmr.msrb.gmra.mxu1 %v6927_v52  ;;  %vm4410_vm9 = vcmp.eq.s32.totalorder %v3468_v51, 1 }
  0xb8   : > { %1373 = vmatmul.bf16.vlgmr.msrb.gmra.mxu2 %v806_v60  ;;  %v4414_v52 = vsel %vm4410_vm9, 1, %v6650_v46  ;;  %vm1896_vm9 = vcmask 1043456  }
  0xb9   : > { %v4418_v4 = vperm.slane %v4414_v52, 0 }
  0xbb   : > { %4427 = vperm.xlu0 %6326, %v4418_v4  }
  0xc6   : > { %1363 = vmatmul.bf16.gmra.mxu0 %v6943_v14 }
  0xc7   : > { %1392 = vmatmul.bf16.gmra.mxu1 %v6946_v15 }
  0xd6   : > { %1368 = vmatmul.bf16.gmra.mxu0 %v794_v40 }
  0xd7   : > { %1397 = vmatmul.bf16.gmra.mxu1 %v828_v41  ;;  %v6330_v41 = vld [vmem:[%s7692_s4 + $0x1] ss:$0 sm:$0xff] }
  0xe7   : > { %1402 = vmatmul.bf16.gmra.mxu1 %v831_v61 }
  0xec   : > { %v7027_v37 = vpop.permute.xlu1 %1424  ;;  %v1431_v4 = vpop.permute.xlu0 %1430 }
  0xed   : > { %vm1435_vm12 = vcmp.eq.s32.totalorder %v1431_v4, 1  ;;  %vm1433_vm14 = vcmp.eq.s32.totalorder %v7027_v37, 1 }
  0xf3   : > { %v1045_v9 = vpop.f32.mrf.mxu0 }
  0xf4   : > { %v1074_v10 = vpop.f32.mrf.mxu1  ;;  %v1046_v11 = vadd.f32 %v7010_v8, %v1045_v9  ;;  %v7034_v44 = vpop.permute.xlu1 %1421 }
  0xf5   : > { %vm1432_vm11 = vcmp.eq.s32.totalorder %v7034_v44, 1  ;;  %v5979_v44 = vld [vmem:[#allocation7 + $0x70] sm:$0xff] }
  0xf6   : > { %v1075_v12 = vadd.f32 %v1074_v10, %v1046_v11 }
  0xfb   : > { %v1103_v13 = vpop.f32.mrf.mxu2  ;;  %v7013_v15 = vpop.f32.mrf.mxu0 }
  0xfc   : > { %v1104_v14 = vadd.f32 %v1103_v13, %v1075_v12  ;;  %v7015_v16 = vpop.f32.mrf.mxu1 }
  0xff   : > { %v1330_v33 = vpop.f32.mrf.mxu3 }
 0x100   : > { %v1331_v43 = vadd.f32 %v6330_v41, %v1330_v33 }
 0x103   : > { %v7017_v18 = vpop.f32.mrf.mxu2  ;;  %v1050_v19 = vpop.f32.mrf.mxu0 }
 0x104   : > { %v1079_v20 = vpop.f32.mrf.mxu1  ;;  %v1051_v21 = vadd.f32 %v7010_v8, %v1050_v19 }
 0x106   : > { %v1080_v22 = vadd.f32 %v1079_v20, %v1051_v21 }
 0x107   : > { %v1332_v36 = vpop.f32.mrf.mxu3 }
 0x10b   : > { %v1108_v24 = vpop.f32.mrf.mxu2  ;;  %v1052_v23 = vpop.f32.mrf.mxu0 }
 0x10c   : > { %v7020_v25 = vadd.f32 %v1108_v24, %v1080_v22  ;;  %v7022_v26 = vpop.f32.mrf.mxu1  ;;  %v1053_v22 = vadd.f32 %v7010_v8, %v1052_v23 }
 0x10f   : > { %v1335_v42 = vpop.f32.mrf.mxu3 }
 0x113   : > { %v1055_v27 = vpop.f32.mrf.mxu0  ;;  %v7029_v40 = vpop.f32.mrf.mxu2 }
 0x114   : > { %v1084_v28 = vpop.f32.mrf.mxu1  ;;  %v1056_v29 = vadd.f32 %v7010_v8, %v1055_v27 }
 0x116   : > { %v7025_v30 = vadd.f32 %v1084_v28, %v1056_v29 }
 0x117   : > { %v1337_v54 = vpop.f32.mrf.mxu3 }
 0x118   : > { %v1338_v28 = vadd.f32 %v6330_v41, %v1337_v54 }
 0x11b   : > { %v1057_v31 = vpop.f32.mrf.mxu0  ;;  %v1113_v50 = vpop.f32.mrf.mxu2 }
 0x11c   : > { %v1086_v32 = vpop.f32.mrf.mxu1  ;;  %v1058_v13 = vadd.f32 %v7010_v8, %v1057_v31 }
 0x11f   : > { %v1340_v58 = vpop.f32.mrf.mxu3 }
 0x120   : > { %v1341_v19 = vadd.f32 %v6330_v41, %v1340_v58  ;;  %v1333_v58 = vadd.f32 %v6330_v41, %v1332_v36 }
 0x123   : > { %v1060_v34 = vpop.f32.mrf.mxu0  ;;  %v1115_v57 = vpop.f32.mrf.mxu2 }
 0x124   : > { %v1089_v35 = vpop.f32.mrf.mxu1  ;;  %v1061_v10 = vadd.f32 %v7010_v8, %v1060_v34 }
 0x126   : > { %v1090_v27 = vadd.f32 %v1089_v35, %v1061_v10 }
 0x127   : > { %v1342_v62 = vpop.f32.mrf.mxu3 }
 0x128   : > { %v1343_v11 = vadd.f32 %v6330_v41, %v1342_v62 }
 0x12b   : > { %v1062_v38 = vpop.f32.mrf.mxu0  ;;  %v1118_v60 = vpop.f32.mrf.mxu2 }
 0x12c   : > { %v1091_v39 = vpop.f32.mrf.mxu1  ;;  %v1119_v34 = vadd.f32 %v1118_v60, %v1090_v27  ;;  %v5965_v27 = vld [vmem:[#allocation7] sm:$0xff] }
 0x12f   : > { %v1345_v2 = vpop.f32.mrf.mxu3 }
 0x130   : > { %v1346_v5 = vadd.f32 %v6330_v41, %v1345_v2 }
 0x133   : > { %v1359_v45 = vpop.f32.mrf.mxu0  ;;  %v1120_v1 = vpop.f32.mrf.mxu2 }
 0x134   : > { %v1388_v47 = vpop.f32.mrf.mxu1  ;;  %v1360_v48 = vadd.f32 %v1359_v45, %v1331_v43  ;;  %v1087_v43 = vadd.f32 %v1086_v32, %v1058_v13  ;;  %v1048_v32 = vadd.f32 %v7010_v8, %v7013_v15  ;;  %v5968_v13 = vld [vmem:[#allocation7 + $0x18] sm:$0xff] }
 0x136   : > { %v1389_v49 = vadd.f32 %v1388_v47, %v1360_v48  ;;  %v1336_v47 = vadd.f32 %v6330_v41, %v1335_v42  ;;  %v1114_v42 = vadd.f32 %v1113_v50, %v7025_v30  ;;  %v1077_v15 = vadd.f32 %v7015_v16, %v1048_v32  ;;  %v5972_v50 = vld [vmem:[#allocation7 + $0x38] sm:$0xff]  ;;  %v5970_v16 = vld [vmem:[#allocation7 + $0x28] sm:$0xff] }
 0x137   : > { %v1347_v6 = vpop.f32.mrf.mxu3  ;;  %1757 = vmatpush.bf16.msrb.mxu3 %v5972_v50 }
 0x138   : > { %v7039_v53 = vsel %vm1432_vm11, %v1389_v49, %v1104_v14  ;;  %v1063_v14 = vadd.f32 %v7010_v8, %v1062_v38  ;;  %v1348_v21 = vadd.f32 %v6330_v41, %v1347_v6  ;;  %v1428_v49 = vpop.permute.xlu0 %1427  ;;  %v1116_v38 = vadd.f32 %v1115_v57, %v1087_v43  ;;  %v5987_v43 = vld [vmem:[#allocation7 + $0xb0] sm:$0xff] }
 0x139   : > { %vm1434_vm13 = vcmp.eq.s32.totalorder %v1428_v49, 1  ;;  %v1444_v10 = vmax.f32 %v7039_v53, 0.0  ;;  %v5977_v53 = vld [vmem:[#allocation7 + $0x60] sm:$0xff]  ;;  %v5983_v49 = vld [vmem:[#allocation7 + $0x90] sm:$0xff] }
 0x13a   : > { %v1092_v45 = vadd.f32 %v1091_v39, %v1063_v14  ;;  %v1082_v39 = vadd.f32 %v7022_v26, %v1053_v22  ;;  %v5978_v14 = vld [vmem:[#allocation7 + $0x68] sm:$0xff] }
 0x13b   : > { %v1361_v55 = vpop.f32.mrf.mxu0  ;;  %v1374_v52 = vpop.f32.mrf.mxu2  ;;  %v5966_v22 = vld [vmem:[#allocation7 + $0x8] sm:$0xff] }
 0x13c   : > { %v7041_v56 = vpop.f32.mrf.mxu1  ;;  %v1375_v12 = vadd.f32 %v1374_v52, %v1346_v5  ;;  %v1121_v2 = vadd.f32 %v1120_v1, %v1092_v45  ;;  %v1362_v60 = vadd.f32 %v1361_v55, %v1333_v58  ;;  %v5986_v45 = vld [vmem:[#allocation7 + $0xa8] sm:$0xff] }
 0x13e   : > { %v1391_v26 = vadd.f32 %v7041_v56, %v1362_v60 }
 0x143   : > { %v1364_v59 = vpop.f32.mrf.mxu0  ;;  %v1376_v24 = vpop.f32.mrf.mxu2 }
 0x144   : > { %v1393_v17 = vpop.f32.mrf.mxu1  ;;  %v1377_v62 = vadd.f32 %v1376_v24, %v1348_v21  ;;  %v1365_v5 = vadd.f32 %v1364_v59, %v1336_v47  ;;  %v1111_v59 = vadd.f32 %v7029_v40, %v1082_v39  ;;  %v5971_v40 = vld [vmem:[#allocation7 + $0x30] sm:$0xff]  ;;  %v5976_v21 = vld [vmem:[#allocation7 + $0x58] sm:$0xff]  ;;  %v5985_v47 = vld [vmem:[#allocation7 + $0xa0] sm:$0xff] }
 0x145   : > { %1758 = vmatpush.bf16.msrb.mxu3 %v5971_v40  ;;  %v5975_v24 = vld [vmem:[#allocation7 + $0x50] sm:$0xff] }
 0x149   : > { %1759 = vmatpush.bf16.msrb.mxu3 %v5970_v16 }
 0x14b   : > { %v1366_v63 = vpop.f32.mrf.mxu0 }
 0x14c   : > { %v1395_v61 = vpop.f32.mrf.mxu1  ;;  %v1367_v48 = vadd.f32 %v1366_v63, %v1338_v28  ;;  %v5974_v28 = vld [vmem:[#allocation7 + $0x48] sm:$0xff] }
 0x14e   : > { %v1396_v63 = vadd.f32 %v1395_v61, %v1367_v48  ;;  %v1106_v61 = vadd.f32 %v7017_v18, %v1077_v15  ;;  %v5969_v18 = vld [vmem:[#allocation7 + $0x20] sm:$0xff] }
 0x14f   : > { %1760 = vmatpush.bf16.msrb.mxu3 %v5969_v18 }
 0x150   : > { %v1439_v30 = vsel %vm1433_vm14, %v1396_v63, %v1111_v59  ;;  %v1437_v37 = vsel %vm1432_vm11, %v1391_v26, %v1106_v61  ;;  %vm6651_vm11 = vmmov 1  }
 0x151   : > { %v1447_v6 = vmax.f32 %v1439_v30, 0.0 }
 0x153   : > { %v1369_v3 = vpop.f32.mrf.mxu0  ;;  %1761 = vmatpush.bf16.msrb.mxu3 %v5968_v13 }
 0x154   : > { %v1398_v0 = vpop.f32.mrf.mxu1  ;;  %v1370_v29 = vadd.f32 %v1369_v3, %v1341_v19  ;;  %v5964_v19 = vld [vmem:[%s7693_s5 + $0x8] sm:$0xff] }
 0x156   : > { %v1399_v23 = vadd.f32 %v1398_v0, %v1370_v29  ;;  %v1394_v0 = vadd.f32 %v1393_v17, %v1365_v5  ;;  %v5973_v29 = vld [vmem:[#allocation7 + $0x40] sm:$0xff] }
 0x158   : > { %v1440_v3 = vsel %vm1434_vm13, %v1399_v23, %v1114_v42  ;;  %v1438_v4 = vsel %vm1433_vm14, %v1394_v0, %v7020_v25 }
 0x159   : > { %v1448_v55 = vmax.f32 %v1440_v3, 0.0 }
 0x15b   : > { %v1371_v7 = vpop.f32.mrf.mxu0 }
 0x15c   : > { %v1400_v51 = vpop.f32.mrf.mxu1  ;;  %v1372_v20 = vadd.f32 %v1371_v7, %v1343_v11  ;;  %v1446_v7 = vmax.f32 %v1438_v4, 0.0  ;;  %v5980_v11 = vld [vmem:[#allocation7 + $0x78] sm:$0xff] }
 0x15e   : > { %v1401_v31 = vadd.f32 %v1400_v51, %v1372_v20  ;;  %v1453_v56 = vpack.c.bf16 %v1447_v6, %v1446_v7  ;;  %v5967_v20 = vld [vmem:[#allocation7 + $0x10] sm:$0xff] }
 0x15f   : > { %1762 = vmatpush.bf16.msrb.mxu3 %v5967_v20  ;;  %v5995_v20 = vld [vmem:[#allocation8 + $0x30] sm:$0xff] }
 0x160   : > { %v1441_v36 = vsel %vm1434_vm13, %v1401_v31, %v1116_v38 }
 0x161   : > { %v1449_v8 = vmax.f32 %v1441_v36, 0.0 }
 0x163   : > { %v1454_v17 = vpack.c.bf16 %v1449_v8, %v1448_v55  ;;  %1763 = vmatpush.bf16.msrb.mxu3 %v5966_v22  ;;  %v6012_v22 = vld [vmem:[#allocation8 + $0xb8] sm:$0xff] }
 0x164   : > { %v1403_v9 = vpop.f32.mrf.mxu1 }
 0x165   : > { %v1404_v33 = vadd.f32 %v1403_v9, %v1375_v12  ;;  %v1445_v9 = vmax.f32 %v1437_v37, 0.0  ;;  %v5963_v12 = vld [vmem:[%s7693_s5] sm:$0xff] }
 0x167   : > { %v1442_v35 = vsel %vm1435_vm12, %v1404_v33, %v1119_v34  ;;  %v1452_v25 = vpack.c.bf16 %v1445_v9, %v1444_v10  ;;  %1764 = vmatpush.bf16.msrb.mxu3 %v5965_v27  ;;  %v5988_v33 = vld [vmem:[#allocation7 + $0xb8] sm:$0xff]  ;;  %v5994_v27 = vld [vmem:[#allocation8 + $0x28] sm:$0xff] }
 0x168   : > { %v1450_v41 = vmax.f32 %v1442_v35, 0.0  ;;  %v5984_v34 = vld [vmem:[#allocation7 + $0x98] sm:$0xff] }
 0x16b   : > { %1795 = vmatpush.bf16.msra.mxu3 %v5988_v33  ;;  %v6019_v33 = vld [vmem:[#allocation8 + $0xf0] sm:$0xff] }
 0x16c   : > { %v1405_v52 = vpop.f32.mrf.mxu1 }
 0x16d   : > { %v1406_v54 = vadd.f32 %v1405_v52, %v1377_v62  ;;  %v5982_v62 = vld [vmem:[#allocation7 + $0x88] sm:$0xff]  ;;  %v5981_v52 = vld [vmem:[#allocation7 + $0x80] sm:$0xff] }
 0x16f   : > { %v1443_v57 = vsel %vm1435_vm12, %v1406_v54, %v1121_v2  ;;  %1796 = vmatpush.bf16.msra.mxu3 %v5987_v43  ;;  %v5993_v43 = vld [vmem:[#allocation8 + $0x20] sm:$0xff]  ;;  %vm7241_vm12 = vmpackc.low %vm6651_vm11, %vm7071_vm1 }
 0x170   : > { %v1451_v1 = vmax.f32 %v1443_v57, 0.0 }
 0x172   : > { %v1455_v51 = vpack.c.bf16 %v1451_v1, %v1450_v41 }
 0x173   : > { %1797 = vmatpush.bf16.msra.mxu3 %v5986_v45  ;;  %v6002_v45 = vld [vmem:[#allocation8 + $0x68] sm:$0xff] }
 0x174   : > { %1481 = vmatpush.bf16.msra.mxu2 %v1455_v51 }
 0x177   : > { %1798 = vmatpush.bf16.msra.mxu3 %v5985_v47  ;;  %v6010_v47 = vld [vmem:[#allocation8 + $0xa8] sm:$0xff] }
 0x178   : > { %1482 = vmatpush.bf16.msra.mxu2 %v1454_v17 }
 0x17b   : > { %1799 = vmatpush.bf16.msra.mxu3 %v5984_v34  ;;  %v6018_v34 = vld [vmem:[#allocation8 + $0xe8] sm:$0xff] }
 0x17c   : > { %1483 = vmatpush.bf16.msra.mxu2 %v1453_v56 }
 0x17f   : > { %1800 = vmatpush.bf16.msra.mxu3 %v5983_v49  ;;  %v5992_v49 = vld [vmem:[#allocation8 + $0x18] sm:$0xff] }
 0x180   : > { %1484 = vmatpush.bf16.msra.mxu2 %v1452_v25 }
 0x183   : > { %4874 = vmatmul.msk.bf16.vlgmr.msra.gmra.mxu2 %vm1470_vm15, %v5963_v12  ;;  %1801 = vmatpush.bf16.msra.mxu3 %v5982_v62  ;;  %v6009_v62 = vld [vmem:[#allocation8 + $0xa0] sm:$0xff] }
 0x184   : > { %1776 = vmatpush.bf16.msrb.mxu2 %v5980_v11 }
 0x187   : > { %1802 = vmatpush.bf16.msra.mxu3 %v5981_v52  ;;  %v6000_v52 = vld [vmem:[#allocation8 + $0x58] sm:$0xff] }
 0x188   : > { %1777 = vmatpush.bf16.msrb.mxu2 %v5979_v44 }
 0x18c   : > { %1778 = vmatpush.bf16.msrb.mxu2 %v5978_v14 }
 0x190   : > { %1779 = vmatpush.bf16.msrb.mxu2 %v5977_v53 }
 0x193   : > { %4875 = vmatmul.msk.bf16.gmra.mxu2 %vm1470_vm15, %v5964_v19  ;;  %v5996_v19 = vld [vmem:[#allocation8 + $0x38] sm:$0xff] }
 0x194   : > { %1780 = vmatpush.bf16.msrb.mxu2 %v5976_v21  ;;  %2247 = vmatpush.bf16.msra.mxu0 %v5996_v19  ;;  %v6004_v21 = vld [vmem:[#allocation8 + $0x78] sm:$0xff] }
 0x195   : > { %2266 = vmatpush.bf16.msra.mxu1 %v6004_v21 }
 0x198   : > { %1781 = vmatpush.bf16.msrb.mxu2 %v5975_v24  ;;  %v6020_v24 = vld [vmem:[#allocation8 + $0xf8] sm:$0xff]  ;;  %2248 = vmatpush.bf16.msra.mxu0 %v5995_v20 }
 0x19c   : > { %1782 = vmatpush.bf16.msrb.mxu2 %v5974_v28  ;;  %v6003_v28 = vld [vmem:[#allocation8 + $0x70] sm:$0xff]  ;;  %2249 = vmatpush.bf16.msra.mxu0 %v5994_v27 }
 0x19d   : > { %2267 = vmatpush.bf16.msra.mxu1 %v6003_v28 }
 0x1a0   : > { %1783 = vmatpush.bf16.msrb.mxu2 %v5973_v29  ;;  %v6011_v29 = vld [vmem:[#allocation8 + $0xb0] sm:$0xff]  ;;  %2250 = vmatpush.bf16.msra.mxu0 %v5993_v43 }
 0x1a1   : > { %2268 = vmatpush.bf16.msra.mxu1 %v6002_v45 }
 0x1a4   : > { %2285 = vmatpush.bf16.msra.mxu2 %v6012_v22  ;;  %2251 = vmatpush.bf16.msra.mxu0 %v5992_v49  ;;  %v6021_v22 = vld [vmem:[#allocation8 + $0x100] sm:$0xff] }
 0x1a8   : > { %2286 = vmatpush.bf16.msra.mxu2 %v6011_v29 }
 0x1ac   : > { %2287 = vmatpush.bf16.msra.mxu2 %v6010_v47 }
 0x1b0   : > { %2288 = vmatpush.bf16.msra.mxu2 %v6009_v62 }
 0x206   : > { %v1486_v48 = vpop.f32.mrf.mxu2 }
 0x207   : > { %v1500_v31 = vrot.slane %v1486_v48, 7 }
 0x209   : > { %v1509_v38 = vsel %vm747_vm0, 0.0, %v1500_v31  ;;  %v1513_v58 = vsel %vm747_vm0, %v1500_v31, 0.0 }
 0x20a   : > { %v1526_v35 = vrot.slane %v1509_v38, 1  ;;  %v1527_v54 = vrot.slane %v1513_v58, 1  ;;  %v1543_v16 = vrot.slane %v1509_v38, 2  ;;  %v1544_v56 = vrot.slane %v1513_v58, 2  ;;  %v6017_v38 = vld [vmem:[#allocation8 + $0xe0] sm:$0xff]  ;;  %v5991_v58 = vld [vmem:[#allocation8 + $0x10] sm:$0xff] }
 0x20b   : > { %2252 = vmatpush.bf16.msra.mxu0 %v5991_v58 }
 0x20c   : > { %v1528_v57 = vsel %vm819_vm4, %v1526_v35, %v1527_v54  ;;  %v1545_v10 = vsel %vm1542_vm3, %v1543_v16, %v1544_v56  ;;  %v5990_v54 = vld [vmem:[#allocation8 + $0x8] sm:$0xff] }
 0x20e   : > { %v1488_v5 = vpop.f32.mrf.mxu2 }
 0x20f   : > { %v1501_v23 = vrot.slane %v1488_v5, 7  ;;  %v6008_v5 = vld [vmem:[#allocation8 + $0x98] sm:$0xff]  ;;  %2253 = vmatpush.bf16.msra.mxu0 %v5990_v54 }
 0x210   : > { %2289 = vmatpush.bf16.msra.mxu2 %v6008_v5 }
 0x211   : > { %v1510_v32 = vsel %vm747_vm0, 0.0, %v1501_v23  ;;  %v1514_v39 = vsel %vm747_vm0, %v1501_v23, 0.0  ;;  %v4975_v42 = vpack.c.bf16 %v1501_v23, %v1500_v31  ;;  %v6001_v31 = vld [vmem:[#allocation8 + $0x60] sm:$0xff]  ;;  %v6016_v23 = vld [vmem:[#allocation8 + $0xd8] sm:$0xff] }
 0x212   : > { %v1529_v60 = vrot.slane %v1510_v32, 1  ;;  %v1530_v63 = vrot.slane %v1514_v39, 1  ;;  %v1546_v37 = vrot.slane %v1510_v32, 2  ;;  %v1547_v7 = vrot.slane %v1514_v39, 2  ;;  %2269 = vmatpush.bf16.msra.mxu1 %v6001_v31  ;;  %v5999_v32 = vld [vmem:[#allocation8 + $0x50] sm:$0xff] }
 0x213   : > { %4976 = vmatmul.msk.bf16.vlgmr.msrb.gmra.mxu3 %vm4974_vm2, %v4975_v42  ;;  %v6007_v39 = vld [vmem:[#allocation8 + $0x90] sm:$0xff] }
 0x214   : > { %v1531_v36 = vsel %vm819_vm4, %v1529_v60, %v1530_v63  ;;  %v1548_v9 = vsel %vm1542_vm3, %v1546_v37, %v1547_v7  ;;  %2304 = vmatpush.bf16.msrb.mxu3 %v6020_v24  ;;  %v6015_v42 = vld [vmem:[#allocation8 + $0xd0] sm:$0xff]  ;;  %2290 = vmatpush.bf16.msra.mxu2 %v6007_v39  ;;  %v5989_v60 = vld [vmem:[#allocation8] sm:$0xff]  ;;  %v5998_v63 = vld [vmem:[#allocation8 + $0x48] sm:$0xff] }
 0x215   : > { %v1560_v41 = vpack.c.bf16 %v1531_v36, %v1528_v57  ;;  %v1561_v11 = vpack.c.bf16 %v1548_v9, %v1545_v10  ;;  %v6006_v57 = vld [vmem:[#allocation8 + $0x88] sm:$0xff]  ;;  %2254 = vmatpush.bf16.msra.mxu0 %v5989_v60  ;;  %v6023_v37 = vld [vmem:[#allocation8 + $0x110] sm:$0xff] }
 0x216   : > { %v1491_v1 = vpop.f32.mrf.mxu2  ;;  %2270 = vmatpush.bf16.msra.mxu1 %v6000_v52  ;;  %v6014_v36 = vld [vmem:[#allocation8 + $0xc8] sm:$0xff] }
 0x217   : > { %1784 = vmatmul.bf16.vlgmr.msrb.gmra.mxu2 %v1560_v41  ;;  %v1502_v59 = vrot.slane %v1491_v1, 7  ;;  %v5997_v1 = vld [vmem:[#allocation8 + $0x40] sm:$0xff]  ;;  %v6022_v10 = vld [vmem:[#allocation8 + $0x108] sm:$0xff] }
 0x218   : > { %2305 = vmatpush.bf16.msrb.mxu3 %v6019_v33  ;;  %2291 = vmatpush.bf16.msra.mxu2 %v6006_v57 }
 0x219   : > { %v1511_v0 = vsel %vm747_vm0, 0.0, %v1502_v59  ;;  %v1515_v3 = vsel %vm747_vm0, %v1502_v59, 0.0 }
 0x21a   : > { %v1532_v15 = vrot.slane %v1511_v0, 1  ;;  %v1533_v26 = vrot.slane %v1515_v3, 1  ;;  %v1549_v12 = vrot.slane %v1511_v0, 2  ;;  %v1550_v44 = vrot.slane %v1515_v3, 2  ;;  %2271 = vmatpush.bf16.msra.mxu1 %v5999_v32  ;;  %v6013_v0 = vld [vmem:[#allocation8 + $0xc0] sm:$0xff]  ;;  %v6028_v3 = vld [vmem:[#allocation8 + $0x138] sm:$0xff] }
 0x21b   : > { %2323 = vmatpush.bf16.msrb.mxu0 %v6028_v3 }
 0x21c   : > { %v1534_v40 = vsel %vm819_vm4, %v1532_v15, %v1533_v26  ;;  %v1551_v14 = vsel %vm1542_vm3, %v1549_v12, %v1550_v44  ;;  %2306 = vmatpush.bf16.msrb.mxu3 %v6018_v34  ;;  %v6026_v26 = vld [vmem:[#allocation8 + $0x128] sm:$0xff] }
 0x21e   : > { %v1493_v51 = vpop.f32.mrf.mxu2  ;;  %2272 = vmatpush.bf16.msra.mxu1 %v5998_v63 }
 0x21f   : > { %v1503_v8 = vrot.slane %v1493_v51, 7 }
 0x220   : > { %2307 = vmatpush.bf16.msrb.mxu3 %v6017_v38 }
 0x221   : > { %v1512_v30 = vsel %vm747_vm0, 0.0, %v1503_v8  ;;  %v1516_v50 = vsel %vm747_vm0, %v1503_v8, 0.0  ;;  %v4980_v55 = vpack.c.bf16 %v1503_v8, %v1502_v59  ;;  %v6005_v59 = vld [vmem:[#allocation8 + $0x80] sm:$0xff]  ;;  %v6027_v8 = vld [vmem:[#allocation8 + $0x130] sm:$0xff] }
 0x222   : > { %v1535_v61 = vrot.slane %v1512_v30, 1  ;;  %v1536_v4 = vrot.slane %v1516_v50, 1  ;;  %v1552_v18 = vrot.slane %v1512_v30, 2  ;;  %v1553_v25 = vrot.slane %v1516_v50, 2  ;;  %2273 = vmatpush.bf16.msra.mxu1 %v5997_v1  ;;  %2292 = vmatpush.bf16.msra.mxu2 %v6005_v59  ;;  %v6025_v30 = vld [vmem:[#allocation8 + $0x120] sm:$0xff] }
 0x223   : > { %4981 = vmatmul.msk.bf16.gmra.mxu3 %vm4974_vm2, %v4980_v55  ;;  %2324 = vmatpush.bf16.msrb.mxu0 %v6027_v8 }
 0x224   : > { %v1537_v17 = vsel %vm819_vm4, %v1535_v61, %v1536_v4  ;;  %v1554_v13 = vsel %vm1542_vm3, %v1552_v18, %v1553_v25  ;;  %2308 = vmatpush.bf16.msrb.mxu3 %v6016_v23 }
 0x225   : > { %v1563_v6 = vpack.c.bf16 %v1537_v17, %v1534_v40  ;;  %v1564_v53 = vpack.c.bf16 %v1554_v13, %v1551_v14  ;;  %v6024_v40 = vld [vmem:[#allocation8 + $0x118] sm:$0xff] }
 0x227   : > { %1789 = vmatmul.bf16.gmra.mxu2 %v1563_v6  ;;  %2325 = vmatpush.bf16.msrb.mxu0 %v6026_v26 }
 0x228   : > { %2309 = vmatpush.bf16.msrb.mxu3 %v6015_v42 }
 0x22b   : > { %2326 = vmatpush.bf16.msrb.mxu0 %v6025_v30 }
 0x22c   : > { %2310 = vmatpush.bf16.msrb.mxu3 %v6014_v36 }
 0x22f   : > { %2327 = vmatpush.bf16.msrb.mxu0 %v6024_v40 }
 0x230   : > { %2311 = vmatpush.bf16.msrb.mxu3 %v6013_v0 }
 0x233   : > { %1803 = vmatmul.bf16.vlgmr.msra.gmra.mxu3 %v1561_v11  ;;  %2328 = vmatpush.bf16.msrb.mxu0 %v6023_v37 }
 0x237   : > { %2329 = vmatpush.bf16.msrb.mxu0 %v6022_v10 }
 0x23b   : > { %2330 = vmatpush.bf16.msrb.mxu0 %v6021_v22 }
 0x243   : > { %1808 = vmatmul.bf16.gmra.mxu3 %v1564_v53 }
 0x296   : > { %v1766_v48 = vpop.f32.mrf.mxu3 }
 0x29a   : > { %v1785_v51 = vpop.f32.mrf.mxu2 }
 0x29b   : > { %v1786_v50 = vadd.f32 %v1785_v51, %v1766_v48 }
 0x29e   : > { %v1768_v35 = vpop.f32.mrf.mxu3 }
 0x2a2   : > { %v1787_v55 = vpop.f32.mrf.mxu2 }
 0x2a3   : > { %v1788_v7 = vadd.f32 %v1787_v55, %v1768_v35 }
 0x2a6   : > { %v1771_v41 = vpop.f32.mrf.mxu3 }
 0x2aa   : > { %v1790_v56 = vpop.f32.mrf.mxu2 }
 0x2ab   : > { %v1791_v14 = vadd.f32 %v1790_v56, %v1771_v41 }
 0x2ae   : > { %v7102_v15 = vpop.f32.mrf.mxu3 }
 0x2b2   : > { %v1792_v5 = vpop.f32.mrf.mxu2 }
 0x2b3   : > { %v1793_v60 = vadd.f32 %v1792_v5, %v7102_v15  ;;  %v6059_v5 = vld [vmem:[#allocation10 + $0xf0] sm:$0xff] }
 0x2b6   : > { %v1804_v61 = vpop.f32.mrf.mxu3 }
 0x2b7   : > { %v1805_v4 = vadd.f32 %v1804_v61, %v1786_v50 }
 0x2b9   : > { %v1814_v17 = vmax.f32 %v1805_v4, 0.0 }
 0x2bb   : > { %v1822_v6 = vrot.slane %v1814_v17, 6 }
 0x2bd   : > { %v7105_v11 = vsel %vm1830_vm5, 0.0, %v1822_v6  ;;  %v7108_v18 = vsel %vm1830_vm5, %v1822_v6, 0.0 }
 0x2be   : > { %v1806_v16 = vpop.f32.mrf.mxu3  ;;  %v1847_v12 = vrot.slane %v7105_v11, 1  ;;  %v1848_v44 = vrot.slane %v7108_v18, 1  ;;  %v1863_v53 = vrot.slane %v7105_v11, 2  ;;  %v1864_v19 = vrot.slane %v7108_v18, 2 }
 0x2bf   : > { %v1807_v9 = vadd.f32 %v1806_v16, %v1788_v7  ;;  %v1880_v20 = vrot.slane %v7105_v11, 3  ;;  %v1881_v24 = vrot.slane %v7108_v18, 3  ;;  %v1898_v22 = vrot.slane %v7108_v18, 4  ;;  %v6035_v18 = vld [vmem:[#allocation10 + $0x30] sm:$0xff] }
 0x2c0   : > { %v1849_v31 = vsel %vm819_vm4, %v1847_v12, %v1848_v44  ;;  %v1865_v58 = vsel %vm1542_vm3, %v1863_v53, %v1864_v19 }
 0x2c1   : > { %v1815_v25 = vmax.f32 %v1807_v9, 0.0  ;;  %v1882_v54 = vsel %vm1879_vm7, %v1880_v20, %v1881_v24  ;;  %v1897_v20 = vrot.slane %v7105_v11, 4  ;;  %v6036_v11 = vld [vmem:[#allocation10 + $0x38] sm:$0xff] }
 0x2c2   : > { %2772 = vmatpush.bf16.msrb.mxu1 %v6036_v11 }
 0x2c3   : > { %v1823_v13 = vrot.slane %v1815_v25, 6 }
 0x2c5   : > { %v7122_v27 = vsel %vm1830_vm5, 0.0, %v1823_v13  ;;  %v7125_v28 = vsel %vm1830_vm5, %v1823_v13, 0.0  ;;  %v5145_v29 = vpack.c.bf16 %v1823_v13, %v1822_v6 }
 0x2c6   : > { %v1809_v33 = vpop.f32.mrf.mxu3  ;;  %v1850_v43 = vrot.slane %v7122_v27, 1  ;;  %v1851_v45 = vrot.slane %v7125_v28, 1  ;;  %v1866_v47 = vrot.slane %v7122_v27, 2  ;;  %v1867_v34 = vrot.slane %v7125_v28, 2  ;;  %2773 = vmatpush.bf16.msrb.mxu1 %v6035_v18  ;;  %v6063_v18 = vld [vmem:[#allocation10 + $0x110] sm:$0xff] }
 0x2c7   : > { %v1883_v48 = vrot.slane %v7122_v27, 3  ;;  %v1884_v49 = vrot.slane %v7125_v28, 3  ;;  %5146 = vmatmul.msk.bf16.vlgmr.msra.gmra.mxu0 %vm7116_vm8, %v5145_v29  ;;  %v1810_v62 = vadd.f32 %v1809_v33, %v1791_v14  ;;  %v1900_v53 = vrot.slane %v7122_v27, 4 }
 0x2c8   : > { %v1852_v38 = vsel %vm819_vm4, %v1850_v43, %v1851_v45  ;;  %v1868_v52 = vsel %vm1542_vm3, %v1866_v47, %v1867_v34  ;;  %v1901_v19 = vrot.slane %v7125_v28, 4  ;;  %v1899_v29 = vsel %vm1896_vm9, %v1897_v20, %v1898_v22  ;;  %v6065_v20 = vld [vmem:[#allocation10 + $0x120] sm:$0xff] }
 0x2c9   : > { %v1914_v23 = vpack.c.bf16 %v1852_v38, %v1849_v31  ;;  %v1915_v35 = vpack.c.bf16 %v1868_v52, %v1865_v58  ;;  %v1885_v32 = vsel %vm1879_vm7, %v1883_v48, %v1884_v49  ;;  %v1816_v39 = vmax.f32 %v1810_v62, 0.0  ;;  %v6044_v49 = vld [vmem:[#allocation10 + $0x78] sm:$0xff]  ;;  %v6034_v38 = vld [vmem:[#allocation10 + $0x28] sm:$0xff]  ;;  %v6043_v58 = vld [vmem:[#allocation10 + $0x70] sm:$0xff] }
 0x2ca   : > { %v1916_v42 = vpack.c.bf16 %v1885_v32, %v1882_v54  ;;  %v1902_v24 = vsel %vm1896_vm9, %v1900_v53, %v1901_v19  ;;  %v6052_v31 = vld [vmem:[#allocation10 + $0xb8] sm:$0xff]  ;;  %2791 = vmatpush.bf16.msrb.mxu2 %v6044_v49  ;;  %v6051_v52 = vld [vmem:[#allocation10 + $0xb0] sm:$0xff]  ;;  %2774 = vmatpush.bf16.msrb.mxu1 %v6034_v38  ;;  %v6050_v54 = vld [vmem:[#allocation10 + $0xa8] sm:$0xff] }
 0x2cb   : > { %2274 = vmatmul.bf16.vlgmr.msra.gmra.mxu1 %v1914_v23  ;;  %2293 = vmatmul.bf16.vlgmr.msra.gmra.mxu2 %v1915_v35  ;;  %v1824_v63 = vrot.slane %v1816_v39, 6  ;;  %v1917_v33 = vpack.c.bf16 %v1902_v24, %v1899_v29  ;;  %v6060_v62 = vld [vmem:[#allocation10 + $0xf8] sm:$0xff]  ;;  %v6033_v23 = vld [vmem:[#allocation10 + $0x20] sm:$0xff]  ;;  %v6042_v35 = vld [vmem:[#allocation10 + $0x68] sm:$0xff] }
 0x2cc   : > { %2312 = vmatmul.bf16.vlgmr.msrb.gmra.mxu3 %v1916_v42  ;;  %2829 = vmatpush.bf16.msra.mxu0 %v6060_v62  ;;  %v6058_v32 = vld [vmem:[#allocation10 + $0xe8] sm:$0xff]  ;;  %v6032_v42 = vld [vmem:[#allocation10 + $0x18] sm:$0xff] }
 0x2cd   : > { %v1833_v41 = vsel %vm1830_vm5, 0.0, %v1824_v63  ;;  %v1837_v1 = vsel %vm1830_vm5, %v1824_v63, 0.0  ;;  %2810 = vmatpush.bf16.msra.mxu3 %v6052_v31  ;;  %v6066_v53 = vld [vmem:[#allocation10 + $0x128] sm:$0xff] }
 0x2ce   : > { %v1811_v57 = vpop.f32.mrf.mxu3  ;;  %v1853_v3 = vrot.slane %v1833_v41, 1  ;;  %v1854_v51 = vrot.slane %v1837_v1, 1  ;;  %v1869_v8 = vrot.slane %v1833_v41, 2  ;;  %v1870_v26 = vrot.slane %v1837_v1, 2  ;;  %2792 = vmatpush.bf16.msrb.mxu2 %v6043_v58  ;;  %2775 = vmatpush.bf16.msrb.mxu1 %v6033_v23  ;;  %v6062_v23 = vld [vmem:[#allocation10 + $0x108] sm:$0xff] }
 0x2cf   : > { %v1812_v36 = vadd.f32 %v1811_v57, %v1793_v60  ;;  %v1886_v30 = vrot.slane %v1833_v41, 3  ;;  %v1887_v61 = vrot.slane %v1837_v1, 3  ;;  %v1903_v47 = vrot.slane %v1833_v41, 4  ;;  %v6041_v60 = vld [vmem:[#allocation10 + $0x60] sm:$0xff]  ;;  %v6040_v41 = vld [vmem:[#allocation10 + $0x58] sm:$0xff] }
 0x2d0   : > { %v1855_v16 = vsel %vm819_vm4, %v1853_v3, %v1854_v51  ;;  %v1871_v9 = vsel %vm1542_vm3, %v1869_v8, %v1870_v26  ;;  %v1904_v34 = vrot.slane %v1837_v1, 4  ;;  %2830 = vmatpush.bf16.msra.mxu0 %v6059_v5  ;;  %v6057_v57 = vld [vmem:[#allocation10 + $0xe0] sm:$0xff]  ;;  %v6048_v1 = vld [vmem:[#allocation10 + $0x98] sm:$0xff]  ;;  %v6030_v3 = vld [vmem:[#allocation10 + $0x8] sm:$0xff] }
 0x2d1   : > { %v1817_v59 = vmax.f32 %v1812_v36, 0.0  ;;  %v1888_v44 = vsel %vm1879_vm7, %v1886_v30, %v1887_v61  ;;  %2811 = vmatpush.bf16.msra.mxu3 %v6051_v52  ;;  %v6031_v36 = vld [vmem:[#allocation10 + $0x10] sm:$0xff] }
 0x2d2   : > { %v1905_v27 = vsel %vm1896_vm9, %v1903_v47, %v1904_v34  ;;  %2793 = vmatpush.bf16.msrb.mxu2 %v6042_v35  ;;  %2776 = vmatpush.bf16.msrb.mxu1 %v6032_v42  ;;  %v6039_v51 = vld [vmem:[#allocation10 + $0x50] sm:$0xff]  ;;  %v6064_v34 = vld [vmem:[#allocation10 + $0x118] sm:$0xff] }
 0x2d3   : > { %v1825_v0 = vrot.slane %v1817_v59, 6  ;;  %v6047_v8 = vld [vmem:[#allocation10 + $0x90] sm:$0xff] }
 0x2d4   : > { %2831 = vmatpush.bf16.msra.mxu0 %v6058_v32  ;;  %v6055_v26 = vld [vmem:[#allocation10 + $0xd0] sm:$0xff] }
 0x2d5   : > { %v1834_v50 = vsel %vm1830_vm5, 0.0, %v1825_v0  ;;  %v1838_v55 = vsel %vm1830_vm5, %v1825_v0, 0.0  ;;  %v5150_v15 = vpack.c.bf16 %v1825_v0, %v1824_v63  ;;  %2812 = vmatpush.bf16.msra.mxu3 %v6050_v54  ;;  %v6049_v63 = vld [vmem:[#allocation10 + $0xa0] sm:$0xff]  ;;  %v6056_v0 = vld [vmem:[#allocation10 + $0xd8] sm:$0xff] }
 0x2d6   : > { %v1856_v4 = vrot.slane %v1834_v50, 1  ;;  %v1857_v40 = vrot.slane %v1838_v55, 1  ;;  %v1872_v17 = vrot.slane %v1834_v50, 2  ;;  %v1873_v6 = vrot.slane %v1838_v55, 2  ;;  %2794 = vmatpush.bf16.msrb.mxu2 %v6041_v60  ;;  %2777 = vmatpush.bf16.msrb.mxu1 %v6031_v36 }
 0x2d7   : > { %v1889_v37 = vrot.slane %v1834_v50, 3  ;;  %v1890_v7 = vrot.slane %v1838_v55, 3  ;;  %5151 = vmatmul.msk.bf16.gmra.mxu0 %vm7116_vm8, %v5150_v15  ;;  %v1906_v43 = vrot.slane %v1834_v50, 4  ;;  %v1907_v45 = vrot.slane %v1838_v55, 4  ;;  %v6029_v50 = vld [vmem:[#allocation10] sm:$0xff]  ;;  %v6038_v55 = vld [vmem:[#allocation10 + $0x48] sm:$0xff] }
 0x2d8   : > { %v1858_v56 = vsel %vm819_vm4, %v1856_v4, %v1857_v40  ;;  %v1874_v10 = vsel %vm1542_vm3, %v1872_v17, %v1873_v6  ;;  %2832 = vmatpush.bf16.msra.mxu0 %v6057_v57  ;;  %v6046_v15 = vld [vmem:[#allocation10 + $0x88] sm:$0xff]  ;;  %v6331_v17 = vld [vmem:[%s7696_s8] ss:$0 sm:$0xff] }
 0x2d9   : > { %v1919_v25 = vpack.c.bf16 %v1858_v56, %v1855_v16  ;;  %v1920_v12 = vpack.c.bf16 %v1874_v10, %v1871_v9  ;;  %v1891_v13 = vsel %vm1879_vm7, %v1889_v37, %v1890_v7  ;;  %v1908_v48 = vsel %vm1896_vm9, %v1906_v43, %v1907_v45  ;;  %2813 = vmatpush.bf16.msra.mxu3 %v6049_v63  ;;  %v6054_v4 = vld [vmem:[#allocation10 + $0xc8] sm:$0xff]  ;;  %v6037_v6 = vld [vmem:[#allocation10 + $0x40] sm:$0xff]  ;;  %v6068_v16 = vld [vmem:[#allocation10 + $0x138] sm:$0xff] }
 0x2da   : > { %v1921_v14 = vpack.c.bf16 %v1891_v13, %v1888_v44  ;;  %v1922_v28 = vpack.c.bf16 %v1908_v48, %v1905_v27  ;;  %2795 = vmatpush.bf16.msrb.mxu2 %v6040_v41  ;;  %2778 = vmatpush.bf16.msrb.mxu1 %v6030_v3  ;;  %v6045_v37 = vld [vmem:[#allocation10 + $0x80] sm:$0xff]  ;;  %v6067_v10 = vld [vmem:[#allocation10 + $0x130] sm:$0xff] }
 0x2db   : > { %2279 = vmatmul.bf16.gmra.mxu1 %v1919_v25  ;;  %2298 = vmatmul.bf16.gmra.mxu2 %v1920_v12  ;;  %v6053_v7 = vld [vmem:[#allocation10 + $0xc0] sm:$0xff] }
 0x2dc   : > { %2317 = vmatmul.bf16.gmra.mxu3 %v1921_v14  ;;  %2833 = vmatpush.bf16.msra.mxu0 %v6056_v0  ;;  %v6061_v3 = vld [vmem:[#allocation10 + $0x100] sm:$0xff] }
 0x2dd   : > { %2814 = vmatpush.bf16.msra.mxu3 %v6048_v1 }
 0x2de   : > { %2796 = vmatpush.bf16.msrb.mxu2 %v6039_v51  ;;  %2779 = vmatpush.bf16.msrb.mxu1 %v6029_v50 }
 0x2e0   : > { %2834 = vmatpush.bf16.msra.mxu0 %v6055_v26 }
 0x2e1   : > { %2815 = vmatpush.bf16.msra.mxu3 %v6047_v8 }
 0x2e2   : > { %2797 = vmatpush.bf16.msrb.mxu2 %v6038_v55  ;;  %2848 = vmatpush.bf16.msra.mxu1 %v6068_v16 }
 0x2e4   : > { %2835 = vmatpush.bf16.msra.mxu0 %v6054_v4 }
 0x2e5   : > { %2816 = vmatpush.bf16.msra.mxu3 %v6046_v15 }
 0x2e6   : > { %2798 = vmatpush.bf16.msrb.mxu2 %v6037_v6  ;;  %2849 = vmatpush.bf16.msra.mxu1 %v6067_v10 }
 0x2e7   : > { %2331 = vmatmul.bf16.vlgmr.msrb.gmra.mxu0 %v1917_v33 }
 0x2e8   : > { %2836 = vmatpush.bf16.msra.mxu0 %v6053_v7 }
 0x2e9   : > { %2817 = vmatpush.bf16.msra.mxu3 %v6045_v37 }
 0x2ea   : > { %2850 = vmatpush.bf16.msra.mxu1 %v6066_v53 }
 0x2ee   : > { %2851 = vmatpush.bf16.msra.mxu1 %v6065_v20 }
 0x2f2   : > { %2852 = vmatpush.bf16.msra.mxu1 %v6064_v34 }
 0x2f6   : > { %2853 = vmatpush.bf16.msra.mxu1 %v6063_v18 }
 0x2f7   : > { %2336 = vmatmul.bf16.gmra.mxu0 %v1922_v28 }
 0x2fa   : > { %2854 = vmatpush.bf16.msra.mxu1 %v6062_v23 }
 0x2fe   : > { %2855 = vmatpush.bf16.msra.mxu1 %v6061_v3 }
 0x344   : > { %v2256_v39 = vpop.f32.mrf.mxu0 }
 0x345   : > { %v2257_v56 = vadd.f32 %v6331_v17, %v2256_v39 }
 0x348   : > { %v2275_v30 = vpop.f32.mrf.mxu1 }
 0x349   : > { %v2276_v44 = vadd.f32 %v2275_v30, %v2257_v56 }
 0x34c   : > { %v2258_v59 = vpop.f32.mrf.mxu0 }
 0x34d   : > { %v2259_v22 = vadd.f32 %v6331_v17, %v2258_v59 }
 0x34e   : > { %v2294_v40 = vpop.f32.mrf.mxu2 }
 0x34f   : > { %v2313_v9 = vpop.f32.mrf.mxu3  ;;  %v2295_v13 = vadd.f32 %v2294_v40, %v2276_v44 }
 0x350   : > { %v2277_v25 = vpop.f32.mrf.mxu1 }
 0x351   : > { %v2314_v19 = vadd.f32 %v2313_v9, %v2295_v13  ;;  %v2278_v33 = vadd.f32 %v2277_v25, %v2259_v22 }
 0x354   : > { %v2261_v61 = vpop.f32.mrf.mxu0 }
 0x355   : > { %v2262_v28 = vadd.f32 %v6331_v17, %v2261_v61 }
 0x356   : > { %v2296_v14 = vpop.f32.mrf.mxu2 }
 0x357   : > { %v2315_v43 = vpop.f32.mrf.mxu3  ;;  %v2297_v48 = vadd.f32 %v2296_v14, %v2278_v33 }
 0x358   : > { %v2280_v45 = vpop.f32.mrf.mxu1 }
 0x359   : > { %v2316_v49 = vadd.f32 %v2315_v43, %v2297_v48  ;;  %v2281_v31 = vadd.f32 %v2280_v45, %v2262_v28 }
 0x35c   : > { %v2263_v12 = vpop.f32.mrf.mxu0 }
 0x35d   : > { %v2264_v39 = vadd.f32 %v6331_v17, %v2263_v12 }
 0x35e   : > { %v2299_v27 = vpop.f32.mrf.mxu2 }
 0x35f   : > { %v2300_v38 = vadd.f32 %v2299_v27, %v2281_v31  ;;  %v2318_v35 = vpop.f32.mrf.mxu3 }
 0x360   : > { %v2282_v54 = vpop.f32.mrf.mxu1 }
 0x361   : > { %v2319_v42 = vadd.f32 %v2318_v35, %v2300_v38  ;;  %v2283_v36 = vadd.f32 %v2282_v54, %v2264_v39 }
 0x364   : > { %v2332_v24 = vpop.f32.mrf.mxu0 }
 0x365   : > { %v2333_v29 = vadd.f32 %v2332_v24, %v2314_v19 }
 0x366   : > { %v2301_v0 = vpop.f32.mrf.mxu2 }
 0x367   : > { %v2342_v47 = vmax.f32 %v2333_v29, 0.0  ;;  %v2302_v40 = vadd.f32 %v2301_v0, %v2283_v36  ;;  %v2320_v53 = vpop.f32.mrf.mxu3 }
 0x369   : > { %v2350_v11 = vrot.slane %v2342_v47, 6  ;;  %v2321_v19 = vadd.f32 %v2320_v53, %v2302_v40 }
 0x36b   : > { %v7166_v52 = vsel %vm1830_vm5, 0.0, %v2350_v11  ;;  %v7169_v5 = vsel %vm1830_vm5, %v2350_v11, 0.0 }
 0x36c   : > { %v2334_v62 = vpop.f32.mrf.mxu0  ;;  %v2374_v60 = vrot.slane %v7166_v52, 1  ;;  %v2375_v63 = vrot.slane %v7169_v5, 1  ;;  %v2390_v41 = vrot.slane %v7166_v52, 2  ;;  %v2391_v1 = vrot.slane %v7169_v5, 2 }
 0x36d   : > { %v2335_v58 = vadd.f32 %v2334_v62, %v2316_v49  ;;  %v2406_v59 = vrot.slane %v7166_v52, 3  ;;  %v2407_v51 = vrot.slane %v7169_v5, 3  ;;  %v2422_v0 = vrot.slane %v7166_v52, 4 }
 0x36e   : > { %v2376_v37 = vsel %vm819_vm4, %v2374_v60, %v2375_v63  ;;  %v2392_v56 = vsel %vm1542_vm3, %v2390_v41, %v2391_v1  ;;  %v2423_v3 = vrot.slane %v7169_v5, 4 }
 0x36f   : > { %v2343_v32 = vmax.f32 %v2335_v58, 0.0  ;;  %v2408_v12 = vsel %vm1879_vm7, %v2406_v59, %v2407_v51 }
 0x371   : > { %v2351_v57 = vrot.slane %v2343_v32, 6 }
 0x373   : > { %v7178_v8 = vsel %vm1830_vm5, 0.0, %v2351_v57  ;;  %v7181_v26 = vsel %vm1830_vm5, %v2351_v57, 0.0  ;;  %v5315_v30 = vpack.c.bf16 %v2351_v57, %v2350_v11 }
 0x374   : > { %v2337_v50 = vpop.f32.mrf.mxu0  ;;  %v2377_v55 = vrot.slane %v7178_v8, 1  ;;  %v2378_v15 = vrot.slane %v7181_v26, 1  ;;  %v2393_v61 = vrot.slane %v7178_v8, 2  ;;  %v2394_v4 = vrot.slane %v7181_v26, 2 }
 0x375   : > { %v2409_v17 = vrot.slane %v7178_v8, 3  ;;  %v2410_v6 = vrot.slane %v7181_v26, 3  ;;  %5316 = vmatmul.msk.bf16.vlgmr.msrb.gmra.mxu1 %vm7116_vm8, %v5315_v30  ;;  %v2338_v7 = vadd.f32 %v2337_v50, %v2319_v42  ;;  %v2425_v21 = vrot.slane %v7178_v8, 4 }
 0x376   : > { %v2379_v16 = vsel %vm819_vm4, %v2377_v55, %v2378_v15  ;;  %v2395_v9 = vsel %vm1542_vm3, %v2393_v61, %v2394_v4  ;;  %v2426_v59 = vrot.slane %v7181_v26, 4  ;;  %v2424_v30 = vsel %vm1896_vm9, %v2422_v0, %v2423_v3  ;;  %v6088_v0 = vld [vmem:[#allocation11 + $0x78] sm:$0xff] }
 0x377   : > { %v2439_v10 = vpack.c.bf16 %v2379_v16, %v2376_v37  ;;  %v2440_v25 = vpack.c.bf16 %v2395_v9, %v2392_v56  ;;  %v2411_v44 = vsel %vm1879_vm7, %v2409_v17, %v2410_v6  ;;  %v2344_v13 = vmax.f32 %v2338_v7, 0.0  ;;  %v6096_v3 = vld [vmem:[#allocation11 + $0xb8] sm:$0xff]  ;;  %3284 = vmatpush.bf16.msrb.mxu0 %v6088_v0 }
 0x378   : > { %v2441_v14 = vpack.c.bf16 %v2411_v44, %v2408_v12  ;;  %v2427_v51 = vsel %vm1896_vm9, %v2425_v21, %v2426_v59  ;;  %v6070_v21 = vld [vmem:[%s7699_s11 + $0x8] sm:$0xff]  ;;  %v6080_v59 = vld [vmem:[#allocation11 + $0x38] sm:$0xff]  ;;  %3313 = vmatpush.bf16.msrb.mxu1 %v6096_v3 }
 0x379   : > { %2799 = vmatmul.bf16.vlgmr.msrb.gmra.mxu2 %v2439_v10  ;;  %2818 = vmatmul.bf16.vlgmr.msra.gmra.mxu3 %v2440_v25  ;;  %v2352_v20 = vrot.slane %v2344_v13, 6  ;;  %v2442_v50 = vpack.c.bf16 %v2427_v51, %v2424_v30  ;;  %v6079_v51 = vld [vmem:[#allocation11 + $0x30] sm:$0xff] }
 0x37a   : > { %2837 = vmatmul.bf16.vlgmr.msra.gmra.mxu0 %v2441_v14  ;;  %v6332_v14 = vld [vmem:[%s7698_s10] ss:$0 sm:$0xff]  ;;  %3255 = vmatpush.bf16.msrb.mxu3 %v6080_v59  ;;  %v6087_v30 = vld [vmem:[#allocation11 + $0x70] sm:$0xff] }
 0x37b   : > { %v2360_v29 = vsel %vm1830_vm5, 0.0, %v2352_v20  ;;  %v2364_v33 = vsel %vm1830_vm5, %v2352_v20, 0.0  ;;  %3285 = vmatpush.bf16.msrb.mxu0 %v6087_v30 }
 0x37c   : > { %v2339_v22 = vpop.f32.mrf.mxu0  ;;  %v2380_v47 = vrot.slane %v2360_v29, 1  ;;  %v2381_v34 = vrot.slane %v2364_v33, 1  ;;  %v2396_v48 = vrot.slane %v2360_v29, 2  ;;  %v2397_v27 = vrot.slane %v2364_v33, 2 }
 0x37d   : > { %v2340_v24 = vadd.f32 %v2339_v22, %v2321_v19  ;;  %v2412_v28 = vrot.slane %v2360_v29, 3  ;;  %v2413_v31 = vrot.slane %v2364_v33, 3  ;;  %v2428_v61 = vrot.slane %v2360_v29, 4 }
 0x37e   : > { %v2382_v32 = vsel %vm819_vm4, %v2380_v47, %v2381_v34  ;;  %v2398_v42 = vsel %vm1542_vm3, %v2396_v48, %v2397_v27  ;;  %v2429_v4 = vrot.slane %v2364_v33, 4  ;;  %3256 = vmatpush.bf16.msrb.mxu3 %v6079_v51 }
 0x37f   : > { %v2345_v43 = vmax.f32 %v2340_v24, 0.0  ;;  %v2414_v36 = vsel %vm1879_vm7, %v2412_v28, %v2413_v31 }
 0x380   : > { %v2430_v8 = vsel %vm1896_vm9, %v2428_v61, %v2429_v4  ;;  %v6077_v61 = vld [vmem:[#allocation11 + $0x20] sm:$0xff]  ;;  %v6071_v4 = vld [vmem:[%s7699_s11 + $0x10] sm:$0xff] }
 0x381   : > { %v2353_v45 = vrot.slane %v2345_v43, 6 }
 0x383   : > { %v2361_v11 = vsel %vm1830_vm5, 0.0, %v2353_v45  ;;  %v2365_v18 = vsel %vm1830_vm5, %v2353_v45, 0.0  ;;  %v5320_v49 = vpack.c.bf16 %v2353_v45, %v2352_v20 }
 0x384   : > { %v2383_v62 = vrot.slane %v2361_v11, 1  ;;  %v2384_v38 = vrot.slane %v2365_v18, 1  ;;  %v2399_v58 = vrot.slane %v2361_v11, 2  ;;  %v2400_v23 = vrot.slane %v2365_v18, 2 }
 0x385   : > { %v2415_v35 = vrot.slane %v2361_v11, 3  ;;  %v2416_v54 = vrot.slane %v2365_v18, 3  ;;  %5321 = vmatmul.msk.bf16.gmra.mxu1 %vm7116_vm8, %v5320_v49  ;;  %v2431_v55 = vrot.slane %v2361_v11, 4  ;;  %v2432_v15 = vrot.slane %v2365_v18, 4 }
 0x386   : > { %v2385_v39 = vsel %vm819_vm4, %v2383_v62, %v2384_v38  ;;  %v2401_v60 = vsel %vm1542_vm3, %v2399_v58, %v2400_v23 }
 0x387   : > { %v2444_v63 = vpack.c.bf16 %v2385_v39, %v2382_v32  ;;  %v2445_v57 = vpack.c.bf16 %v2401_v60, %v2398_v42  ;;  %v2417_v41 = vsel %vm1879_vm7, %v2415_v35, %v2416_v54  ;;  %v2433_v40 = vsel %vm1896_vm9, %v2431_v55, %v2432_v15  ;;  %v6078_v55 = vld [vmem:[#allocation11 + $0x28] sm:$0xff] }
 0x388   : > { %v2446_v1 = vpack.c.bf16 %v2417_v41, %v2414_v36  ;;  %v2447_v17 = vpack.c.bf16 %v2433_v40, %v2430_v8  ;;  %v6086_v15 = vld [vmem:[#allocation11 + $0x68] sm:$0xff]  ;;  %3257 = vmatpush.bf16.msrb.mxu3 %v6078_v55  ;;  %v6076_v40 = vld [vmem:[#allocation11 + $0x18] sm:$0xff] }
 0x389   : > { %2804 = vmatmul.bf16.gmra.mxu2 %v2444_v63  ;;  %2823 = vmatmul.bf16.gmra.mxu3 %v2445_v57  ;;  %v6072_v8 = vld [vmem:[%s7699_s11 + $0x18] sm:$0xff] }
 0x38a   : > { %2842 = vmatmul.bf16.gmra.mxu0 %v2446_v1  ;;  %v6069_v1 = vld [vmem:[%s7699_s11] sm:$0xff]  ;;  %v6128_v55 = vld [vmem:[#allocation13 + $0xf4] sm:$0xf0] }
 0x38b   : > { %3286 = vmatpush.bf16.msrb.mxu0 %v6086_v15 }
 0x38c   : > { %3258 = vmatpush.bf16.msrb.mxu3 %v6077_v61  ;;  %v5512_v61 = vld [vmem:[#allocation13 + $0x70] sm:$0xf] }
 0x390   : > { %3259 = vmatpush.bf16.msrb.mxu3 %v6076_v40  ;;  %v6111_v40 = vld [vmem:[#allocation13 + $0x74] sm:$0xf] }
 0x395   : > { %2856 = vmatmul.bf16.vlgmr.msra.gmra.mxu1 %v2442_v50  ;;  %v6095_v50 = vld [vmem:[#allocation11 + $0xb0] sm:$0xff] }
 0x396   : > { %3314 = vmatpush.bf16.msrb.mxu1 %v6095_v50  ;;  %v5576_v50 = vld [vmem:[#allocation13 + $0xf0] sm:$0xf] }
 0x397   : > { %v5577_v15 = vor.u32 %v6128_v55, %v5576_v50  ;;  %v5496_v55 = vld [vmem:[#allocation13 + $0x50] sm:$0xf] }
 0x3a5   : > { %2861 = vmatmul.bf16.gmra.mxu1 %v2447_v17  ;;  %v6094_v17 = vld [vmem:[#allocation11 + $0xa8] sm:$0xff] }
 0x3a6   : > { %3315 = vmatpush.bf16.msrb.mxu1 %v6094_v17  ;;  %v5514_v17 = vld [vmem:[#allocation13 + $0x78] sm:$0xf0] }
 0x3f2   : > { %v2781_v26 = vpop.f32.mrf.mxu1 }
 0x3f3   : > { %v2782_v33 = vadd.f32 %v6332_v14, %v2781_v26  ;;  %v6085_v26 = vld [vmem:[#allocation11 + $0x60] sm:$0xff] }
 0x3f4   : > { %3287 = vmatpush.bf16.msrb.mxu0 %v6085_v26  ;;  %v5568_v26 = vld [vmem:[#allocation13 + $0xe0] sm:$0xf] }
 0x3f7   : > { %v2838_v7 = vpop.f32.mrf.mxu0 }
 0x3fa   : > { %v2783_v52 = vpop.f32.mrf.mxu1 }
 0x3fb   : > { %v2784_v22 = vadd.f32 %v6332_v14, %v2783_v52  ;;  %v6093_v52 = vld [vmem:[#allocation11 + $0xa0] sm:$0xff] }
 0x3fc   : > { %v2800_v6 = vpop.f32.mrf.mxu2  ;;  %v2819_v37 = vpop.f32.mrf.mxu3  ;;  %3316 = vmatpush.bf16.msrb.mxu1 %v6093_v52 }
 0x3fd   : > { %v2801_v34 = vadd.f32 %v2800_v6, %v2782_v33  ;;  %v6084_v6 = vld [vmem:[#allocation11 + $0x58] sm:$0xff] }
 0x3fe   : > { %3288 = vmatpush.bf16.msrb.mxu0 %v6084_v6  ;;  %v5517_v6 = vor.u32 %v6111_v40, %v5514_v17  ;;  %v5498_v40 = vld [vmem:[#allocation13 + $0x58] sm:$0xf0]  ;;  %v5560_v17 = vld [vmem:[#allocation13 + $0xd0] sm:$0xf] }
 0x3ff   : > { %v2840_v25 = vpop.f32.mrf.mxu0  ;;  %v2820_v18 = vadd.f32 %v2819_v37, %v2801_v34  ;;  %v6075_v37 = vld [vmem:[#allocation11 + $0x10] sm:$0xff] }
 0x400   : > { %3260 = vmatpush.bf16.msrb.mxu3 %v6075_v37  ;;  %v5640_v37 = vld [vmem:[#allocation13 + $0x170] sm:$0xf] }
 0x401   : > { %v2839_v35 = vadd.f32 %v2838_v7, %v2820_v18  ;;  %v6074_v7 = vld [vmem:[#allocation11 + $0x8] sm:$0xff] }
 0x402   : > { %v2786_v5 = vpop.f32.mrf.mxu1 }
 0x403   : > { %v2787_v53 = vadd.f32 %v6332_v14, %v2786_v5  ;;  %v6092_v5 = vld [vmem:[#allocation11 + $0x98] sm:$0xff] }
 0x404   : > { %v2802_v16 = vpop.f32.mrf.mxu2  ;;  %v2821_v9 = vpop.f32.mrf.mxu3  ;;  %3317 = vmatpush.bf16.msrb.mxu1 %v6092_v5  ;;  %3261 = vmatpush.bf16.msrb.mxu3 %v6074_v7  ;;  %v6126_v5 = vld [vmem:[#allocation13 + $0xe4] sm:$0xf0] }
 0x405   : > { %v2803_v43 = vadd.f32 %v2802_v16, %v2784_v22  ;;  %v6083_v16 = vld [vmem:[#allocation11 + $0x50] sm:$0xff]  ;;  %v5569_v7 = vor.u32 %v6126_v5, %v5568_v26  ;;  %v6124_v26 = vld [vmem:[#allocation13 + $0xd4] sm:$0xf0] }
 0x406   : > { %3289 = vmatpush.bf16.msrb.mxu0 %v6083_v16  ;;  %v6144_v16 = vld [vmem:[#allocation13 + $0x174] sm:$0xf0] }
 0x407   : > { %v2843_v19 = vpop.f32.mrf.mxu0  ;;  %v2822_v28 = vadd.f32 %v2821_v9, %v2803_v43  ;;  %v6082_v9 = vld [vmem:[#allocation11 + $0x48] sm:$0xff]  ;;  %v6140_v5 = vld [vmem:[#allocation13 + $0x154] sm:$0xf0] }
 0x409   : > { %v2841_v62 = vadd.f32 %v2840_v25, %v2822_v28  ;;  %v6073_v25 = vld [vmem:[#allocation11] sm:$0xff] }
 0x40a   : > { %v2788_v56 = vpop.f32.mrf.mxu1  ;;  %3290 = vmatpush.bf16.msrb.mxu0 %v6082_v9  ;;  %3262 = vmatpush.bf16.msrb.mxu3 %v6073_v25 }
 0x40b   : > { %v2789_v24 = vadd.f32 %v6332_v14, %v2788_v56  ;;  %v6091_v56 = vld [vmem:[#allocation11 + $0x90] sm:$0xff] }
 0x40c   : > { %v2805_v12 = vpop.f32.mrf.mxu2  ;;  %v2824_v44 = vpop.f32.mrf.mxu3  ;;  %3318 = vmatpush.bf16.msrb.mxu1 %v6091_v56  ;;  %v5641_v56 = vor.u32 %v6144_v16, %v5640_v37  ;;  %v5488_v37 = vld [vmem:[#allocation13 + $0x40] sm:$0xf] }
 0x40d   : > { %v2806_v29 = vadd.f32 %v2805_v12, %v2787_v53  ;;  %v6081_v12 = vld [vmem:[#allocation11 + $0x40] sm:$0xff] }
 0x40e   : > { %3291 = vmatpush.bf16.msrb.mxu0 %v6081_v12  ;;  %3793 = vmatpush.bf16.msra.mxu3 %v5577_v15  ;;  %v6108_v15 = vld [vmem:[#allocation13 + $0x54] sm:$0xf0] }
 0x40f   : > { %v2825_v48 = vadd.f32 %v2824_v44, %v2806_v29  ;;  %v2845_v31 = vpop.f32.mrf.mxu0  ;;  %v6089_v44 = vld [vmem:[#allocation11 + $0x80] sm:$0xff] }
 0x411   : > { %v2844_v49 = vadd.f32 %v2843_v19, %v2825_v48 }
 0x412   : > { %v2857_v10 = vpop.f32.mrf.mxu1  ;;  %3794 = vmatpush.bf16.msra.mxu3 %v5569_v7  ;;  %3822 = vmatpush.bf16.msra.mxu0 %v5641_v56  ;;  %v6106_v7 = vld [vmem:[#allocation13 + $0x44] sm:$0xf0] }
 0x413   : > { %v2858_v39 = vadd.f32 %v2857_v10, %v2839_v35  ;;  %v6090_v10 = vld [vmem:[#allocation11 + $0x88] sm:$0xff]  ;;  %v5489_v56 = vor.u32 %v6106_v7, %v5488_v37  ;;  %v7281_v7 = vld [vmem:[%s7747_s6] ss:$0 sm:$0xff]  ;;  %s6574_s6 = sshra.s32 %s4485_s25, 4  ;;  %s6575_s6 = int_to_ptr.hbm [resolvable:$true] %s6574_s6 }
 0x414   : > { %v2807_v20 = vpop.f32.mrf.mxu2  ;;  %v2826_v27 = vpop.f32.mrf.mxu3  ;;  %3319 = vmatpush.bf16.msrb.mxu1 %v6090_v10  ;;  %s6576_s9 = scalar_lea.hbm %s6575_s6, 128  ;;  %p6581_p7 = scmp.lt.s32.totalorder %s6575_s6, %s7749_s26 }
 0x415   : > { %v2808_v45 = vadd.f32 %v2807_v20, %v2789_v24  ;;  %v2867_v36 = vmax.f32 %v2858_v39, 0.0  ;;  %p6577_p3 = scmp.ne.s32.totalorder %s6575_s6, %s6576_s9  ;;  %p6582_p8 = scmp.lt.s32.totalorder %s6580_s20, %s6576_s9 }
 0x417   : > { %v2827_v11 = vadd.f32 %v2826_v27, %v2808_v45  ;;  %p6578_p5 = pnand %p6577_p3, %p6851_p4  ;;  %p6583_p9 = por %p6582_p8, %p6581_p7 }
 0x418   : > { %3320 = vmatpush.bf16.msrb.mxu1 %v6089_v44 }
 0x419   : > { %v2846_v58 = vadd.f32 %v2845_v31, %v2827_v11  ;;  %p6579_p12 = pneg %p6578_p5 }
 0x41a   : > { %v2859_v13 = vpop.f32.mrf.mxu1 }
 0x41b   : > { %v2860_v54 = vadd.f32 %v2859_v13, %v2841_v62  ;;  %p6584_p10 = pnand %p6583_p9, %p6579_p12 }
 0x41c   : > { %3851 = vmatpush.bf16.msra.mxu1 %v5517_v6  ;;  %v5561_v6 = vor.u32 %v6124_v26, %v5560_v17  ;;  %v5584_v17 = vld [vmem:[#allocation13 + $0x100] sm:$0xf] }
 0x41d   : > { %v2868_v63 = vmax.f32 %v2860_v54, 0.0 }
 0x41e   : > { %3795 = vmatpush.bf16.msra.mxu3 %v5561_v6 }
 0x41f   : > { %v2871_v41 = vpack.c.bf16 %v2868_v63, %v2867_v36 }
 0x422   : > { %v2862_v47 = vpop.f32.mrf.mxu1 }
 0x423   : > { %v2863_v38 = vadd.f32 %v2862_v47, %v2844_v49 }
 0x425   : > { %v2869_v42 = vmax.f32 %v2863_v38, 0.0 }
 0x42a   : > { %v2864_v23 = vpop.f32.mrf.mxu1 }
 0x42b   : > { %v2865_v32 = vadd.f32 %v2864_v23, %v2846_v58 }
 0x42d   : > { %v2870_v60 = vmax.f32 %v2865_v32, 0.0 }
 0x42f   : > { %v2872_v57 = vpack.c.bf16 %v2870_v60, %v2869_v42 }
 0x431   : > { %2920 = vmatpush.bf16.msra.mxu2 %v2872_v57 }
 0x435   : > { %2921 = vmatpush.bf16.msra.mxu2 %v2871_v41 }
 0x438   : > { %5338 = vmatmul.msk.bf16.vlgmr.msra.gmra.mxu2 %vm2901_vm10, %v6069_v1 }
 0x448   : > { %5339 = vmatmul.msk.bf16.gmra.mxu2 %vm2901_vm10, %v6070_v21 }
 0x458   : > { %5340 = vmatmul.msk.bf16.gmra.mxu2 %vm2901_vm10, %v6071_v4  ;;  %v6112_v4 = vld [vmem:[#allocation13 + $0x74] sm:$0xf0] }
 0x468   : > { %5341 = vmatmul.msk.bf16.gmra.mxu2 %vm2901_vm10, %v6072_v8  ;;  %v5513_v8 = vor.u32 %v6112_v4, %v5512_v61  ;;  %v6107_v61 = vld [vmem:[#allocation13 + $0x54] sm:$0xf]  ;;  %v5497_v4 = vor.u32 %v6108_v15, %v5496_v55  ;;  %v6097_v15 = vld [vmem:[#allocation13 + $0x4] sm:$0xf] }
 0x46a   : > { %3764 = vmatpush.bf16.msrb.mxu2 %v5513_v8  ;;  %v5501_v8 = vor.u32 %v6107_v61, %v5498_v40  ;;  %v5458_v61 = vld [vmem:[#allocation13 + $0x8] sm:$0xf0]  ;;  %v5520_v40 = vld [vmem:[#allocation13 + $0x80] sm:$0xf] }
 0x4bb   : > { %v2923_v13 = vpop.f32.mrf.mxu2 }
 0x4bc   : > { %v2951_v14 = vrot.slane %v2923_v13, 7 }
 0x4be   : > { %v2975_v53 = vsel %vm747_vm0, 0.0, %v2951_v14 }
 0x4bf   : > { %v2991_v22 = vrot.slane %v2975_v53, 1  ;;  %v3019_v24 = vrot.slane %v2975_v53, 2 }
 0x4c3   : > { %v2925_v19 = vpop.f32.mrf.mxu2 }
 0x4c4   : > { %v2952_v20 = vrot.slane %v2925_v19, 7 }
 0x4c6   : > { %v2953_v29 = vsel %vm747_vm0, %v2951_v14, %v2952_v20  ;;  %v2979_v33 = vsel %vm747_vm0, %v2952_v20, 0.0 }
 0x4c7   : > { %v2992_v45 = vrot.slane %v2953_v29, 1  ;;  %v2994_v47 = vrot.slane %v2979_v33, 1  ;;  %v3020_v34 = vrot.slane %v2953_v29, 2  ;;  %v3022_v48 = vrot.slane %v2979_v33, 2 }
 0x4c8   : > { %v5440_v27 = vpack.c.bf16 %v2953_v29, %v2951_v14 }
 0x4c9   : > { %v2993_v28 = vsel %vm819_vm4, %v2991_v22, %v2992_v45  ;;  %v2995_v11 = vsel %vm819_vm4, %v2992_v45, %v2994_v47  ;;  %v3021_v18 = vsel %vm1542_vm3, %v3019_v24, %v3020_v34  ;;  %v3023_v49 = vsel %vm1542_vm3, %v3020_v34, %v3022_v48 }
 0x4ca   : > { %v3048_v31 = vpack.c.bf16 %v2995_v11, %v2993_v28  ;;  %v3049_v62 = vpack.c.bf16 %v3023_v49, %v3021_v18  ;;  %5441 = vmatmul.msk.bf16.vlgmr.msrb.gmra.mxu3 %vm7241_vm12, %v5440_v27 }
 0x4cb   : > { %v2928_v2 = vpop.f32.mrf.mxu2 }
 0x4cc   : > { %3292 = vmatmul.bf16.vlgmr.msrb.gmra.mxu0 %v3048_v31  ;;  %3321 = vmatmul.bf16.vlgmr.msrb.gmra.mxu1 %v3049_v62  ;;  %v2954_v38 = vrot.slane %v2928_v2, 7 }
 0x4ce   : > { %v2976_v58 = vsel %vm747_vm0, 0.0, %v2954_v38 }
 0x4cf   : > { %v2996_v54 = vrot.slane %v2976_v58, 1  ;;  %v3024_v32 = vrot.slane %v2976_v58, 2 }
 0x4d3   : > { %v2930_v23 = vpop.f32.mrf.mxu2 }
 0x4d4   : > { %v2955_v35 = vrot.slane %v2930_v23, 7 }
 0x4d6   : > { %v2956_v39 = vsel %vm747_vm0, %v2954_v38, %v2955_v35  ;;  %v2980_v42 = vsel %vm747_vm0, %v2955_v35, 0.0 }
 0x4d7   : > { %v2997_v60 = vrot.slane %v2956_v39, 1  ;;  %v2999_v63 = vrot.slane %v2980_v42, 1  ;;  %v3025_v57 = vrot.slane %v2956_v39, 2  ;;  %v3027_v36 = vrot.slane %v2980_v42, 2 }
 0x4d8   : > { %v5444_v41 = vpack.c.bf16 %v2956_v39, %v2954_v38 }
 0x4d9   : > { %v2998_v1 = vsel %vm819_vm4, %v2996_v54, %v2997_v60  ;;  %v3000_v21 = vsel %vm819_vm4, %v2997_v60, %v2999_v63  ;;  %v3026_v59 = vsel %vm1542_vm3, %v3024_v32, %v3025_v57  ;;  %v3028_v0 = vsel %vm1542_vm3, %v3025_v57, %v3027_v36 }
 0x4da   : > { %5445 = vmatmul.msk.bf16.gmra.mxu3 %vm7241_vm12, %v5444_v41  ;;  %v3051_v3 = vpack.c.bf16 %v3000_v21, %v2998_v1  ;;  %v3052_v51 = vpack.c.bf16 %v3028_v0, %v3026_v59  ;;  %v5504_v41 = vld [vmem:[#allocation13 + $0x60] sm:$0xf]  ;;  %v6110_v1 = vld [vmem:[#allocation13 + $0x64] sm:$0xf0]  ;;  %v6109_v21 = vld [vmem:[#allocation13 + $0x64] sm:$0xf] }
 0x4db   : > { %v2933_v30 = vpop.f32.mrf.mxu2  ;;  %v5505_v59 = vor.u32 %v6110_v1, %v5504_v41  ;;  %v5506_v0 = vld [vmem:[#allocation13 + $0x68] sm:$0xf0]  ;;  %v5528_v1 = vld [vmem:[#allocation13 + $0x90] sm:$0xf] }
 0x4dc   : > { %3297 = vmatmul.bf16.gmra.mxu0 %v3051_v3  ;;  %3326 = vmatmul.bf16.gmra.mxu1 %v3052_v51  ;;  %v2957_v52 = vrot.slane %v2933_v30, 7  ;;  %v5509_v3 = vor.u32 %v6109_v21, %v5506_v0  ;;  %v5632_v51 = vld [vmem:[#allocation13 + $0x160] sm:$0xf]  ;;  %v6142_v30 = vld [vmem:[#allocation13 + $0x164] sm:$0xf0] }
 0x4dd   : > { %3765 = vmatpush.bf16.msrb.mxu2 %v5505_v59  ;;  %v5633_v50 = vor.u32 %v6142_v30, %v5632_v51  ;;  %v6116_v21 = vld [vmem:[#allocation13 + $0x94] sm:$0xf0]  ;;  %v5592_v59 = vld [vmem:[#allocation13 + $0x110] sm:$0xf]  ;;  %v5456_v51 = vld [vmem:[#allocation13] sm:$0xf] }
 0x4de   : > { %v2977_v9 = vsel %vm747_vm0, 0.0, %v2957_v52  ;;  %3852 = vmatpush.bf16.msra.mxu1 %v5509_v3  ;;  %v5529_v0 = vor.u32 %v6116_v21, %v5528_v1  ;;  %v6132_v3 = vld [vmem:[#allocation13 + $0x114] sm:$0xf0]  ;;  %v6098_v30 = vld [vmem:[#allocation13 + $0x4] sm:$0xf0] }
 0x4df   : > { %v3001_v12 = vrot.slane %v2977_v9, 1  ;;  %v3029_v44 = vrot.slane %v2977_v9, 2  ;;  %3823 = vmatpush.bf16.msra.mxu0 %v5633_v50  ;;  %v6105_v9 = vld [vmem:[#allocation13 + $0x44] sm:$0xf]  ;;  %v5593_v50 = vor.u32 %v6132_v3, %v5592_v59  ;;  %v5457_v55 = vor.u32 %v6098_v30, %v5456_v51 }
 0x4e1   : > { %3766 = vmatpush.bf16.msrb.mxu2 %v5497_v4  ;;  %v5461_v4 = vor.u32 %v6097_v15, %v5458_v61  ;;  %v6143_v61 = vld [vmem:[#allocation13 + $0x174] sm:$0xf] }
 0x4e2   : > { %3853 = vmatpush.bf16.msra.mxu1 %v5501_v8  ;;  %v6114_v8 = vld [vmem:[#allocation13 + $0x84] sm:$0xf0] }
 0x4e3   : > { %v2935_v10 = vpop.f32.mrf.mxu2  ;;  %v5521_v26 = vor.u32 %v6114_v8, %v5520_v40 }
 0x4e4   : > { %v2958_v25 = vrot.slane %v2935_v10, 7  ;;  %v5490_v10 = vld [vmem:[#allocation13 + $0x48] sm:$0xf0] }
 0x4e5   : > { %3767 = vmatpush.bf16.msrb.mxu2 %v5489_v56 }
 0x4e6   : > { %v2959_v13 = vsel %vm747_vm0, %v2957_v52, %v2958_v25  ;;  %v2981_v14 = vsel %vm747_vm0, %v2958_v25, 0.0  ;;  %v5493_v25 = vor.u32 %v6105_v9, %v5490_v10 }
 0x4e7   : > { %v3002_v53 = vrot.slane %v2959_v13, 1  ;;  %v3004_v19 = vrot.slane %v2981_v14, 1  ;;  %v3030_v20 = vrot.slane %v2959_v13, 2  ;;  %v3032_v22 = vrot.slane %v2981_v14, 2 }
 0x4e8   : > { %v5448_v24 = vpack.c.bf16 %v2959_v13, %v2957_v52  ;;  %v5624_v52 = vld [vmem:[#allocation13 + $0x150] sm:$0xf]  ;;  %v5616_v13 = vld [vmem:[#allocation13 + $0x140] sm:$0xf]  ;;  %3854 = vmatpush.bf16.msra.mxu1 %v5493_v25 }
 0x4e9   : > { %v3003_v29 = vsel %vm819_vm4, %v3001_v12, %v3002_v53  ;;  %v3005_v33 = vsel %vm819_vm4, %v3002_v53, %v3004_v19  ;;  %v3031_v45 = vsel %vm1542_vm3, %v3029_v44, %v3030_v20  ;;  %v3033_v47 = vsel %vm1542_vm3, %v3030_v20, %v3032_v22  ;;  %v5552_v12 = vld [vmem:[#allocation13 + $0xc0] sm:$0xf]  ;;  %v6122_v44 = vld [vmem:[#allocation13 + $0xc4] sm:$0xf0]  ;;  %v5480_v19 = vld [vmem:[#allocation13 + $0x30] sm:$0xf] }
 0x4ea   : > { %5449 = vmatmul.msk.bf16.gmra.mxu3 %vm7241_vm12, %v5448_v24  ;;  %v3054_v34 = vpack.c.bf16 %v3005_v33, %v3003_v29  ;;  %v3055_v48 = vpack.c.bf16 %v3033_v47, %v3031_v45  ;;  %v5625_v16 = vor.u32 %v6140_v5, %v5624_v52  ;;  %v5553_v14 = vor.u32 %v6122_v44, %v5552_v12  ;;  %v6138_v53 = vld [vmem:[#allocation13 + $0x144] sm:$0xf0]  ;;  %v6104_v20 = vld [vmem:[#allocation13 + $0x34] sm:$0xf0]  ;;  %v6103_v29 = vld [vmem:[#allocation13 + $0x34] sm:$0xf] }
 0x4eb   : > { %v2938_v27 = vpop.f32.mrf.mxu2  ;;  %v5617_v22 = vor.u32 %v6138_v53, %v5616_v13  ;;  %v5481_v24 = vor.u32 %v6104_v20, %v5480_v19  ;;  %v5482_v33 = vld [vmem:[#allocation13 + $0x38] sm:$0xf0]  ;;  %v5544_v47 = vld [vmem:[#allocation13 + $0xb0] sm:$0xf]  ;;  %v6130_v52 = vld [vmem:[#allocation13 + $0x104] sm:$0xf0] }
 0x4ec   : > { %3302 = vmatmul.bf16.gmra.mxu0 %v3054_v34  ;;  %3331 = vmatmul.bf16.gmra.mxu1 %v3055_v48  ;;  %v2960_v28 = vrot.slane %v2938_v27, 7  ;;  %v5485_v45 = vor.u32 %v6103_v29, %v5482_v33  ;;  %v6120_v34 = vld [vmem:[#allocation13 + $0xb4] sm:$0xf0]  ;;  %v5608_v48 = vld [vmem:[#allocation13 + $0x130] sm:$0xf]  ;;  %v5585_v37 = vor.u32 %v6130_v52, %v5584_v17 }
 0x4ed   : > { %3824 = vmatpush.bf16.msra.mxu0 %v5625_v16  ;;  %3796 = vmatpush.bf16.msra.mxu3 %v5553_v14  ;;  %v5545_v27 = vor.u32 %v6120_v34, %v5544_v47  ;;  %v5737_v17 = vld [vmem:[#allocation13 + $0x1f0] sm:$0xf]  ;;  %v6125_v52 = vld [vmem:[#allocation13 + $0xe4] sm:$0xf] }
 0x4ee   : > { %v2978_v11 = vsel %vm747_vm0, 0.0, %v2960_v28  ;;  %3768 = vmatpush.bf16.msrb.mxu2 %v5481_v24  ;;  %3855 = vmatpush.bf16.msra.mxu1 %v5485_v45 }
 0x4ef   : > { %v3006_v31 = vrot.slane %v2978_v11, 1  ;;  %v3034_v62 = vrot.slane %v2978_v11, 2  ;;  %v5472_v11 = vld [vmem:[#allocation13 + $0x20] sm:$0xf] }
 0x4f1   : > { %3825 = vmatpush.bf16.msra.mxu0 %v5617_v22  ;;  %3797 = vmatpush.bf16.msra.mxu3 %v5545_v27 }
 0x4f3   : > { %v2940_v18 = vpop.f32.mrf.mxu2 }
 0x4f4   : > { %v2961_v49 = vrot.slane %v2940_v18, 7  ;;  %v6102_v18 = vld [vmem:[#allocation13 + $0x24] sm:$0xf0] }
 0x4f6   : > { %v2962_v2 = vsel %vm747_vm0, %v2960_v28, %v2961_v49  ;;  %v2982_v38 = vsel %vm747_vm0, %v2961_v49, 0.0 }
 0x4f7   : > { %v3007_v58 = vrot.slane %v2962_v2, 1  ;;  %v3009_v23 = vrot.slane %v2982_v38, 1  ;;  %v3035_v35 = vrot.slane %v2962_v2, 2  ;;  %v3037_v54 = vrot.slane %v2982_v38, 2 }
 0x4f8   : > { %v5452_v32 = vpack.c.bf16 %v2962_v2, %v2960_v28  ;;  %v6136_v28 = vld [vmem:[#allocation13 + $0x134] sm:$0xf0]  ;;  %v5474_v2 = vld [vmem:[#allocation13 + $0x28] sm:$0xf0] }
 0x4f9   : > { %v3008_v39 = vsel %vm819_vm4, %v3006_v31, %v3007_v58  ;;  %v3010_v42 = vsel %vm819_vm4, %v3007_v58, %v3009_v23  ;;  %v3036_v60 = vsel %vm1542_vm3, %v3034_v62, %v3035_v35  ;;  %v3038_v63 = vsel %vm1542_vm3, %v3035_v35, %v3037_v54  ;;  %v6101_v62 = vld [vmem:[#allocation13 + $0x24] sm:$0xf]  ;;  %v5536_v58 = vld [vmem:[#allocation13 + $0xa0] sm:$0xf]  ;;  %v6118_v23 = vld [vmem:[#allocation13 + $0xa4] sm:$0xf0] }
 0x4fa   : > { %5453 = vmatmul.msk.bf16.gmra.mxu3 %vm7241_vm12, %v5452_v32  ;;  %v3057_v57 = vpack.c.bf16 %v3010_v42, %v3008_v39  ;;  %v3058_v36 = vpack.c.bf16 %v3038_v63, %v3036_v60  ;;  %v5609_v49 = vor.u32 %v6136_v28, %v5608_v48  ;;  %v5473_v31 = vor.u32 %v6102_v18, %v5472_v11  ;;  %v5600_v35 = vld [vmem:[#allocation13 + $0x120] sm:$0xf]  ;;  %v6134_v32 = vld [vmem:[#allocation13 + $0x124] sm:$0xf0]  ;;  %v5464_v39 = vld [vmem:[#allocation13 + $0x10] sm:$0xf] }
 0x4fb   : > { %v5477_v38 = vor.u32 %v6101_v62, %v5474_v2  ;;  %v5537_v54 = vor.u32 %v6118_v23, %v5536_v58  ;;  %v6100_v42 = vld [vmem:[#allocation13 + $0x14] sm:$0xf0]  ;;  %v5601_v60 = vor.u32 %v6134_v32, %v5600_v35 }
 0x4fc   : > { %3307 = vmatmul.bf16.gmra.mxu0 %v3057_v57  ;;  %3336 = vmatmul.bf16.gmra.mxu1 %v3058_v36  ;;  %v5465_v63 = vor.u32 %v6100_v42, %v5464_v39  ;;  %v6099_v57 = vld [vmem:[#allocation13 + $0x14] sm:$0xf]  ;;  %v5466_v36 = vld [vmem:[#allocation13 + $0x18] sm:$0xf0] }
 0x4fd   : > { %3826 = vmatpush.bf16.msra.mxu0 %v5609_v49  ;;  %3769 = vmatpush.bf16.msrb.mxu2 %v5473_v31  ;;  %v5469_v41 = vor.u32 %v6099_v57, %v5466_v36  ;;  %v6127_v57 = vld [vmem:[#allocation13 + $0xf4] sm:$0xf]  ;;  %v5578_v36 = vld [vmem:[#allocation13 + $0xf8] sm:$0xf0] }
 0x4fe   : > { %3856 = vmatpush.bf16.msra.mxu1 %v5477_v38  ;;  %3798 = vmatpush.bf16.msra.mxu3 %v5537_v54  ;;  %v5581_v30 = vor.u32 %v6127_v57, %v5578_v36 }
 0x501   : > { %3827 = vmatpush.bf16.msra.mxu0 %v5601_v60  ;;  %3770 = vmatpush.bf16.msrb.mxu2 %v5465_v63 }
 0x502   : > { %3857 = vmatpush.bf16.msra.mxu1 %v5469_v41  ;;  %3799 = vmatpush.bf16.msra.mxu3 %v5529_v0  ;;  %v5801_v41 = vld [vmem:[#allocation13 + $0x270] sm:$0xf]  ;;  %v6176_v0 = vld [vmem:[#allocation13 + $0x274] sm:$0xf0] }
 0x505   : > { %3828 = vmatpush.bf16.msra.mxu0 %v5593_v50  ;;  %3771 = vmatpush.bf16.msrb.mxu2 %v5457_v55  ;;  %v5802_v50 = vor.u32 %v6176_v0, %v5801_v41 }
 0x506   : > { %3858 = vmatpush.bf16.msra.mxu1 %v5461_v4  ;;  %3800 = vmatpush.bf16.msra.mxu3 %v5521_v26  ;;  %v5642_v4 = vld [vmem:[#allocation13 + $0x178] sm:$0xf0]  ;;  %v6160_v26 = vld [vmem:[#allocation13 + $0x1f4] sm:$0xf0] }
 0x507   : > { %v5645_v8 = vor.u32 %v6143_v61, %v5642_v4 }
 0x509   : > { %3829 = vmatpush.bf16.msra.mxu0 %v5585_v37  ;;  %3880 = vmatpush.bf16.msra.mxu2 %v5581_v30  ;;  %v5570_v37 = vld [vmem:[#allocation13 + $0xe8] sm:$0xf0] }
 0x50a   : > { %4263 = vmatpush.bf16.msrb.mxu1 %v5802_v50  ;;  %3909 = vmatpush.bf16.msrb.mxu3 %v5645_v8  ;;  %v6137_v50 = vld [vmem:[#allocation13 + $0x144] sm:$0xf]  ;;  %v5713_v8 = vld [vmem:[#allocation13 + $0x1c0] sm:$0xf] }
 0x549   : > { %v3293_v6 = vpop.f32.mrf.mxu0  ;;  %v3322_v5 = vpop.f32.mrf.mxu1 }
 0x54d   : > { %v3264_v16 = vpop.f32.mrf.mxu3 }
 0x54e   : > { %v3265_v56 = vadd.f32 %v7281_v7, %v3264_v16  ;;  %v5793_v16 = vld [vmem:[#allocation13 + $0x260] sm:$0xf] }
 0x550   : > { %v3294_v9 = vadd.f32 %v3293_v6, %v3265_v56 }
 0x551   : > { %v3295_v10 = vpop.f32.mrf.mxu0  ;;  %v3324_v25 = vpop.f32.mrf.mxu1 }
 0x552   : > { %v3323_v12 = vadd.f32 %v3322_v5, %v3294_v9  ;;  %v5738_v5 = vor.u32 %v6160_v26, %v5737_v17  ;;  %v6154_v17 = vld [vmem:[#allocation13 + $0x1c4] sm:$0xf0] }
 0x554   : > { %6334 = vtanh.f32 %v3323_v12  ;;  %v6141_v12 = vld [vmem:[#allocation13 + $0x164] sm:$0xf]  ;;  %4234 = vmatpush.bf16.msrb.mxu0 %v5738_v5 }
 0x555   : > { %v3266_v44 = vpop.f32.mrf.mxu3 }
 0x556   : > { %v3267_v13 = vadd.f32 %v7281_v7, %v3266_v44  ;;  %v5634_v44 = vld [vmem:[#allocation13 + $0x168] sm:$0xf0] }
 0x558   : > { %v3296_v14 = vadd.f32 %v3295_v10, %v3267_v13  ;;  %v5573_v10 = vor.u32 %v6125_v52, %v5570_v37  ;;  %v6119_v37 = vld [vmem:[#allocation13 + $0xb4] sm:$0xf] }
 0x559   : > { %v3298_v53 = vpop.f32.mrf.mxu0  ;;  %v3327_v19 = vpop.f32.mrf.mxu1 }
 0x55a   : > { %v3325_v20 = vadd.f32 %v3324_v25, %v3296_v14  ;;  %v6335_v22 = vpop.eup %6334  ;;  %v6174_v25 = vld [vmem:[#allocation13 + $0x264] sm:$0xf0]  ;;  %v5729_v14 = vld [vmem:[#allocation13 + $0x1e0] sm:$0xf]  ;;  %3881 = vmatpush.bf16.msra.mxu2 %v5573_v10 }
 0x55b   : > { %v3358_v29 = vrot.slane %v6335_v22, 7  ;;  %v5794_v13 = vor.u32 %v6174_v25, %v5793_v16  ;;  %v6123_v22 = vld [vmem:[#allocation13 + $0xd4] sm:$0xf]  ;;  %v5546_v16 = vld [vmem:[#allocation13 + $0xb8] sm:$0xf0] }
 0x55c   : > { %6336 = vtanh.f32 %v3325_v20  ;;  %v6158_v20 = vld [vmem:[#allocation13 + $0x1e4] sm:$0xf0] }
 0x55d   : > { %v3269_v24 = vpop.f32.mrf.mxu3  ;;  %v3382_v48 = vsel %vm747_vm0, 0.0, %v3358_v29  ;;  %4264 = vmatpush.bf16.msrb.mxu1 %v5794_v13 }
 0x55e   : > { %v3270_v33 = vadd.f32 %v7281_v7, %v3269_v24  ;;  %v3398_v18 = vrot.slane %v3382_v48, 1  ;;  %v3426_v49 = vrot.slane %v3382_v48, 2  ;;  %v5562_v24 = vld [vmem:[#allocation13 + $0xd8] sm:$0xf0] }
 0x560   : > { %v3299_v45 = vadd.f32 %v3298_v53, %v3270_v33  ;;  %v5565_v33 = vor.u32 %v6123_v22, %v5562_v24  ;;  %v5705_v24 = vld [vmem:[#allocation13 + $0x1b0] sm:$0xf] }
 0x561   : > { %v3300_v47 = vpop.f32.mrf.mxu0  ;;  %v3329_v28 = vpop.f32.mrf.mxu1 }
 0x562   : > { %v6337_v34 = vpop.eup %6336  ;;  %v3328_v27 = vadd.f32 %v3327_v19, %v3299_v45  ;;  %v5637_v19 = vor.u32 %v6141_v12, %v5634_v44  ;;  %v5785_v45 = vld [vmem:[#allocation13 + $0x250] sm:$0xf]  ;;  %3882 = vmatpush.bf16.msra.mxu2 %v5565_v33  ;;  %v6168_v12 = vld [vmem:[#allocation13 + $0x234] sm:$0xf0]  ;;  %v6117_v33 = vld [vmem:[#allocation13 + $0xa4] sm:$0xf] }
 0x563   : > { %v3359_v11 = vrot.slane %v6337_v34, 7 }
 0x564   : > { %6338 = vtanh.f32 %v3328_v27  ;;  %3910 = vmatpush.bf16.msrb.mxu3 %v5637_v19  ;;  %v6135_v19 = vld [vmem:[#allocation13 + $0x134] sm:$0xf] }
 0x565   : > { %v3360_v31 = vsel %vm747_vm0, %v3358_v29, %v3359_v11  ;;  %v3386_v62 = vsel %vm747_vm0, %v3359_v11, 0.0  ;;  %v3271_v2 = vpop.f32.mrf.mxu3  ;;  %v6139_v11 = vld [vmem:[#allocation13 + $0x154] sm:$0xf] }
 0x566   : > { %v3399_v38 = vrot.slane %v3360_v31, 1  ;;  %v3401_v58 = vrot.slane %v3386_v62, 1  ;;  %v3427_v23 = vrot.slane %v3360_v31, 2  ;;  %v3429_v35 = vrot.slane %v3386_v62, 2 }
 0x567   : > { %v7289_v54 = vpack.c.bf16 %v3360_v31, %v3358_v29  ;;  %v3272_v32 = vadd.f32 %v7281_v7, %v3271_v2  ;;  %v5730_v29 = vor.u32 %v6158_v20, %v5729_v14  ;;  %v5714_v14 = vor.u32 %v6154_v17, %v5713_v8  ;;  %v5610_v20 = vld [vmem:[#allocation13 + $0x138] sm:$0xf0]  ;;  %v6113_v17 = vld [vmem:[#allocation13 + $0x84] sm:$0xf] }
 0x568   : > { %v3402_v39 = vsel %vm819_vm4, %v3399_v38, %v3401_v58  ;;  %v3430_v42 = vsel %vm1542_vm3, %v3427_v23, %v3429_v35  ;;  %v3400_v60 = vsel %vm819_vm4, %v3398_v18, %v3399_v38  ;;  %v3428_v63 = vsel %vm1542_vm3, %v3426_v49, %v3427_v23  ;;  %v5626_v18 = vld [vmem:[#allocation13 + $0x158] sm:$0xf0]  ;;  %v5721_v49 = vld [vmem:[#allocation13 + $0x1d0] sm:$0xf]  ;;  %v6156_v58 = vld [vmem:[#allocation13 + $0x1d4] sm:$0xf0] }
 0x569   : > { %v3301_v1 = vadd.f32 %v3300_v47, %v3272_v32  ;;  %5649 = vmatmul.msk.bf16.vlgmr.msrb.gmra.mxu2 %vm7241_vm12, %v7289_v54  ;;  %5665 = vmatmul.msk.bf16.vlgmr.msra.gmra.mxu1 %vm7241_vm12, %v7289_v54  ;;  %v7302_v21 = vpack.c.bf16 %v3402_v39, %v3400_v60  ;;  %v7304_v59 = vpack.c.bf16 %v3430_v42, %v3428_v63  ;;  %v3303_v51 = vpop.f32.mrf.mxu0  ;;  %v3332_v40 = vpop.f32.mrf.mxu1  ;;  %v6172_v47 = vld [vmem:[#allocation13 + $0x254] sm:$0xf0]  ;;  %v6121_v23 = vld [vmem:[#allocation13 + $0xc4] sm:$0xf]  ;;  %v5554_v39 = vld [vmem:[#allocation13 + $0xc8] sm:$0xf0] }
 0x56a   : > { %v6339_v3 = vpop.eup %6338  ;;  %v5786_v27 = vor.u32 %v6172_v47, %v5785_v45  ;;  %4235 = vmatpush.bf16.msrb.mxu0 %v5730_v29  ;;  %v5629_v38 = vor.u32 %v6139_v11, %v5626_v18  ;;  %v5722_v32 = vor.u32 %v6156_v58, %v5721_v49  ;;  %v5777_v42 = vld [vmem:[#allocation13 + $0x240] sm:$0xf]  ;;  %v6170_v60 = vld [vmem:[#allocation13 + $0x244] sm:$0xf0]  ;;  %v6152_v29 = vld [vmem:[#allocation13 + $0x1b4] sm:$0xf0]  ;;  %v5613_v47 = vor.u32 %v6135_v19, %v5610_v20 }
 0x56b   : > { %v7306_v55 = vrot.slane %v6339_v3, 7  ;;  %v3330_v15 = vadd.f32 %v3329_v28, %v3301_v1  ;;  %3801 = vmatmul.bf16.vlgmr.msra.gmra.mxu3 %v7302_v21  ;;  %3830 = vmatmul.bf16.vlgmr.msra.gmra.mxu0 %v7304_v59  ;;  %v5557_v1 = vor.u32 %v6121_v23, %v5554_v39  ;;  %v5778_v4 = vor.u32 %v6170_v60, %v5777_v42  ;;  %v5697_v58 = vld [vmem:[#allocation13 + $0x1a0] sm:$0xf]  ;;  %v6150_v23 = vld [vmem:[#allocation13 + $0x1a4] sm:$0xf0] }
 0x56c   : > { %4265 = vmatpush.bf16.msrb.mxu1 %v5786_v27  ;;  %3911 = vmatpush.bf16.msrb.mxu3 %v5629_v38  ;;  %v5761_v27 = vld [vmem:[#allocation13 + $0x220] sm:$0xf]  ;;  %v5602_v38 = vld [vmem:[#allocation13 + $0x128] sm:$0xf0]  ;;  %v6115_v39 = vld [vmem:[#allocation13 + $0x94] sm:$0xf] }
 0x56d   : > { %6340 = vtanh.f32 %v3330_v15  ;;  %v3274_v6 = vpop.f32.mrf.mxu3  ;;  %v7312_v56 = vsel %vm747_vm0, 0.0, %v7306_v55  ;;  %3883 = vmatpush.bf16.msra.mxu2 %v5557_v1  ;;  %v5530_v42 = vld [vmem:[#allocation13 + $0x98] sm:$0xf0]  ;;  %v5753_v60 = vld [vmem:[#allocation13 + $0x210] sm:$0xf] }
 0x56e   : > { %v3275_v9 = vadd.f32 %v7281_v7, %v3274_v6  ;;  %v3403_v34 = vrot.slane %v7312_v56, 1  ;;  %v3431_v31 = vrot.slane %v7312_v56, 2  ;;  %4236 = vmatpush.bf16.msrb.mxu0 %v5722_v32  ;;  %v5769_v56 = vld [vmem:[#allocation13 + $0x230] sm:$0xf]  ;;  %v5594_v1 = vld [vmem:[#allocation13 + $0x118] sm:$0xf0] }
 0x56f   : > { %v5770_v22 = vor.u32 %v6168_v12, %v5769_v56 }
 0x570   : > { %v3304_v53 = vadd.f32 %v3303_v51, %v3275_v9  ;;  %4266 = vmatpush.bf16.msrb.mxu1 %v5778_v4 }
 0x571   : > { %v3305_v2 = vpop.f32.mrf.mxu0  ;;  %v3334_v41 = vpop.f32.mrf.mxu1 }
 0x572   : > { %v3333_v48 = vadd.f32 %v3332_v40, %v3304_v53  ;;  %v5618_v40 = vld [vmem:[#allocation13 + $0x148] sm:$0xf0]  ;;  %v5549_v53 = vor.u32 %v6119_v37, %v5546_v16  ;;  %4237 = vmatpush.bf16.msrb.mxu0 %v5714_v14 }
 0x573   : > { %v6341_v28 = vpop.eup %6340  ;;  %v5621_v13 = vor.u32 %v6137_v50, %v5618_v40  ;;  %v6148_v50 = vld [vmem:[#allocation13 + $0x194] sm:$0xf0] }
 0x574   : > { %v3362_v62 = vrot.slane %v6341_v28, 7  ;;  %6342 = vtanh.f32 %v3333_v48  ;;  %v5538_v48 = vld [vmem:[#allocation13 + $0xa8] sm:$0xf0]  ;;  %3884 = vmatpush.bf16.msra.mxu2 %v5549_v53  ;;  %4267 = vmatpush.bf16.msrb.mxu1 %v5770_v22 }
 0x575   : > { %v3276_v35 = vpop.f32.mrf.mxu3  ;;  %3912 = vmatpush.bf16.msrb.mxu3 %v5621_v13  ;;  %v5541_v49 = vor.u32 %v6117_v33, %v5538_v48  ;;  %v5681_v33 = vld [vmem:[#allocation13 + $0x180] sm:$0xf] }
 0x576   : > { %v3363_v63 = vsel %vm747_vm0, %v7306_v55, %v3362_v62  ;;  %v3387_v57 = vsel %vm747_vm0, %v3362_v62, 0.0  ;;  %v3277_v36 = vadd.f32 %v7281_v7, %v3276_v35  ;;  %v6133_v62 = vld [vmem:[#allocation13 + $0x124] sm:$0xf] }
 0x577   : > { %v3404_v0 = vrot.slane %v3363_v63, 1  ;;  %v3406_v3 = vrot.slane %v3387_v57, 1  ;;  %v3432_v51 = vrot.slane %v3363_v63, 2  ;;  %v3434_v30 = vrot.slane %v3387_v57, 2 }
 0x578   : > { %v3306_v15 = vadd.f32 %v3305_v2, %v3277_v36  ;;  %v7322_v61 = vpack.c.bf16 %v3363_v63, %v7306_v55  ;;  %v5605_v63 = vor.u32 %v6133_v62, %v5602_v38  ;;  %v5698_v57 = vor.u32 %v6150_v23, %v5697_v58  ;;  %v6164_v36 = vld [vmem:[#allocation13 + $0x214] sm:$0xf0]  ;;  %3885 = vmatpush.bf16.msra.mxu2 %v5541_v49 }
 0x579   : > { %v3405_v26 = vsel %vm819_vm4, %v3403_v34, %v3404_v0  ;;  %v3407_v52 = vsel %vm819_vm4, %v3404_v0, %v3406_v3  ;;  %v3433_v6 = vsel %vm1542_vm3, %v3431_v31, %v3432_v51  ;;  %v3435_v5 = vsel %vm1542_vm3, %v3432_v51, %v3434_v30  ;;  %v3308_v18 = vpop.f32.mrf.mxu0  ;;  %v6166_v31 = vld [vmem:[#allocation13 + $0x224] sm:$0xf0]  ;;  %v3337_v32 = vpop.f32.mrf.mxu1  ;;  %3913 = vmatpush.bf16.msrb.mxu3 %v5613_v47  ;;  %v5689_v30 = vld [vmem:[#allocation13 + $0x190] sm:$0xf] }
 0x57a   : > { %v6343_v9 = vpop.eup %6342  ;;  %5653 = vmatmul.msk.bf16.gmra.mxu2 %vm7241_vm12, %v7322_v61  ;;  %5669 = vmatmul.msk.bf16.gmra.mxu1 %vm7241_vm12, %v7322_v61  ;;  %v3335_v55 = vadd.f32 %v3334_v41, %v3306_v15  ;;  %v7334_v10 = vpack.c.bf16 %v3407_v52, %v3405_v26  ;;  %v7336_v25 = vpack.c.bf16 %v3435_v5, %v3433_v6  ;;  %v6131_v41 = vld [vmem:[#allocation13 + $0x114] sm:$0xf]  ;;  %v5522_v52 = vld [vmem:[#allocation13 + $0x88] sm:$0xf0]  ;;  %v5745_v6 = vld [vmem:[#allocation13 + $0x200] sm:$0xf] }
 0x57b   : > { %v7338_v44 = vrot.slane %v6343_v9, 7  ;;  %v5706_v34 = vor.u32 %v6152_v29, %v5705_v24  ;;  %v5762_v2 = vor.u32 %v6166_v31, %v5761_v27  ;;  %v5533_v51 = vor.u32 %v6115_v39, %v5530_v42  ;;  %v6162_v5 = vld [vmem:[#allocation13 + $0x204] sm:$0xf0]  ;;  %v6129_v24 = vld [vmem:[#allocation13 + $0x104] sm:$0xf] }
 0x57c   : > { %6344 = vtanh.f32 %v3335_v55  ;;  %3806 = vmatmul.bf16.gmra.mxu3 %v7334_v10  ;;  %3835 = vmatmul.bf16.gmra.mxu0 %v7336_v25  ;;  %v5754_v8 = vor.u32 %v6164_v36, %v5753_v60  ;;  %v5597_v26 = vor.u32 %v6131_v41, %v5594_v1  ;;  %v5690_v9 = vor.u32 %v6148_v50, %v5689_v30  ;;  %v5586_v29 = vld [vmem:[#allocation13 + $0x108] sm:$0xf0] }
 0x57d   : > { %v3279_v45 = vpop.f32.mrf.mxu3  ;;  %v7344_v28 = vsel %vm747_vm0, 0.0, %v7338_v44  ;;  %4238 = vmatpush.bf16.msrb.mxu0 %v5706_v34  ;;  %4268 = vmatpush.bf16.msrb.mxu1 %v5762_v2  ;;  %v5525_v20 = vor.u32 %v6113_v17, %v5522_v52  ;;  %v5746_v22 = vor.u32 %v6162_v5, %v5745_v6  ;;  %v5589_v49 = vor.u32 %v6129_v24, %v5586_v29  ;;  %v5865_v17 = vld [vmem:[#allocation13 + $0x2f0] sm:$0xf]  ;;  %v6191_v52 = vld [vmem:[#allocation13 + $0x2f4] sm:$0xf] }
 0x57e   : > { %v3280_v11 = vadd.f32 %v7281_v7, %v3279_v45  ;;  %v3408_v15 = vrot.slane %v7344_v28, 1  ;;  %v3436_v4 = vrot.slane %v7344_v28, 2  ;;  %3914 = vmatpush.bf16.msrb.mxu3 %v5605_v63  ;;  %3886 = vmatpush.bf16.msra.mxu2 %v5533_v51  ;;  %v6146_v28 = vld [vmem:[#allocation13 + $0x184] sm:$0xf0]  ;;  %v5867_v5 = vld [vmem:[#allocation13 + $0x2f8] sm:$0xf0] }
 0x57f   : > { %v5682_v31 = vor.u32 %v6146_v28, %v5681_v33  ;;  %v6173_v33 = vld [vmem:[#allocation13 + $0x264] sm:$0xf]  ;;  %v5851_v28 = vld [vmem:[#allocation13 + $0x2d8] sm:$0xf0] }
 0x580   : > { %v3309_v35 = vadd.f32 %v3308_v18, %v3280_v11 }
 0x581   : > { %4239 = vmatpush.bf16.msrb.mxu0 %v5698_v57  ;;  %4269 = vmatpush.bf16.msrb.mxu1 %v5754_v8  ;;  %v3310_v45 = vpop.f32.mrf.mxu0  ;;  %v3339_v18 = vpop.f32.mrf.mxu1 }
 0x582   : > { %v6345_v0 = vpop.eup %6344  ;;  %v3338_v3 = vadd.f32 %v3337_v32, %v3309_v35  ;;  %3915 = vmatpush.bf16.msrb.mxu3 %v5597_v26  ;;  %3887 = vmatpush.bf16.msra.mxu2 %v5525_v20  ;;  %v6192_v26 = vld [vmem:[#allocation13 + $0x2f4] sm:$0xf0]  ;;  %v6189_v20 = vld [vmem:[#allocation13 + $0x2e4] sm:$0xf] }
 0x583   : > { %v3365_v40 = vrot.slane %v6345_v0, 7  ;;  %v5866_v6 = vor.u32 %v6192_v26, %v5865_v17  ;;  %v6151_v26 = vld [vmem:[#allocation13 + $0x1b4] sm:$0xf] }
 0x584   : > { %6346 = vtanh.f32 %v3338_v3 }
 0x585   : > { %v3366_v37 = vsel %vm747_vm0, %v7338_v44, %v3365_v40  ;;  %v3388_v16 = vsel %vm747_vm0, %v3365_v40, 0.0  ;;  %v3281_v56 = vpop.f32.mrf.mxu3  ;;  %4240 = vmatpush.bf16.msrb.mxu0 %v5690_v9  ;;  %4270 = vmatpush.bf16.msrb.mxu1 %v5746_v22  ;;  %v5739_v40 = vld [vmem:[#allocation13 + $0x1f8] sm:$0xf0]  ;;  %v6157_v9 = vld [vmem:[#allocation13 + $0x1e4] sm:$0xf] }
 0x586   : > { %v3409_v55 = vrot.slane %v3366_v37, 1  ;;  %v3411_v12 = vrot.slane %v3388_v16, 1  ;;  %v3437_v13 = vrot.slane %v3366_v37, 2  ;;  %v3439_v14 = vrot.slane %v3388_v16, 2  ;;  %3916 = vmatpush.bf16.msrb.mxu3 %v5589_v49  ;;  %4292 = vmatpush.bf16.msrb.mxu2 %v5866_v6  ;;  %v6175_v16 = vld [vmem:[#allocation13 + $0x274] sm:$0xf] }
 0x587   : > { %v3282_v53 = vadd.f32 %v7281_v7, %v3281_v56  ;;  %v7354_v19 = vpack.c.bf16 %v3366_v37, %v7338_v44  ;;  %v7395_v37 = vor.u32 %v6191_v52, %v5867_v5  ;;  %v5803_v56 = vld [vmem:[#allocation13 + $0x278] sm:$0xf0]  ;;  %v5859_v22 = vld [vmem:[#allocation13 + $0x2e8] sm:$0xf0]  ;;  %v6167_v6 = vld [vmem:[#allocation13 + $0x234] sm:$0xf] }
 0x588   : > { %v3410_v47 = vsel %vm819_vm4, %v3408_v15, %v3409_v55  ;;  %v3412_v34 = vsel %vm819_vm4, %v3409_v55, %v3411_v12  ;;  %v3438_v48 = vsel %vm1542_vm3, %v3436_v4, %v3437_v13  ;;  %v3440_v27 = vsel %vm1542_vm3, %v3437_v13, %v3439_v14  ;;  %v6159_v4 = vld [vmem:[#allocation13 + $0x1f4] sm:$0xf]  ;;  %v5731_v55 = vld [vmem:[#allocation13 + $0x1e8] sm:$0xf0]  ;;  %v5857_v13 = vld [vmem:[#allocation13 + $0x2e0] sm:$0xf] }
 0x589   : > { %v3311_v7 = vadd.f32 %v3310_v45, %v3282_v53  ;;  %v7360_v11 = vpack.c.bf16 %v3412_v34, %v3410_v47  ;;  %v7362_v44 = vpack.c.bf16 %v3440_v27, %v3438_v48  ;;  %4241 = vmatpush.bf16.msrb.mxu0 %v5682_v31  ;;  %v5742_v8 = vor.u32 %v6159_v4, %v5739_v40  ;;  %v6190_v53 = vld [vmem:[#allocation13 + $0x2e4] sm:$0xf0]  ;;  %v5795_v45 = vld [vmem:[#allocation13 + $0x268] sm:$0xf0]  ;;  %v5849_v47 = vld [vmem:[#allocation13 + $0x2d0] sm:$0xf] }
 0x58a   : > { %5657 = vmatmul.msk.bf16.gmra.mxu2 %vm7241_vm12, %v7354_v19  ;;  %5673 = vmatmul.msk.bf16.gmra.mxu1 %vm7241_vm12, %v7354_v19  ;;  %v6347_v62 = vpop.eup %6346  ;;  %v5806_v12 = vor.u32 %v6175_v16, %v5803_v56  ;;  %v5734_v14 = vor.u32 %v6157_v9, %v5731_v55  ;;  %v5858_v24 = vor.u32 %v6190_v53, %v5857_v13  ;;  %v6188_v48 = vld [vmem:[#allocation13 + $0x2d4] sm:$0xf0]  ;;  %v6187_v27 = vld [vmem:[#allocation13 + $0x2d4] sm:$0xf]  ;;  %v5723_v49 = vld [vmem:[#allocation13 + $0x1d8] sm:$0xf0] }
 0x58b   : > { %v3340_v2 = vadd.f32 %v3339_v18, %v3311_v7  ;;  %v3367_v38 = vrot.slane %v6347_v62, 7  ;;  %4321 = vmatpush.bf16.msra.mxu3 %v5742_v8  ;;  %4379 = vmatpush.bf16.msra.mxu1 %v7395_v37  ;;  %v7402_v29 = vor.u32 %v6189_v20, %v5859_v22  ;;  %v5798_v34 = vor.u32 %v6173_v33, %v5795_v45  ;;  %v6155_v18 = vld [vmem:[#allocation13 + $0x1d4] sm:$0xf]  ;;  %v5835_v8 = vld [vmem:[#allocation13 + $0x2b8] sm:$0xf0] }
 0x58c   : > { %3811 = vmatmul.bf16.gmra.mxu3 %v7360_v11  ;;  %3840 = vmatmul.bf16.gmra.mxu0 %v7362_v44  ;;  %v5850_v7 = vor.u32 %v6188_v48, %v5849_v47  ;;  %v6171_v31 = vld [vmem:[#allocation13 + $0x254] sm:$0xf]  ;;  %v7405_v62 = vor.u32 %v6187_v27, %v5851_v28  ;;  %v5707_v52 = vld [vmem:[#allocation13 + $0x1b8] sm:$0xf0]  ;;  %v5825_v56 = vld [vmem:[#allocation13 + $0x2a0] sm:$0xf] }
 0x58d   : > { %6348 = vtanh.f32 %v3340_v2  ;;  %v3385_v23 = vsel %vm747_vm0, 0.0, %v3367_v38  ;;  %4350 = vmatpush.bf16.msra.mxu0 %v5806_v12  ;;  %4293 = vmatpush.bf16.msrb.mxu2 %v5858_v24  ;;  %v5726_v2 = vor.u32 %v6155_v18, %v5723_v49  ;;  %v6183_v40 = vld [vmem:[#allocation13 + $0x2b4] sm:$0xf]  ;;  %v5710_v5 = vor.u32 %v6151_v26, %v5707_v52  ;;  %v5771_v16 = vld [vmem:[#allocation13 + $0x238] sm:$0xf0] }
 0x58e   : > { %v3413_v32 = vrot.slane %v3385_v23, 1  ;;  %v3441_v39 = vrot.slane %v3385_v23, 2  ;;  %v6186_v23 = vld [vmem:[#allocation13 + $0x2c4] sm:$0xf0]  ;;  %v7413_v17 = vor.u32 %v6183_v40, %v5835_v8  ;;  %v5774_v55 = vor.u32 %v6167_v6, %v5771_v16  ;;  %v6181_v13 = vld [vmem:[#allocation13 + $0x2a4] sm:$0xf] }
 0x58f   : > { %4322 = vmatpush.bf16.msra.mxu3 %v5734_v14  ;;  %4380 = vmatpush.bf16.msra.mxu1 %v7402_v29  ;;  %v6182_v9 = vld [vmem:[#allocation13 + $0x2a4] sm:$0xf0]  ;;  %v5827_v14 = vld [vmem:[#allocation13 + $0x2a8] sm:$0xf0]  ;;  %v6149_v53 = vld [vmem:[#allocation13 + $0x1a4] sm:$0xf] }
 0x590   : > { %v5826_v12 = vor.u32 %v6182_v9, %v5825_v56  ;;  %v5830_v20 = vor.u32 %v6181_v13, %v5827_v14  ;;  %v5699_v22 = vld [vmem:[#allocation13 + $0x1a8] sm:$0xf0]  ;;  %v6165_v24 = vld [vmem:[#allocation13 + $0x224] sm:$0xf]  ;;  %v6180_v48 = vld [vmem:[#allocation13 + $0x294] sm:$0xf0] }
 0x591   : > { %4351 = vmatpush.bf16.msra.mxu0 %v5798_v34  ;;  %4294 = vmatpush.bf16.msrb.mxu2 %v5850_v7  ;;  %v5763_v33 = vld [vmem:[#allocation13 + $0x228] sm:$0xf0]  ;;  %v5702_v45 = vor.u32 %v6149_v53, %v5699_v22  ;;  %v5817_v34 = vld [vmem:[#allocation13 + $0x290] sm:$0xf]  ;;  %v6179_v27 = vld [vmem:[#allocation13 + $0x294] sm:$0xf] }
 0x592   : > { %v5766_v47 = vor.u32 %v6165_v24, %v5763_v33  ;;  %v5819_v28 = vld [vmem:[#allocation13 + $0x298] sm:$0xf0]  ;;  %v6147_v7 = vld [vmem:[#allocation13 + $0x194] sm:$0xf]  ;;  %v5818_v49 = vor.u32 %v6180_v48, %v5817_v34  ;;  %v3466_v52 = vld [vmem:[%s7001_s13] sm:$0x1] }
 0x593   : > { %v6349_v58 = vpop.eup %6348  ;;  %4323 = vmatpush.bf16.msra.mxu3 %v5726_v2  ;;  %4381 = vmatpush.bf16.msra.mxu1 %v7405_v62  ;;  %v5691_v18 = vld [vmem:[#allocation13 + $0x198] sm:$0xf0]  ;;  %v6163_v2 = vld [vmem:[#allocation13 + $0x214] sm:$0xf]  ;;  %v3467_v24 = vld [vmem:[%s7001_s13 + $0x1] sm:$0x1] }
 0x594   : > { %v3368_v35 = vrot.slane %v6349_v58, 7  ;;  %v5841_v58 = vld [vmem:[#allocation13 + $0x2c0] sm:$0xf] }
 0x596   : > { %v3369_v42 = vsel %vm747_vm0, %v3367_v38, %v3368_v35  ;;  %v3389_v60 = vsel %vm747_vm0, %v3368_v35, 0.0  ;;  %vm4408_vm0 = vcmp.eq.s32.totalorder %v3466_v52, 1 }
 0x597   : > { %v3414_v63 = vrot.slane %v3369_v42, 1  ;;  %v3416_v57 = vrot.slane %v3389_v60, 1  ;;  %v3442_v36 = vrot.slane %v3369_v42, 2  ;;  %v3444_v41 = vrot.slane %v3389_v60, 2 }
 0x598   : > { %v7375_v1 = vpack.c.bf16 %v3369_v42, %v3367_v38  ;;  %v5787_v38 = vld [vmem:[#allocation13 + $0x258] sm:$0xf0]  ;;  %v5842_v42 = vor.u32 %v6186_v23, %v5841_v58  ;;  %v5694_v58 = vor.u32 %v6147_v7, %v5691_v18 }
 0x599   : > { %v3415_v0 = vsel %vm819_vm4, %v3413_v32, %v3414_v63  ;;  %v3417_v3 = vsel %vm819_vm4, %v3414_v63, %v3416_v57  ;;  %v3443_v51 = vsel %vm1542_vm3, %v3441_v39, %v3442_v36  ;;  %v3445_v30 = vsel %vm1542_vm3, %v3442_v36, %v3444_v41  ;;  %v6185_v32 = vld [vmem:[#allocation13 + $0x2c4] sm:$0xf]  ;;  %v5843_v39 = vld [vmem:[#allocation13 + $0x2c8] sm:$0xf0] }
 0x59a   : > { %5661 = vmatmul.msk.bf16.gmra.mxu2 %vm7241_vm12, %v7375_v1  ;;  %5677 = vmatmul.msk.bf16.gmra.mxu1 %vm7241_vm12, %v7375_v1  ;;  %v7387_v50 = vpack.c.bf16 %v3417_v3, %v3415_v0  ;;  %v7389_v15 = vpack.c.bf16 %v3445_v30, %v3443_v51  ;;  %v5790_v35 = vor.u32 %v6171_v31, %v5787_v38  ;;  %v6153_v63 = vld [vmem:[#allocation13 + $0x1c4] sm:$0xf]  ;;  %v5715_v57 = vld [vmem:[#allocation13 + $0x1c8] sm:$0xf0]  ;;  %v5833_v3 = vld [vmem:[#allocation13 + $0x2b0] sm:$0xf] }
 0x59b   : > { %v7408_v60 = vor.u32 %v6185_v32, %v5843_v39  ;;  %v6169_v36 = vld [vmem:[#allocation13 + $0x244] sm:$0xf]  ;;  %4295 = vmatpush.bf16.msrb.mxu2 %v5842_v42  ;;  %v5718_v41 = vor.u32 %v6153_v63, %v5715_v57  ;;  %v5779_v0 = vld [vmem:[#allocation13 + $0x248] sm:$0xf0]  ;;  %v6184_v51 = vld [vmem:[#allocation13 + $0x2b4] sm:$0xf0]  ;;  %v5822_v31 = vor.u32 %v6179_v27, %v5819_v28 }
 0x59c   : > { %3816 = vmatmul.bf16.gmra.mxu3 %v7387_v50  ;;  %3845 = vmatmul.bf16.gmra.mxu0 %v7389_v15  ;;  %v5782_v30 = vor.u32 %v6169_v36, %v5779_v0  ;;  %v5834_v4 = vor.u32 %v6184_v51, %v5833_v3  ;;  %v5755_v38 = vld [vmem:[#allocation13 + $0x218] sm:$0xf0]  ;;  %v6178_v32 = vld [vmem:[#allocation13 + $0x284] sm:$0xf0]  ;;  %v6177_v39 = vld [vmem:[#allocation13 + $0x284] sm:$0xf] }
 0x59d   : > { %4352 = vmatpush.bf16.msra.mxu0 %v5790_v35  ;;  %4382 = vmatpush.bf16.msra.mxu1 %v7408_v60  ;;  %v5758_v23 = vor.u32 %v6163_v2, %v5755_v38  ;;  %v5809_v35 = vld [vmem:[#allocation13 + $0x280] sm:$0xf]  ;;  %v5811_v63 = vld [vmem:[#allocation13 + $0x288] sm:$0xf0]  ;;  %v6145_v36 = vld [vmem:[#allocation13 + $0x184] sm:$0xf] }
 0x59e   : > { %4324 = vmatpush.bf16.msra.mxu3 %v5718_v41  ;;  %v5810_v42 = vor.u32 %v6178_v32, %v5809_v35  ;;  %v5814_v57 = vor.u32 %v6177_v39, %v5811_v63  ;;  %v5683_v41 = vld [vmem:[#allocation13 + $0x188] sm:$0xf0]  ;;  %v6161_v0 = vld [vmem:[#allocation13 + $0x204] sm:$0xf]  ;;  %vm4409_vm4 = vcmp.eq.s32.totalorder %v3467_v24, 1 }
 0x59f   : > { %4296 = vmatpush.bf16.msrb.mxu2 %v5834_v4  ;;  %v5686_v3 = vor.u32 %v6145_v36, %v5683_v41  ;;  %v5747_v51 = vld [vmem:[#allocation13 + $0x208] sm:$0xf0] }
 0x5a1   : > { %4353 = vmatpush.bf16.msra.mxu0 %v5782_v30  ;;  %4383 = vmatpush.bf16.msra.mxu1 %v7413_v17  ;;  %v5750_v30 = vor.u32 %v6161_v0, %v5747_v51 }
 0x5a2   : > { %4325 = vmatpush.bf16.msra.mxu3 %v5710_v5 }
 0x5a3   : > { %4297 = vmatpush.bf16.msrb.mxu2 %v5826_v12 }
 0x5a5   : > { %4354 = vmatpush.bf16.msra.mxu0 %v5774_v55  ;;  %4384 = vmatpush.bf16.msra.mxu1 %v5830_v20 }
 0x5a6   : > { %4326 = vmatpush.bf16.msra.mxu3 %v5702_v45 }
 0x5a7   : > { %4298 = vmatpush.bf16.msrb.mxu2 %v5818_v49 }
 0x5a9   : > { %4355 = vmatpush.bf16.msra.mxu0 %v5766_v47  ;;  %4385 = vmatpush.bf16.msra.mxu1 %v5822_v31  ;;  %v4413_v47 = vsel %vm4409_vm4, 1, %v6650_v46 }
 0x5aa   : > { %3888 = vmatmul.bf16.vlgmr.msra.gmra.mxu2 %v7302_v21  ;;  %4271 = vmatmul.bf16.vlgmr.msrb.gmra.mxu1 %v7302_v21 }
 0x5ab   : > { %4327 = vmatpush.bf16.msra.mxu3 %v5694_v58  ;;  %4299 = vmatpush.bf16.msrb.mxu2 %v5810_v42 }
 0x5ac   : > { %3917 = vmatmul.bf16.vlgmr.msrb.gmra.mxu3 %v7304_v59  ;;  %5874 = vmatmul.msk.bf16.vlgmr.msrb.gmra.mxu0 %vm7241_vm12, %v7289_v54 }
 0x5ad   : > { %4356 = vmatpush.bf16.msra.mxu0 %v5758_v23  ;;  %4386 = vmatpush.bf16.msra.mxu1 %v5814_v57 }
 0x5af   : > { %4328 = vmatpush.bf16.msra.mxu3 %v5686_v3 }
 0x5b1   : > { %4357 = vmatpush.bf16.msra.mxu0 %v5750_v30 }
 0x5b3   : > { %6203 = vmatpush.bf16.msrb.mxu3 %v7395_v37 }
 0x5b7   : > { %6204 = vmatpush.bf16.msrb.mxu3 %v7402_v29  ;;  %v7442_v29 = vld [vmem:[%s7748_s29] sm:$0x3] }
 0x5ba   : > { %3893 = vmatmul.bf16.gmra.mxu2 %v7334_v10  ;;  %4276 = vmatmul.bf16.gmra.mxu1 %v7334_v10 }
 0x5bb   : > { %6205 = vmatpush.bf16.msrb.mxu3 %v7405_v62 }
 0x5bc   : > { %3922 = vmatmul.bf16.gmra.mxu3 %v7336_v25  ;;  %5878 = vmatmul.msk.bf16.gmra.mxu0 %vm7241_vm12, %v7322_v61 }
 0x5bf   : > { %6206 = vmatpush.bf16.msrb.mxu3 %v7408_v60  ;;  %v7445_v60 = vperm.slane %v7442_v29, 0 }
 0x5c3   : > { %6207 = vmatpush.bf16.msrb.mxu3 %v7413_v17 }
 0x5c7   : > { %6208 = vmatpush.bf16.msrb.mxu3 %v5830_v20 }
 0x5ca   : > { %3898 = vmatmul.bf16.gmra.mxu2 %v7360_v11  ;;  %4281 = vmatmul.bf16.gmra.mxu1 %v7360_v11 }
 0x5cb   : > { %6209 = vmatpush.bf16.msrb.mxu3 %v5822_v31 }
 0x5cc   : > { %3927 = vmatmul.bf16.gmra.mxu3 %v7362_v44  ;;  %5882 = vmatmul.msk.bf16.gmra.mxu0 %vm7241_vm12, %v7354_v19 }
 0x5cf   : > { %6210 = vmatpush.bf16.msrb.mxu3 %v5814_v57  ;;  %v3521_v57 = vperm.slane %v7442_v29, 1 }
 0x5da   : > { %3903 = vmatmul.bf16.gmra.mxu2 %v7387_v50  ;;  %4286 = vmatmul.bf16.gmra.mxu1 %v7387_v50 }
 0x5dc   : > { %3932 = vmatmul.bf16.gmra.mxu3 %v7389_v15  ;;  %5886 = vmatmul.msk.bf16.gmra.mxu0 %vm7241_vm12, %v7375_v1 }
 0x5e6   : > { %v7437_v37 = vpop.f32.mrf.mxu1 }
 0x5e7   : > { %v3861_v29 = vadd.f32 %v7437_v37, %v3521_v57 }
 0x5e8   : > { %v3831_v62 = vpop.f32.mrf.mxu0 }
 0x5ea   : > { %4300 = vmatmul.bf16.vlgmr.msrb.gmra.mxu2 %v7304_v59  ;;  %4387 = vmatmul.bf16.vlgmr.msra.gmra.mxu1 %v7304_v59  ;;  %v4412_v59 = vsel %vm4408_vm0, 1, %v6650_v46 }
 0x5eb   : > { %v4416_v16 = vperm.slane %v4412_v59, 0 }
 0x5ec   : > { %v3773_v4 = vpop.f32.mrf.mxu2  ;;  %5890 = vmatmul.msk.bf16.vlgmr.msra.gmra.mxu3 %vm7241_vm12, %v7289_v54  ;;  %4358 = vmatmul.bf16.vlgmr.msra.gmra.mxu0 %v7302_v21 }
 0x5ed   : > { %v3774_v40 = vadd.f32 %v3773_v4, %v7445_v60  ;;  %4421 = vperm.xlu2 %6328, %v4416_v16  }
 0x5ee   : > { %v7454_v8 = vpop.f32.mrf.mxu1  ;;  %v3802_v17 = vpop.f32.mrf.mxu3 }
 0x5ef   : > { %v3803_v26 = vadd.f32 %v3802_v17, %v3774_v40 }
 0x5f0   : > { %v3833_v6 = vpop.f32.mrf.mxu0 }
 0x5f1   : > { %v7457_v5 = vadd.f32 %v3831_v62, %v3803_v26 }
 0x5f4   : > { %v3775_v56 = vpop.f32.mrf.mxu2 }
 0x5f5   : > { %v3776_v54 = vadd.f32 %v3775_v56, %v7445_v60 }
 0x5f6   : > { %v3804_v21 = vpop.f32.mrf.mxu3 }
 0x5f7   : > { %v7461_v9 = vpop.f32.mrf.mxu1  ;;  %v3805_v55 = vadd.f32 %v3804_v21, %v3776_v54 }
 0x5f9   : > { %v7463_v12 = vadd.f32 %v3833_v6, %v3805_v55  ;;  %v3836_v13 = vpop.f32.mrf.mxu0 }
 0x5fa   : > { %4305 = vmatmul.bf16.gmra.mxu2 %v7336_v25  ;;  %4392 = vmatmul.bf16.gmra.mxu1 %v7336_v25  ;;  %v4417_v25 = vperm.slane %v4413_v47, 0 }
 0x5fc   : > { %5894 = vmatmul.msk.bf16.gmra.mxu3 %vm7241_vm12, %v7322_v61  ;;  %4363 = vmatmul.bf16.gmra.mxu0 %v7334_v10 }
 0x5fd   : > { %v3778_v14 = vpop.f32.mrf.mxu2  ;;  %4424 = vperm.xlu2 %6328, %v4417_v25  }
 0x5fe   : > { %v3779_v53 = vadd.f32 %v3778_v14, %v7445_v60 }
 0x5ff   : > { %v7472_v20 = vpop.f32.mrf.mxu1  ;;  %v3807_v22 = vpop.f32.mrf.mxu3 }
 0x600   : > { %v3808_v33 = vadd.f32 %v3807_v22, %v3779_v53 }
 0x601   : > { %v3838_v45 = vpop.f32.mrf.mxu0 }
 0x602   : > { %v7476_v34 = vadd.f32 %v3836_v13, %v3808_v33 }
 0x605   : > { %v3780_v48 = vpop.f32.mrf.mxu2 }
 0x606   : > { %v3781_v61 = vadd.f32 %v3780_v48, %v7445_v60 }
 0x607   : > { %v7479_v10 = vpop.f32.mrf.mxu1  ;;  %v3809_v27 = vpop.f32.mrf.mxu3 }
 0x608   : > { %v3810_v28 = vadd.f32 %v3809_v27, %v3781_v61 }
 0x609   : > { %v3841_v7 = vpop.f32.mrf.mxu0 }
 0x60a   : > { %v7481_v18 = vadd.f32 %v3838_v45, %v3810_v28  ;;  %4310 = vmatmul.bf16.gmra.mxu2 %v7362_v44  ;;  %4397 = vmatmul.bf16.gmra.mxu1 %v7362_v44 }
 0x60c   : > { %5898 = vmatmul.msk.bf16.gmra.mxu3 %vm7241_vm12, %v7354_v19  ;;  %4368 = vmatmul.bf16.gmra.mxu0 %v7360_v11 }
 0x60d   : > { %v3783_v46 = vpop.f32.mrf.mxu2 }
 0x60e   : > { %v3784_v49 = vadd.f32 %v3783_v46, %v7445_v60 }
 0x60f   : > { %v7490_v31 = vpop.f32.mrf.mxu1  ;;  %v3812_v2 = vpop.f32.mrf.mxu3 }
 0x610   : > { %v3813_v38 = vadd.f32 %v3812_v2, %v3784_v49 }
 0x611   : > { %v3843_v58 = vpop.f32.mrf.mxu0 }
 0x612   : > { %v7492_v23 = vadd.f32 %v3841_v7, %v3813_v38 }
 0x615   : > { %v3785_v35 = vpop.f32.mrf.mxu2 }
 0x616   : > { %v3786_v32 = vadd.f32 %v3785_v35, %v7445_v60 }
 0x617   : > { %v7495_v44 = vpop.f32.mrf.mxu1  ;;  %v3814_v39 = vpop.f32.mrf.mxu3 }
 0x618   : > { %v3815_v42 = vadd.f32 %v3814_v39, %v3786_v32 }
 0x619   : > { %v3846_v19 = vpop.f32.mrf.mxu0 }
 0x61a   : > { %v7497_v63 = vadd.f32 %v3843_v58, %v3815_v42  ;;  %4315 = vmatmul.bf16.gmra.mxu2 %v7389_v15 }
 0x61c   : > { %5902 = vmatmul.msk.bf16.gmra.mxu3 %vm7241_vm12, %v7375_v1  ;;  %4373 = vmatmul.bf16.gmra.mxu0 %v7387_v50 }
 0x61d   : > { %v3788_v11 = vpop.f32.mrf.mxu2 }
 0x61e   : > { %v3789_v36 = vadd.f32 %v3788_v11, %v7445_v60 }
 0x61f   : > { %v3877_v41 = vpop.f32.mrf.mxu1  ;;  %v3817_v0 = vpop.f32.mrf.mxu3 }
 0x620   : > { %v7506_v3 = vadd.f32 %v3877_v41, %v3521_v57  ;;  %v3818_v51 = vadd.f32 %v3817_v0, %v3789_v36 }
 0x621   : > { %v3848_v30 = vpop.f32.mrf.mxu0 }
 0x622   : > { %v7508_v62 = vadd.f32 %v3846_v19, %v3818_v51 }
 0x625   : > { %v3790_v4 = vpop.f32.mrf.mxu2 }
 0x626   : > { %v3791_v40 = vadd.f32 %v3790_v4, %v7445_v60  ;;  %v3863_v60 = vadd.f32 %v7454_v8, %v3521_v57  ;;  %v3868_v8 = vadd.f32 %v7472_v20, %v3521_v57  ;;  %v3873_v20 = vadd.f32 %v7490_v31, %v3521_v57  ;;  %v5678_v31 = vld [vmem:[%s7748_s29 + $0x2] sm:$0x3] }
 0x627   : > { %v7511_v43 = vpop.f32.mrf.mxu1  ;;  %v3819_v1 = vpop.f32.mrf.mxu3 }
 0x628   : > { %v3820_v50 = vadd.f32 %v3819_v1, %v3791_v40 }
 0x629   : > { %v4243_v17 = vpop.f32.mrf.mxu0 }
 0x62a   : > { %v7513_v26 = vadd.f32 %v3848_v30, %v3820_v50  ;;  %v7566_v50 = vperm.slane %v5678_v31, 0 }
 0x62c   : > { %4402 = vmatmul.bf16.vlgmr.msrb.gmra.mxu3 %v7389_v15  ;;  %v3866_v15 = vadd.f32 %v7461_v9, %v3521_v57  ;;  %v3871_v9 = vadd.f32 %v7479_v10, %v3521_v57  ;;  %v3876_v10 = vadd.f32 %v7495_v44, %v3521_v57  ;;  %v4244_v57 = vadd.f32 %v4243_v17, %v7566_v50 }
 0x62d   : > { %v3889_v52 = vpop.f32.mrf.mxu2 }
 0x62e   : > { %v3890_v6 = vadd.f32 %v3889_v52, %v3861_v29 }
 0x62f   : > { %v7517_v59 = vpop.f32.mrf.mxu1  ;;  %v3918_v16 = vpop.f32.mrf.mxu3 }
 0x630   : > { %v7519_v56 = vadd.f32 %v3918_v16, %v3890_v6 }
 0x631   : > { %v4245_v54 = vpop.f32.mrf.mxu0 }
 0x635   : > { %v3891_v21 = vpop.f32.mrf.mxu2 }
 0x636   : > { %v3892_v55 = vadd.f32 %v3891_v21, %v3863_v60 }
 0x637   : > { %v7522_v13 = vpop.f32.mrf.mxu1  ;;  %v3920_v14 = vpop.f32.mrf.mxu3 }
 0x638   : > { %v7524_v53 = vadd.f32 %v3920_v14, %v3892_v55  ;;  %v4273_v55 = vadd.f32 %v7511_v43, %v4244_v57  ;;  %v7574_v14 = vperm.slane %v5678_v31, 1 }
 0x639   : > { %v7526_v37 = vpop.f32.mrf.mxu0 }
 0x63d   : > { %v3894_v22 = vpop.f32.mrf.mxu2 }
 0x63e   : > { %v3895_v24 = vadd.f32 %v3894_v22, %v3866_v15 }
 0x63f   : > { %v7529_v33 = vpop.f32.mrf.mxu1  ;;  %v3923_v45 = vpop.f32.mrf.mxu3 }
 0x640   : > { %v7531_v47 = vadd.f32 %v3923_v45, %v3895_v24  ;;  %v4246_v45 = vadd.f32 %v4245_v54, %v7566_v50 }
 0x641   : > { %v7533_v25 = vpop.f32.mrf.mxu0 }
 0x645   : > { %v3896_v48 = vpop.f32.mrf.mxu2 }
 0x646   : > { %v3897_v61 = vadd.f32 %v3896_v48, %v3868_v8 }
 0x647   : > { %v7536_v27 = vpop.f32.mrf.mxu1  ;;  %v3925_v28 = vpop.f32.mrf.mxu3 }
 0x648   : > { %v7538_v7 = vadd.f32 %v3925_v28, %v3897_v61  ;;  %v4422_v21 = vpop.permute.xlu2 %4421  ;;  %v4275_v28 = vadd.f32 %v7517_v59, %v4246_v45 }
 0x649   : > { %v7540_v46 = vpop.f32.mrf.mxu0  ;;  %vm4432_vm13 = vcmp.eq.s32.totalorder %v4422_v21, 1 }
 0x64d   : > { %v3899_v49 = vpop.f32.mrf.mxu2 }
 0x64e   : > { %v3900_v2 = vadd.f32 %v3899_v49, %v3871_v9 }
 0x64f   : > { %v7543_v38 = vpop.f32.mrf.mxu1  ;;  %v3928_v58 = vpop.f32.mrf.mxu3 }
 0x650   : > { %v7545_v35 = vadd.f32 %v3928_v58, %v3900_v2  ;;  %v4249_v2 = vadd.f32 %v7526_v37, %v7566_v50 }
 0x651   : > { %v7547_v32 = vpop.f32.mrf.mxu0 }
 0x655   : > { %v3901_v39 = vpop.f32.mrf.mxu2 }
 0x656   : > { %v3902_v42 = vadd.f32 %v3901_v39, %v3873_v20 }
 0x657   : > { %v7550_v19 = vpop.f32.mrf.mxu1  ;;  %v3930_v11 = vpop.f32.mrf.mxu3 }
 0x658   : > { %v7552_v36 = vadd.f32 %v3930_v11, %v3902_v42  ;;  %v4425_v59 = vpop.permute.xlu2 %4424 }
 0x659   : > { %v7554_v41 = vpop.f32.mrf.mxu0  ;;  %vm4433_vm14 = vcmp.eq.s32.totalorder %v4425_v59, 1 }
 0x65d   : > { %v3904_v0 = vpop.f32.mrf.mxu2 }
 0x65e   : > { %v3905_v51 = vadd.f32 %v3904_v0, %v3876_v10 }
 0x65f   : > { %v7557_v30 = vpop.f32.mrf.mxu1  ;;  %v3933_v4 = vpop.f32.mrf.mxu3 }
 0x660   : > { %v7559_v40 = vadd.f32 %v3933_v4, %v3905_v51  ;;  %v4251_v4 = vadd.f32 %v7533_v25, %v7566_v50 }
 0x661   : > { %v7564_v1 = vpop.f32.mrf.mxu0 }
 0x665   : > { %v3906_v29 = vpop.f32.mrf.mxu2 }
 0x666   : > { %v3907_v52 = vadd.f32 %v3906_v29, %v7506_v3 }
 0x667   : > { %v3935_v44 = vpop.f32.mrf.mxu3  ;;  %v4388_v16 = vpop.f32.mrf.mxu1 }
 0x668   : > { %v7570_v6 = vadd.f32 %v3935_v44, %v3907_v52  ;;  %v4280_v44 = vadd.f32 %v7529_v33, %v4251_v4 }
 0x669   : > { %v4359_v60 = vpop.f32.mrf.mxu0 }
 0x66d   : > { %v4301_v15 = vpop.f32.mrf.mxu2 }
 0x66e   : > { %v4302_v22 = vadd.f32 %v4301_v15, %v4273_v55 }
 0x66f   : > { %v4330_v24 = vpop.f32.mrf.mxu3  ;;  %v4390_v48 = vpop.f32.mrf.mxu1 }
 0x670   : > { %v4436_v3 = vsel %vm4432_vm13, %v4302_v22, %v7457_v5  ;;  %v4331_v17 = vadd.f32 %v4330_v24, %v7574_v14  ;;  %v4428_v22 = vpop.permute.xlu0 %4427 }
 0x671   : > { %4452 = vst [vmem:[%s7580_s15] sm:$0xff] %v4436_v3  ;;  %v4361_v43 = vpop.f32.mrf.mxu0  ;;  %vm4434_vm15 = vcmp.eq.s32.totalorder %v4428_v22, 1 }
 0x672   : > { %v4360_v8 = vadd.f32 %v4359_v60, %v4331_v17 }
 0x674   : > { %v4389_v61 = vadd.f32 %v4388_v16, %v4360_v8 }
 0x675   : > { %v4303_v9 = vpop.f32.mrf.mxu2 }
 0x676   : > { %v4437_v54 = vsel %vm4432_vm13, %v4389_v61, %v7519_v56  ;;  %v4304_v49 = vadd.f32 %v4303_v9, %v4275_v28  ;;  %v4278_v56 = vadd.f32 %v7522_v13, %v4249_v2 }
 0x677   : > { %4453 = vst [vmem:[%s7580_s15 + $0x8] sm:$0xff] %v4437_v54  ;;  %v4332_v5 = vpop.f32.mrf.mxu3  ;;  %v4393_v10 = vpop.f32.mrf.mxu1 }
 0x678   : > { %v4438_v58 = vsel %vm4432_vm13, %v4304_v49, %v7463_v12  ;;  %v4333_v20 = vadd.f32 %v4332_v5, %v7574_v14 }
 0x679   : > { %4454 = vst [vmem:[%s7580_s15 + $0x10] sm:$0xff] %v4438_v58  ;;  %v4364_v42 = vpop.f32.mrf.mxu0 }
 0x67a   : > { %v4362_v39 = vadd.f32 %v4361_v43, %v4333_v20 }
 0x67c   : > { %v4391_v11 = vadd.f32 %v4390_v48, %v4362_v39  ;;  %v4431_v39 = vpop.permute.xlu1 %4430 }
 0x67d   : > { %v4306_v0 = vpop.f32.mrf.mxu2  ;;  %vm4435_vm1 = vcmp.eq.s32.totalorder %v4431_v39, 1 }
 0x67e   : > { %v4439_v51 = vsel %vm4432_vm13, %v4391_v11, %v7524_v53  ;;  %v4307_v37 = vadd.f32 %v4306_v0, %v4278_v56  ;;  %v4261_v56 = vadd.f32 %v7564_v1, %v7566_v50 }
 0x67f   : > { %4455 = vst [vmem:[%s7580_s15 + $0x18] sm:$0xff] %v4439_v51  ;;  %v4335_v12 = vpop.f32.mrf.mxu3  ;;  %v4395_v21 = vpop.f32.mrf.mxu1 }
 0x680   : > { %v4440_v31 = vsel %vm4433_vm14, %v4307_v37, %v7476_v34  ;;  %v4336_v29 = vadd.f32 %v4335_v12, %v7574_v14  ;;  %v4254_v34 = vadd.f32 %v7540_v46, %v7566_v50  ;;  %v4290_v0 = vadd.f32 %v7557_v30, %v4261_v56 }
 0x681   : > { %4456 = vst [vmem:[%s7580_s15 + $0x20] sm:$0xff] %v4440_v31  ;;  %v4366_v57 = vpop.f32.mrf.mxu0 }
 0x682   : > { %v4365_v13 = vadd.f32 %v4364_v42, %v4336_v29 }
 0x684   : > { %v4394_v52 = vadd.f32 %v4393_v10, %v4365_v13 }
 0x685   : > { %v4308_v53 = vpop.f32.mrf.mxu2 }
 0x686   : > { %v4441_v16 = vsel %vm4433_vm14, %v4394_v52, %v7531_v47  ;;  %v4309_v60 = vadd.f32 %v4308_v53, %v4280_v44  ;;  %v4283_v47 = vadd.f32 %v7536_v27, %v4254_v34 }
 0x687   : > { %4457 = vst [vmem:[%s7580_s15 + $0x28] sm:$0xff] %v4441_v16  ;;  %v4337_v25 = vpop.f32.mrf.mxu3  ;;  %v4398_v27 = vpop.f32.mrf.mxu1 }
 0x688   : > { %v4442_v55 = vsel %vm4433_vm14, %v4309_v60, %v7481_v18  ;;  %v4338_v15 = vadd.f32 %v4337_v25, %v7574_v14  ;;  %v4256_v18 = vadd.f32 %v7547_v32, %v7566_v50 }
 0x689   : > { %4458 = vst [vmem:[%s7580_s15 + $0x30] sm:$0xff] %v4442_v55  ;;  %v4369_v46 = vpop.f32.mrf.mxu0 }
 0x68a   : > { %v4367_v33 = vadd.f32 %v4366_v57, %v4338_v15 }
 0x68c   : > { %v4396_v24 = vadd.f32 %v4395_v21, %v4367_v33 }
 0x68d   : > { %v4311_v45 = vpop.f32.mrf.mxu2 }
 0x68e   : > { %v4443_v3 = vsel %vm4433_vm14, %v4396_v24, %v7538_v7  ;;  %v4312_v17 = vadd.f32 %v4311_v45, %v4283_v47  ;;  %v4285_v7 = vadd.f32 %v7543_v38, %v4256_v18 }
 0x68f   : > { %4459 = vst [vmem:[%s7580_s15 + $0x38] sm:$0xff] %v4443_v3  ;;  %v4340_v43 = vpop.f32.mrf.mxu3  ;;  %v4400_v20 = vpop.f32.mrf.mxu1 }
 0x690   : > { %v4444_v8 = vsel %vm4434_vm15, %v4312_v17, %v7492_v23  ;;  %v4341_v48 = vadd.f32 %v4340_v43, %v7574_v14  ;;  %v4259_v23 = vadd.f32 %v7554_v41, %v7566_v50 }
 0x691   : > { %4460 = vst [vmem:[%s7580_s15 + $0x40] sm:$0xff] %v4444_v8  ;;  %v4371_v58 = vpop.f32.mrf.mxu0 }
 0x692   : > { %v4370_v61 = vadd.f32 %v4369_v46, %v4341_v48 }
 0x694   : > { %v4399_v28 = vadd.f32 %v4398_v27, %v4370_v61 }
 0x695   : > { %v4313_v9 = vpop.f32.mrf.mxu2 }
 0x696   : > { %v4445_v54 = vsel %vm4434_vm15, %v4399_v28, %v7545_v35  ;;  %v4314_v49 = vadd.f32 %v4313_v9, %v4285_v7  ;;  %v4288_v35 = vadd.f32 %v7550_v19, %v4259_v23 }
 0x697   : > { %4461 = vst [vmem:[%s7580_s15 + $0x48] sm:$0xff] %v4445_v54  ;;  %v4342_v32 = vpop.f32.mrf.mxu3 }
 0x698   : > { %v4446_v5 = vsel %vm4434_vm15, %v4314_v49, %v7497_v63  ;;  %v4343_v2 = vadd.f32 %v4342_v32, %v7574_v14 }
 0x699   : > { %4462 = vst [vmem:[%s7580_s15 + $0x50] sm:$0xff] %v4446_v5  ;;  %v4374_v4 = vpop.f32.mrf.mxu0 }
 0x69a   : > { %v4372_v38 = vadd.f32 %v4371_v58, %v4343_v2 }
 0x69c   : > { %v4401_v59 = vadd.f32 %v4400_v20, %v4372_v38 }
 0x69d   : > { %v4316_v42 = vpop.f32.mrf.mxu2 }
 0x69e   : > { %v4447_v11 = vsel %vm4434_vm15, %v4401_v59, %v7552_v36  ;;  %v4317_v41 = vadd.f32 %v4316_v42, %v4288_v35 }
 0x69f   : > { %4463 = vst [vmem:[%s7580_s15 + $0x58] sm:$0xff] %v4447_v11  ;;  %v4345_v63 = vpop.f32.mrf.mxu3 }
 0x6a0   : > { %v4448_v10 = vsel %vm4435_vm1, %v4317_v41, %v7508_v62  ;;  %v4346_v12 = vadd.f32 %v4345_v63, %v7574_v14 }
 0x6a1   : > { %4464 = vst [vmem:[%s7580_s15 + $0x60] sm:$0xff] %v4448_v10 }
 0x6a2   : > { %v4375_v31 = vadd.f32 %v4374_v4, %v4346_v12 }
 0x6a5   : > { %v4318_v19 = vpop.f32.mrf.mxu2 }
 0x6a6   : > { %v4319_v51 = vadd.f32 %v4318_v19, %v4290_v0 }
 0x6a7   : > { %v4347_v37 = vpop.f32.mrf.mxu3 }
 0x6a8   : > { %v4450_v36 = vsel %vm4435_vm1, %v4319_v51, %v7513_v26  ;;  %v4348_v50 = vadd.f32 %v4347_v37, %v7574_v14  ;;  %v4376_v26 = vpop.f32.mrf.mxu0 }
 0x6a9   : > { %4466 = vst [vmem:[%s7580_s15 + $0x70] sm:$0xff] %v4450_v36 }
 0x6aa   : > { %v4377_v29 = vadd.f32 %v4376_v26, %v4348_v50 }
 0x6af   : > { %v4403_v1 = vpop.f32.mrf.mxu3 }
 0x6b0   : > { %v4404_v62 = vadd.f32 %v4403_v1, %v4375_v31 }
 0x6b2   : > { %v4449_v30 = vsel %vm4435_vm1, %v4404_v62, %v7559_v40 }
 0x6b3   : > { %4465 = vst [vmem:[%s7580_s15 + $0x68] sm:$0xff] %v4449_v30 }
 0x6b7   : > { %v4405_v13 = vpop.f32.mrf.mxu3 }
 0x6b8   : > { %v4406_v52 = vadd.f32 %v4405_v13, %v4377_v29 }
 0x6ba   : > { %v4451_v14 = vsel %vm4435_vm1, %v4406_v52, %v7570_v6 }
 0x6bb   : > { %4467 = vst [vmem:[%s7580_s15 + $0x78] sm:$0xff] %v4451_v14 }
 0x6bc   : > { %6587 = shalt.err (!%p6584_p10)
}
 0x6bd   : > { %s6652_s19 = smov 256   ;;  %s6653_s15 = smov 16  }
 0x6be   : > { %6237 = dma.vmem_to_hbm [thread:$0]  (%p6851_p4), %s4483_s23, 2048, %s4485_s25, %s4469_s28, %s6652_s19, %s6652_s19, %s6653_s15  }
 0x6bf PF: > { %s4499_s18 = sand.u32 1, %s6626_s21   ;;  %p7750_p13 = scmp.ge.s32.totalorder %s6638_s24, 2 }
 0x6c0   : > { %s4500_s30 = scalar_lea.sflag [#allocation4], %s4499_s18 }
 0x6c1   : > { %p6263_p11 = pnand %p7750_p13, %p6855_p6 }
 0x6c3   : > { %p6264_p0 = pneg %p6263_p11 }
 0x6c5   : > { %6621 = dma.done.wait (%p6264_p0), %s4500_s30, 2048  }
 0x6c6   : > { %6623 = vsyncadd (%p6264_p0), %s4500_s30, 4294965248  ;;  %s7751_s16 = sld [smem:[#allocation20_spill]]  ;;  %p32_p2 = scmp.ge.s32.totalorder %s6825_s0, 4  }
 0x6c7   : > { %s7752_s23 = sld [smem:[#allocation21_spill]]  ;;  %s7753_s21 = smov %s6630_s22 }
 0x6c8   : > { %s7755_s24 = smov %s6825_s0  ;;  %34 = sbr.rel (!%p32_p2) target bundleno = 19 (0x13), region = 163 }
 0x6cc   : > { %s7754_s22 = smov %s7751_s16 }
 0x6cd   :  { %4506 = vsyncpa [#allocation3], 1 }
 0x6ce   :  { %4508 = vsyncpa [#allocation3 + $0x1], 1 }
 0x6cf   :  { %4509 = vsyncpa [#allocation6], 1 }
 0x6d0   :  { %4510 = vsyncpa [#allocation9], 1 }
 0x6d1   :  { %4511 = vsyncpa [#allocation12], 1 }
 0x6d2   :  { %4512 = vsyncpa [#allocation4], 1 }
 0x6d3   :  { %4514 = vsyncpa [#allocation4 + $0x1], 1 }

</bundles_post_ra>
